<compile_context>
chip_gen: v7x
topology: tpu7x:2x2x1
jax: 0.10.0
libtpu: 0.0.40
codegen_flags: <defaults>
</compile_context>

<pallas_src>
import jax
import jax.numpy as jnp
import numpy as np
from jax.experimental import pallas as pl
from jax.experimental.pallas import tpu as pltpu


# ----------------------------- fused Pallas kernel -----------------------------

def _lenet_kernel(x_ref, m1_ref, b1_ref, m2_ref, b2_ref, wfc_ref, bfc_ref, o_ref):
    B = x_ref.shape[1]                              # batch tile (static)

    # ---------------- conv1 (1->10, k5) + maxpool2 + relu ----------------
    x = x_ref[...]                                  # (28, B, 28) = (H, batch, W)
    xp = x.reshape(14, 2, B, 28)                    # split H into (row_pair, parity)
    x_par = (xp[:, 0], xp[:, 1])                    # each (14, B, 28)

    acc1 = []
    for p in range(2):                              # output-row parity (H half of the 2x2 pool)
        a = jnp.zeros((12 * B, 240), jnp.float32) + b1_ref[...]
        for di in range(5):                         # kernel row
            # conv output row 2m+p needs input row 2m+p+di = 2(m+s)+t
            t, s = (p + di) % 2, (p + di) // 2
            lhs = x_par[t][s:s + 12].reshape(12 * B, 28)          # rows (m, b)
            a = a + jnp.dot(lhs, m1_ref[di], preferred_element_type=jnp.float32)
        acc1.append(a)
    # 2x2 maxpool: max over H parity, then over the two contiguous W-parity
    # column halves (columns are ordered (w_parity, pooled_w, c)); fused ReLU.
    y1 = jnp.maximum(acc1[0], acc1[1])                            # (12B, 240)
    h1 = jnp.maximum(jnp.maximum(y1[:, :120], y1[:, 120:]), 0.0)  # (12B, 120)
    # h1 row (m, b), col (w*10 + c)  == pooled activation [b, h=m, w, c] of the 12x12x10 map

    # -------- conv2 (10->20, k5) + maxpool2 + relu + fc + log_softmax --------
    z = jnp.zeros((B, 10), jnp.float32) + bfc_ref[...]
    for m2 in range(4):                             # pooled output row of layer 2 == fc 'h' index
        accp = []
        for p in range(2):
            a = jnp.zeros((B, 160), jnp.float32) + b2_ref[...]
            for di in range(5):
                mh = 2 * m2 + p + di                # h1 (pooled) row feeding this output row
                lhs = h1[mh * B:(mh + 1) * B, :]    # (B, 120) contiguous row block
                a = a + jnp.dot(lhs, m2_ref[di], preferred_element_type=jnp.float32)
            accp.append(a)
        y2 = jnp.maximum(accp[0], accp[1])                             # (B, 160)
        h2 = jnp.maximum(jnp.maximum(y2[:, :80], y2[:, 80:]), 0.0)     # (B, 80)
        # fc epilogue: weights pre-permuted so cols (w*20+co) match torch's
        # NCHW flatten index co*16 + h*4 + w.
        z = z + jnp.dot(h2, wfc_ref[m2], preferred_element_type=jnp.float32)

    # numerically-stable log_softmax
    z = z - jnp.max(z, axis=-1, keepdims=True)
    o_ref[...] = z - jnp.log(jnp.sum(jnp.exp(z), axis=-1, keepdims=True))


def net_forward(x_nchw, packed):
    M1, b1r, M2, b2r, WfcH, bfcr = packed
    N = x_nchw.shape[0]
    assert x_nchw.shape[1:] == (1, 28, 28)
    bt = 8 if N % 8 == 0 else N                     # batch tile per grid step
    # Present the input as (H, batch, W): batch on sublanes, H on a leading dim.
    x_t = jnp.transpose(x_nchw.reshape(N, 28, 28), (1, 0, 2))      # (28, N, 28)

    return pl.pallas_call(
        _lenet_kernel,
        out_shape=jax.ShapeDtypeStruct((N, 10), jnp.float32),
        grid=(N // bt,),
        in_specs=[
            pl.BlockSpec((28, bt, 28), lambda i: (0, i, 0)),   # input tile (batch-tiled)
            pl.BlockSpec((5, 28, 240), lambda i: (0, 0, 0)),   # conv1 banded matrices
            pl.BlockSpec((1, 240), lambda i: (0, 0)),          # conv1 bias row
            pl.BlockSpec((5, 120, 160), lambda i: (0, 0, 0)),  # conv2 banded matrices
            pl.BlockSpec((1, 160), lambda i: (0, 0)),          # conv2 bias row
            pl.BlockSpec((4, 80, 10), lambda i: (0, 0, 0)),    # fc weights (per pooled row)
            pl.BlockSpec((1, 10), lambda i: (0, 0)),           # fc bias row
        ],
        out_specs=pl.BlockSpec((bt, 10), lambda i: (i, 0)),
        compiler_params=pltpu.CompilerParams(
            dimension_semantics=("parallel",),                 # megacore-shard the batch axis
            vmem_limit_bytes=32 * 1024 * 1024,                 # safe on v5e/v6e/v7x
        ),
    )(x_t, M1, b1r, M2, b2r, WfcH, bfcr)


# ------------------------- parameter init & packing -------------------------

def init_raw_params(key):
    """Raw parameters in PyTorch layouts."""
    ks = jax.random.split(key, 6)

    def u(k, shape, fan_in):
        b = 1.0 / float(np.sqrt(fan_in))
        return jax.random.uniform(k, shape, jnp.float32, -b, b)

    w1 = u(ks[0], (10, 1, 5, 5), 25)        # (Cout, Cin, kh, kw)
    b1 = u(ks[1], (10,), 25)
    w2 = u(ks[2], (20, 10, 5, 5), 250)
    b2 = u(ks[3], (20,), 250)
    wfc = u(ks[4], (10, 320), 320)          # torch Linear: (out_features, in_features)
    bfc = u(ks[5], (10,), 320)
    return w1, b1, w2, b2, wfc, bfc


def pack_params(w1, b1, w2, b2, wfc, bfc):
    """Pack conv/fc weights into the banded-matmul form used by the kernel (done once)."""
    w1 = np.asarray(w1); b1 = np.asarray(b1)
    w2 = np.asarray(w2); b2 = np.asarray(b2)
    wfc = np.asarray(wfc); bfc = np.asarray(bfc)

    # conv1: M1[di, w_in, q*120 + ow1*10 + c] = w1[c, 0, di, dj],  w_in = (2*ow1+q) + dj
    M1 = np.zeros((5, 28, 240), np.float32)
    for di in range(5):
        for ow in range(24):                 # raw conv-output column
            q, ow1 = ow % 2, ow // 2
            col0 = q * 120 + ow1 * 10
            for dj in range(5):
                M1[di, ow + dj, col0:col0 + 10] = w1[:, 0, di, dj]
    b1row = np.tile(b1, 24)[None].astype(np.float32)            # (1, 240)

    # conv2: M2[di, ow1*10+ci, q2*80 + ow2h*20 + co] = w2[co, ci, di, dj], dj = ow1 - (2*ow2h+q2)
    M2 = np.zeros((5, 120, 160), np.float32)
    for di in range(5):
        for ow2 in range(8):                 # raw conv-output column
            q2, ow2h = ow2 % 2, ow2 // 2
            col0 = q2 * 80 + ow2h * 20
            for dj in range(5):
                ow1 = ow2 + dj
                M2[di, ow1 * 10:(ow1 + 1) * 10, col0:col0 + 20] = w2[:, :, di, dj].T
    b2row = np.tile(b2, 8)[None].astype(np.float32)             # (1, 160)

    # fc: WfcH[h, w*20+co, k] = wfc[k, co*16 + h*4 + w]   (torch NCHW flatten order)
    WfcH = np.zeros((4, 80, 10), np.float32)
    for h in range(4):
        for w in range(4):
            for co in range(20):
                WfcH[h, w * 20 + co, :] = wfc[:, co * 16 + h * 4 + w]
    bfcrow = bfc[None].astype(np.float32)                       # (1, 10)

    to = jnp.asarray
    return to(M1), to(b1row), to(M2), to(b2row), to(WfcH), to(bfcrow)


# --------------------------- pure-JAX reference ---------------------------

@jax.jit
def reference_forward(x_nchw, raw):
    w1, b1, w2, b2, wfc, bfc = raw
    dn = ('NCHW', 'OIHW', 'NCHW')
    y = jax.lax.conv_general_dilated(x_nchw, w1, (1, 1), 'VALID', dimension_numbers=dn)
    y = y + b1[None, :, None, None]
    y = jax.lax.reduce_window(y, -jnp.inf, jax.lax.max, (1, 1, 2, 2), (1, 1, 2, 2), 'VALID')
    y = jnp.maximum(y, 0.0)
    y = jax.lax.conv_general_dilated(y, w2, (1, 1), 'VALID', dimension_numbers=dn)
    y = y + b2[None, :, None, None]
    y = jax.lax.reduce_window(y, -jnp.inf, jax.lax.max, (1, 1, 2, 2), (1, 1, 2, 2), 'VALID')
    y = jnp.maximum(y, 0.0)
    flat = y.reshape(y.shape[0], -1)
    z = flat @ wfc.T + bfc
    return jax.nn.log_softmax(z, axis=-1)


if __name__ == "__main__":
    key = jax.random.PRNGKey(0)
    kx, kp = jax.random.split(key)
    raw = init_raw_params(kp)
    packed = pack_params(*raw)

    net = jax.jit(net_forward)

    # Main case: batch 2 (grid of 1 step).  Second case: batch 16 -> grid of 2
    # parallel steps over 8-sample tiles, exercising the pipelined path.
    for n in (2, 16):
        x = jax.random.normal(jax.random.fold_in(kx, n), (n, 1, 28, 28), jnp.float32)
        out = jax.block_until_ready(net(x, packed))
        assert out.shape == (n, 10)
        assert bool(jnp.all(jnp.isfinite(out)))
        # log_softmax rows should sum (in prob space) to ~1
        assert jnp.allclose(jnp.sum(jnp.exp(out), axis=-1), 1.0, atol=1e-4)
        # match the reference network (loose tol: default matmul/conv precision)
        ref = reference_forward(x, raw)
        np.testing.assert_allclose(np.asarray(out), np.asarray(ref), rtol=2e-2, atol=2e-2)

    print("KERNEL_OK")
</pallas_src>

<mosaic_0001>
module attributes {stable_mosaic.version = 11 : i64} {
  func.func @_lenet_kernel(%arg0: i32, %arg1: memref<28x2x28xf32, #tpu.memory_space<vmem>>, %arg2: memref<5x28x240xf32, #tpu.memory_space<vmem>>, %arg3: memref<1x240xf32, #tpu.memory_space<vmem>>, %arg4: memref<5x120x160xf32, #tpu.memory_space<vmem>>, %arg5: memref<1x160xf32, #tpu.memory_space<vmem>>, %arg6: memref<4x80x10xf32, #tpu.memory_space<vmem>>, %arg7: memref<1x10xf32, #tpu.memory_space<vmem>>, %arg8: memref<2x10xf32, #tpu.memory_space<vmem>>) attributes {dimension_semantics = [#tpu.dimension_semantics<parallel>], iteration_bounds = array<i64: 1>, scalar_prefetch = 0 : i64, scratch_operands = 0 : i64, tpu.core_type = #tpu.core_type<tc>, window_params = [{transform_indices = @transform_0, window_bounds = array<i64: 28, 2, 28>}, {pipeline_mode = #tpu.pipeline_mode<synchronous>, transform_indices = @transform_1, window_bounds = array<i64: 5, 28, 240>}, {pipeline_mode = #tpu.pipeline_mode<synchronous>, transform_indices = @transform_2, window_bounds = array<i64: 1, 240>}, {pipeline_mode = #tpu.pipeline_mode<synchronous>, transform_indices = @transform_3, window_bounds = array<i64: 5, 120, 160>}, {pipeline_mode = #tpu.pipeline_mode<synchronous>, transform_indices = @transform_4, window_bounds = array<i64: 1, 160>}, {pipeline_mode = #tpu.pipeline_mode<synchronous>, transform_indices = @transform_5, window_bounds = array<i64: 4, 80, 10>}, {pipeline_mode = #tpu.pipeline_mode<synchronous>, transform_indices = @transform_6, window_bounds = array<i64: 1, 10>}, {transform_indices = @transform_7, window_bounds = array<i64: 2, 10>}]} {
    %c0 = arith.constant 0 : index
    %c0_0 = arith.constant 0 : index
    %c0_1 = arith.constant 0 : index
    %0 = vector.load %arg1[%c0, %c0_0, %c0_1] : memref<28x2x28xf32, #tpu.memory_space<vmem>>, vector<28x2x28xf32>
    %1 = vector.shape_cast %0 : vector<28x2x28xf32> to vector<14x2x2x28xf32>
    %2 = vector.extract_strided_slice %1 {offsets = [0, 0, 0, 0], sizes = [14, 1, 2, 28], strides = [1, 1, 1, 1]} : vector<14x2x2x28xf32> to vector<14x1x2x28xf32>
    %3 = vector.shape_cast %2 : vector<14x1x2x28xf32> to vector<14x2x28xf32>
    %4 = vector.extract_strided_slice %1 {offsets = [0, 1, 0, 0], sizes = [14, 1, 2, 28], strides = [1, 1, 1, 1]} : vector<14x2x2x28xf32> to vector<14x1x2x28xf32>
    %5 = vector.shape_cast %4 : vector<14x1x2x28xf32> to vector<14x2x28xf32>
    %cst = arith.constant 0.000000e+00 : f32
    %6 = vector.broadcast %cst : f32 to vector<24x240xf32>
    %c0_2 = arith.constant 0 : index
    %c0_3 = arith.constant 0 : index
    %7 = vector.load %arg3[%c0_2, %c0_3] : memref<1x240xf32, #tpu.memory_space<vmem>>, vector<1x240xf32>
    %8 = vector.broadcast %7 : vector<1x240xf32> to vector<24x240xf32>
    %9 = arith.addf %6, %8 : vector<24x240xf32>
    %10 = vector.extract_strided_slice %3 {offsets = [0, 0, 0], sizes = [12, 2, 28], strides = [1, 1, 1]} : vector<14x2x28xf32> to vector<12x2x28xf32>
    %11 = vector.shape_cast %10 : vector<12x2x28xf32> to vector<24x28xf32>
    %c0_4 = arith.constant 0 : index
    %c0_5 = arith.constant 0 : index
    %c0_6 = arith.constant 0 : index
    %12 = vector.load %arg2[%c0_4, %c0_5, %c0_6] : memref<5x28x240xf32, #tpu.memory_space<vmem>>, vector<1x28x240xf32>
    %13 = vector.shape_cast %12 : vector<1x28x240xf32> to vector<28x240xf32>
    %cst_7 = arith.constant dense<0.000000e+00> : vector<24x240xf32>
    %14 = tpu.matmul %11, %13, %cst_7 {dimension_numbers = #tpu.dot_dimension_numbers<[1], [0], [0], [1], [0, 0, 1, 1], [], []>} : vector<24x28xf32>, vector<28x240xf32>, vector<24x240xf32> -> vector<24x240xf32>
    %15 = arith.addf %9, %14 : vector<24x240xf32>
    %16 = vector.extract_strided_slice %5 {offsets = [0, 0, 0], sizes = [12, 2, 28], strides = [1, 1, 1]} : vector<14x2x28xf32> to vector<12x2x28xf32>
    %17 = vector.shape_cast %16 : vector<12x2x28xf32> to vector<24x28xf32>
    %c1 = arith.constant 1 : index
    %c0_8 = arith.constant 0 : index
    %c0_9 = arith.constant 0 : index
    %18 = vector.load %arg2[%c1, %c0_8, %c0_9] : memref<5x28x240xf32, #tpu.memory_space<vmem>>, vector<1x28x240xf32>
    %19 = vector.shape_cast %18 : vector<1x28x240xf32> to vector<28x240xf32>
    %cst_10 = arith.constant dense<0.000000e+00> : vector<24x240xf32>
    %20 = tpu.matmul %17, %19, %cst_10 {dimension_numbers = #tpu.dot_dimension_numbers<[1], [0], [0], [1], [0, 0, 1, 1], [], []>} : vector<24x28xf32>, vector<28x240xf32>, vector<24x240xf32> -> vector<24x240xf32>
    %21 = arith.addf %15, %20 : vector<24x240xf32>
    %22 = vector.extract_strided_slice %3 {offsets = [1, 0, 0], sizes = [12, 2, 28], strides = [1, 1, 1]} : vector<14x2x28xf32> to vector<12x2x28xf32>
    %23 = vector.shape_cast %22 : vector<12x2x28xf32> to vector<24x28xf32>
    %c2 = arith.constant 2 : index
    %c0_11 = arith.constant 0 : index
    %c0_12 = arith.constant 0 : index
    %24 = vector.load %arg2[%c2, %c0_11, %c0_12] : memref<5x28x240xf32, #tpu.memory_space<vmem>>, vector<1x28x240xf32>
    %25 = vector.shape_cast %24 : vector<1x28x240xf32> to vector<28x240xf32>
    %cst_13 = arith.constant dense<0.000000e+00> : vector<24x240xf32>
    %26 = tpu.matmul %23, %25, %cst_13 {dimension_numbers = #tpu.dot_dimension_numbers<[1], [0], [0], [1], [0, 0, 1, 1], [], []>} : vector<24x28xf32>, vector<28x240xf32>, vector<24x240xf32> -> vector<24x240xf32>
    %27 = arith.addf %21, %26 : vector<24x240xf32>
    %28 = vector.extract_strided_slice %5 {offsets = [1, 0, 0], sizes = [12, 2, 28], strides = [1, 1, 1]} : vector<14x2x28xf32> to vector<12x2x28xf32>
    %29 = vector.shape_cast %28 : vector<12x2x28xf32> to vector<24x28xf32>
    %c3 = arith.constant 3 : index
    %c0_14 = arith.constant 0 : index
    %c0_15 = arith.constant 0 : index
    %30 = vector.load %arg2[%c3, %c0_14, %c0_15] : memref<5x28x240xf32, #tpu.memory_space<vmem>>, vector<1x28x240xf32>
    %31 = vector.shape_cast %30 : vector<1x28x240xf32> to vector<28x240xf32>
    %cst_16 = arith.constant dense<0.000000e+00> : vector<24x240xf32>
    %32 = tpu.matmul %29, %31, %cst_16 {dimension_numbers = #tpu.dot_dimension_numbers<[1], [0], [0], [1], [0, 0, 1, 1], [], []>} : vector<24x28xf32>, vector<28x240xf32>, vector<24x240xf32> -> vector<24x240xf32>
    %33 = arith.addf %27, %32 : vector<24x240xf32>
    %34 = vector.extract_strided_slice %3 {offsets = [2, 0, 0], sizes = [12, 2, 28], strides = [1, 1, 1]} : vector<14x2x28xf32> to vector<12x2x28xf32>
    %35 = vector.shape_cast %34 : vector<12x2x28xf32> to vector<24x28xf32>
    %c4 = arith.constant 4 : index
    %c0_17 = arith.constant 0 : index
    %c0_18 = arith.constant 0 : index
    %36 = vector.load %arg2[%c4, %c0_17, %c0_18] : memref<5x28x240xf32, #tpu.memory_space<vmem>>, vector<1x28x240xf32>
    %37 = vector.shape_cast %36 : vector<1x28x240xf32> to vector<28x240xf32>
    %cst_19 = arith.constant dense<0.000000e+00> : vector<24x240xf32>
    %38 = tpu.matmul %35, %37, %cst_19 {dimension_numbers = #tpu.dot_dimension_numbers<[1], [0], [0], [1], [0, 0, 1, 1], [], []>} : vector<24x28xf32>, vector<28x240xf32>, vector<24x240xf32> -> vector<24x240xf32>
    %39 = arith.addf %33, %38 : vector<24x240xf32>
    %cst_20 = arith.constant 0.000000e+00 : f32
    %40 = vector.broadcast %cst_20 : f32 to vector<24x240xf32>
    %c0_21 = arith.constant 0 : index
    %c0_22 = arith.constant 0 : index
    %41 = vector.load %arg3[%c0_21, %c0_22] : memref<1x240xf32, #tpu.memory_space<vmem>>, vector<1x240xf32>
    %42 = vector.broadcast %41 : vector<1x240xf32> to vector<24x240xf32>
    %43 = arith.addf %40, %42 : vector<24x240xf32>
    %44 = vector.extract_strided_slice %5 {offsets = [0, 0, 0], sizes = [12, 2, 28], strides = [1, 1, 1]} : vector<14x2x28xf32> to vector<12x2x28xf32>
    %45 = vector.shape_cast %44 : vector<12x2x28xf32> to vector<24x28xf32>
    %c0_23 = arith.constant 0 : index
    %c0_24 = arith.constant 0 : index
    %c0_25 = arith.constant 0 : index
    %46 = vector.load %arg2[%c0_23, %c0_24, %c0_25] : memref<5x28x240xf32, #tpu.memory_space<vmem>>, vector<1x28x240xf32>
    %47 = vector.shape_cast %46 : vector<1x28x240xf32> to vector<28x240xf32>
    %cst_26 = arith.constant dense<0.000000e+00> : vector<24x240xf32>
    %48 = tpu.matmul %45, %47, %cst_26 {dimension_numbers = #tpu.dot_dimension_numbers<[1], [0], [0], [1], [0, 0, 1, 1], [], []>} : vector<24x28xf32>, vector<28x240xf32>, vector<24x240xf32> -> vector<24x240xf32>
    %49 = arith.addf %43, %48 : vector<24x240xf32>
    %50 = vector.extract_strided_slice %3 {offsets = [1, 0, 0], sizes = [12, 2, 28], strides = [1, 1, 1]} : vector<14x2x28xf32> to vector<12x2x28xf32>
    %51 = vector.shape_cast %50 : vector<12x2x28xf32> to vector<24x28xf32>
    %c1_27 = arith.constant 1 : index
    %c0_28 = arith.constant 0 : index
    %c0_29 = arith.constant 0 : index
    %52 = vector.load %arg2[%c1_27, %c0_28, %c0_29] : memref<5x28x240xf32, #tpu.memory_space<vmem>>, vector<1x28x240xf32>
    %53 = vector.shape_cast %52 : vector<1x28x240xf32> to vector<28x240xf32>
    %cst_30 = arith.constant dense<0.000000e+00> : vector<24x240xf32>
    %54 = tpu.matmul %51, %53, %cst_30 {dimension_numbers = #tpu.dot_dimension_numbers<[1], [0], [0], [1], [0, 0, 1, 1], [], []>} : vector<24x28xf32>, vector<28x240xf32>, vector<24x240xf32> -> vector<24x240xf32>
    %55 = arith.addf %49, %54 : vector<24x240xf32>
    %56 = vector.extract_strided_slice %5 {offsets = [1, 0, 0], sizes = [12, 2, 28], strides = [1, 1, 1]} : vector<14x2x28xf32> to vector<12x2x28xf32>
    %57 = vector.shape_cast %56 : vector<12x2x28xf32> to vector<24x28xf32>
    %c2_31 = arith.constant 2 : index
    %c0_32 = arith.constant 0 : index
    %c0_33 = arith.constant 0 : index
    %58 = vector.load %arg2[%c2_31, %c0_32, %c0_33] : memref<5x28x240xf32, #tpu.memory_space<vmem>>, vector<1x28x240xf32>
    %59 = vector.shape_cast %58 : vector<1x28x240xf32> to vector<28x240xf32>
    %cst_34 = arith.constant dense<0.000000e+00> : vector<24x240xf32>
    %60 = tpu.matmul %57, %59, %cst_34 {dimension_numbers = #tpu.dot_dimension_numbers<[1], [0], [0], [1], [0, 0, 1, 1], [], []>} : vector<24x28xf32>, vector<28x240xf32>, vector<24x240xf32> -> vector<24x240xf32>
    %61 = arith.addf %55, %60 : vector<24x240xf32>
    %62 = vector.extract_strided_slice %3 {offsets = [2, 0, 0], sizes = [12, 2, 28], strides = [1, 1, 1]} : vector<14x2x28xf32> to vector<12x2x28xf32>
    %63 = vector.shape_cast %62 : vector<12x2x28xf32> to vector<24x28xf32>
    %c3_35 = arith.constant 3 : index
    %c0_36 = arith.constant 0 : index
    %c0_37 = arith.constant 0 : index
    %64 = vector.load %arg2[%c3_35, %c0_36, %c0_37] : memref<5x28x240xf32, #tpu.memory_space<vmem>>, vector<1x28x240xf32>
    %65 = vector.shape_cast %64 : vector<1x28x240xf32> to vector<28x240xf32>
    %cst_38 = arith.constant dense<0.000000e+00> : vector<24x240xf32>
    %66 = tpu.matmul %63, %65, %cst_38 {dimension_numbers = #tpu.dot_dimension_numbers<[1], [0], [0], [1], [0, 0, 1, 1], [], []>} : vector<24x28xf32>, vector<28x240xf32>, vector<24x240xf32> -> vector<24x240xf32>
    %67 = arith.addf %61, %66 : vector<24x240xf32>
    %68 = vector.extract_strided_slice %5 {offsets = [2, 0, 0], sizes = [12, 2, 28], strides = [1, 1, 1]} : vector<14x2x28xf32> to vector<12x2x28xf32>
    %69 = vector.shape_cast %68 : vector<12x2x28xf32> to vector<24x28xf32>
    %c4_39 = arith.constant 4 : index
    %c0_40 = arith.constant 0 : index
    %c0_41 = arith.constant 0 : index
    %70 = vector.load %arg2[%c4_39, %c0_40, %c0_41] : memref<5x28x240xf32, #tpu.memory_space<vmem>>, vector<1x28x240xf32>
    %71 = vector.shape_cast %70 : vector<1x28x240xf32> to vector<28x240xf32>
    %cst_42 = arith.constant dense<0.000000e+00> : vector<24x240xf32>
    %72 = tpu.matmul %69, %71, %cst_42 {dimension_numbers = #tpu.dot_dimension_numbers<[1], [0], [0], [1], [0, 0, 1, 1], [], []>} : vector<24x28xf32>, vector<28x240xf32>, vector<24x240xf32> -> vector<24x240xf32>
    %73 = arith.addf %67, %72 : vector<24x240xf32>
    %74 = arith.maximumf %39, %73 : vector<24x240xf32>
    %75 = vector.extract_strided_slice %74 {offsets = [0, 0], sizes = [24, 120], strides = [1, 1]} : vector<24x240xf32> to vector<24x120xf32>
    %76 = vector.extract_strided_slice %74 {offsets = [0, 120], sizes = [24, 120], strides = [1, 1]} : vector<24x240xf32> to vector<24x120xf32>
    %77 = arith.maximumf %75, %76 : vector<24x120xf32>
    %cst_43 = arith.constant 0.000000e+00 : f32
    %78 = vector.broadcast %cst_43 : f32 to vector<24x120xf32>
    %79 = arith.maximumf %77, %78 : vector<24x120xf32>
    %cst_44 = arith.constant 0.000000e+00 : f32
    %80 = vector.broadcast %cst_44 : f32 to vector<2x10xf32>
    %c0_45 = arith.constant 0 : index
    %c0_46 = arith.constant 0 : index
    %81 = vector.load %arg7[%c0_45, %c0_46] : memref<1x10xf32, #tpu.memory_space<vmem>>, vector<1x10xf32>
    %82 = vector.broadcast %81 : vector<1x10xf32> to vector<2x10xf32>
    %83 = arith.addf %80, %82 : vector<2x10xf32>
    %cst_47 = arith.constant 0.000000e+00 : f32
    %84 = vector.broadcast %cst_47 : f32 to vector<2x160xf32>
    %c0_48 = arith.constant 0 : index
    %c0_49 = arith.constant 0 : index
    %85 = vector.load %arg5[%c0_48, %c0_49] : memref<1x160xf32, #tpu.memory_space<vmem>>, vector<1x160xf32>
    %86 = vector.broadcast %85 : vector<1x160xf32> to vector<2x160xf32>
    %87 = arith.addf %84, %86 : vector<2x160xf32>
    %88 = vector.extract_strided_slice %79 {offsets = [0, 0], sizes = [2, 120], strides = [1, 1]} : vector<24x120xf32> to vector<2x120xf32>
    %c0_50 = arith.constant 0 : index
    %c0_51 = arith.constant 0 : index
    %c0_52 = arith.constant 0 : index
    %89 = vector.load %arg4[%c0_50, %c0_51, %c0_52] : memref<5x120x160xf32, #tpu.memory_space<vmem>>, vector<1x120x160xf32>
    %90 = vector.shape_cast %89 : vector<1x120x160xf32> to vector<120x160xf32>
    %cst_53 = arith.constant dense<0.000000e+00> : vector<2x160xf32>
    %91 = tpu.matmul %88, %90, %cst_53 {dimension_numbers = #tpu.dot_dimension_numbers<[1], [0], [0], [1], [0, 0, 1, 1], [], []>} : vector<2x120xf32>, vector<120x160xf32>, vector<2x160xf32> -> vector<2x160xf32>
    %92 = arith.addf %87, %91 : vector<2x160xf32>
    %93 = vector.extract_strided_slice %79 {offsets = [2, 0], sizes = [2, 120], strides = [1, 1]} : vector<24x120xf32> to vector<2x120xf32>
    %c1_54 = arith.constant 1 : index
    %c0_55 = arith.constant 0 : index
    %c0_56 = arith.constant 0 : index
    %94 = vector.load %arg4[%c1_54, %c0_55, %c0_56] : memref<5x120x160xf32, #tpu.memory_space<vmem>>, vector<1x120x160xf32>
    %95 = vector.shape_cast %94 : vector<1x120x160xf32> to vector<120x160xf32>
    %cst_57 = arith.constant dense<0.000000e+00> : vector<2x160xf32>
    %96 = tpu.matmul %93, %95, %cst_57 {dimension_numbers = #tpu.dot_dimension_numbers<[1], [0], [0], [1], [0, 0, 1, 1], [], []>} : vector<2x120xf32>, vector<120x160xf32>, vector<2x160xf32> -> vector<2x160xf32>
    %97 = arith.addf %92, %96 : vector<2x160xf32>
    %98 = vector.extract_strided_slice %79 {offsets = [4, 0], sizes = [2, 120], strides = [1, 1]} : vector<24x120xf32> to vector<2x120xf32>
    %c2_58 = arith.constant 2 : index
    %c0_59 = arith.constant 0 : index
    %c0_60 = arith.constant 0 : index
    %99 = vector.load %arg4[%c2_58, %c0_59, %c0_60] : memref<5x120x160xf32, #tpu.memory_space<vmem>>, vector<1x120x160xf32>
    %100 = vector.shape_cast %99 : vector<1x120x160xf32> to vector<120x160xf32>
    %cst_61 = arith.constant dense<0.000000e+00> : vector<2x160xf32>
    %101 = tpu.matmul %98, %100, %cst_61 {dimension_numbers = #tpu.dot_dimension_numbers<[1], [0], [0], [1], [0, 0, 1, 1], [], []>} : vector<2x120xf32>, vector<120x160xf32>, vector<2x160xf32> -> vector<2x160xf32>
    %102 = arith.addf %97, %101 : vector<2x160xf32>
    %103 = vector.extract_strided_slice %79 {offsets = [6, 0], sizes = [2, 120], strides = [1, 1]} : vector<24x120xf32> to vector<2x120xf32>
    %c3_62 = arith.constant 3 : index
    %c0_63 = arith.constant 0 : index
    %c0_64 = arith.constant 0 : index
    %104 = vector.load %arg4[%c3_62, %c0_63, %c0_64] : memref<5x120x160xf32, #tpu.memory_space<vmem>>, vector<1x120x160xf32>
    %105 = vector.shape_cast %104 : vector<1x120x160xf32> to vector<120x160xf32>
    %cst_65 = arith.constant dense<0.000000e+00> : vector<2x160xf32>
    %106 = tpu.matmul %103, %105, %cst_65 {dimension_numbers = #tpu.dot_dimension_numbers<[1], [0], [0], [1], [0, 0, 1, 1], [], []>} : vector<2x120xf32>, vector<120x160xf32>, vector<2x160xf32> -> vector<2x160xf32>
    %107 = arith.addf %102, %106 : vector<2x160xf32>
    %108 = vector.extract_strided_slice %79 {offsets = [8, 0], sizes = [2, 120], strides = [1, 1]} : vector<24x120xf32> to vector<2x120xf32>
    %c4_66 = arith.constant 4 : index
    %c0_67 = arith.constant 0 : index
    %c0_68 = arith.constant 0 : index
    %109 = vector.load %arg4[%c4_66, %c0_67, %c0_68] : memref<5x120x160xf32, #tpu.memory_space<vmem>>, vector<1x120x160xf32>
    %110 = vector.shape_cast %109 : vector<1x120x160xf32> to vector<120x160xf32>
    %cst_69 = arith.constant dense<0.000000e+00> : vector<2x160xf32>
    %111 = tpu.matmul %108, %110, %cst_69 {dimension_numbers = #tpu.dot_dimension_numbers<[1], [0], [0], [1], [0, 0, 1, 1], [], []>} : vector<2x120xf32>, vector<120x160xf32>, vector<2x160xf32> -> vector<2x160xf32>
    %112 = arith.addf %107, %111 : vector<2x160xf32>
    %cst_70 = arith.constant 0.000000e+00 : f32
    %113 = vector.broadcast %cst_70 : f32 to vector<2x160xf32>
    %c0_71 = arith.constant 0 : index
    %c0_72 = arith.constant 0 : index
    %114 = vector.load %arg5[%c0_71, %c0_72] : memref<1x160xf32, #tpu.memory_space<vmem>>, vector<1x160xf32>
    %115 = vector.broadcast %114 : vector<1x160xf32> to vector<2x160xf32>
    %116 = arith.addf %113, %115 : vector<2x160xf32>
    %117 = vector.extract_strided_slice %79 {offsets = [2, 0], sizes = [2, 120], strides = [1, 1]} : vector<24x120xf32> to vector<2x120xf32>
    %c0_73 = arith.constant 0 : index
    %c0_74 = arith.constant 0 : index
    %c0_75 = arith.constant 0 : index
    %118 = vector.load %arg4[%c0_73, %c0_74, %c0_75] : memref<5x120x160xf32, #tpu.memory_space<vmem>>, vector<1x120x160xf32>
    %119 = vector.shape_cast %118 : vector<1x120x160xf32> to vector<120x160xf32>
    %cst_76 = arith.constant dense<0.000000e+00> : vector<2x160xf32>
    %120 = tpu.matmul %117, %119, %cst_76 {dimension_numbers = #tpu.dot_dimension_numbers<[1], [0], [0], [1], [0, 0, 1, 1], [], []>} : vector<2x120xf32>, vector<120x160xf32>, vector<2x160xf32> -> vector<2x160xf32>
    %121 = arith.addf %116, %120 : vector<2x160xf32>
    %122 = vector.extract_strided_slice %79 {offsets = [4, 0], sizes = [2, 120], strides = [1, 1]} : vector<24x120xf32> to vector<2x120xf32>
    %c1_77 = arith.constant 1 : index
    %c0_78 = arith.constant 0 : index
    %c0_79 = arith.constant 0 : index
    %123 = vector.load %arg4[%c1_77, %c0_78, %c0_79] : memref<5x120x160xf32, #tpu.memory_space<vmem>>, vector<1x120x160xf32>
    %124 = vector.shape_cast %123 : vector<1x120x160xf32> to vector<120x160xf32>
    %cst_80 = arith.constant dense<0.000000e+00> : vector<2x160xf32>
    %125 = tpu.matmul %122, %124, %cst_80 {dimension_numbers = #tpu.dot_dimension_numbers<[1], [0], [0], [1], [0, 0, 1, 1], [], []>} : vector<2x120xf32>, vector<120x160xf32>, vector<2x160xf32> -> vector<2x160xf32>
    %126 = arith.addf %121, %125 : vector<2x160xf32>
    %127 = vector.extract_strided_slice %79 {offsets = [6, 0], sizes = [2, 120], strides = [1, 1]} : vector<24x120xf32> to vector<2x120xf32>
    %c2_81 = arith.constant 2 : index
    %c0_82 = arith.constant 0 : index
    %c0_83 = arith.constant 0 : index
    %128 = vector.load %arg4[%c2_81, %c0_82, %c0_83] : memref<5x120x160xf32, #tpu.memory_space<vmem>>, vector<1x120x160xf32>
    %129 = vector.shape_cast %128 : vector<1x120x160xf32> to vector<120x160xf32>
    %cst_84 = arith.constant dense<0.000000e+00> : vector<2x160xf32>
    %130 = tpu.matmul %127, %129, %cst_84 {dimension_numbers = #tpu.dot_dimension_numbers<[1], [0], [0], [1], [0, 0, 1, 1], [], []>} : vector<2x120xf32>, vector<120x160xf32>, vector<2x160xf32> -> vector<2x160xf32>
    %131 = arith.addf %126, %130 : vector<2x160xf32>
    %132 = vector.extract_strided_slice %79 {offsets = [8, 0], sizes = [2, 120], strides = [1, 1]} : vector<24x120xf32> to vector<2x120xf32>
    %c3_85 = arith.constant 3 : index
    %c0_86 = arith.constant 0 : index
    %c0_87 = arith.constant 0 : index
    %133 = vector.load %arg4[%c3_85, %c0_86, %c0_87] : memref<5x120x160xf32, #tpu.memory_space<vmem>>, vector<1x120x160xf32>
    %134 = vector.shape_cast %133 : vector<1x120x160xf32> to vector<120x160xf32>
    %cst_88 = arith.constant dense<0.000000e+00> : vector<2x160xf32>
    %135 = tpu.matmul %132, %134, %cst_88 {dimension_numbers = #tpu.dot_dimension_numbers<[1], [0], [0], [1], [0, 0, 1, 1], [], []>} : vector<2x120xf32>, vector<120x160xf32>, vector<2x160xf32> -> vector<2x160xf32>
    %136 = arith.addf %131, %135 : vector<2x160xf32>
    %137 = vector.extract_strided_slice %79 {offsets = [10, 0], sizes = [2, 120], strides = [1, 1]} : vector<24x120xf32> to vector<2x120xf32>
    %c4_89 = arith.constant 4 : index
    %c0_90 = arith.constant 0 : index
    %c0_91 = arith.constant 0 : index
    %138 = vector.load %arg4[%c4_89, %c0_90, %c0_91] : memref<5x120x160xf32, #tpu.memory_space<vmem>>, vector<1x120x160xf32>
    %139 = vector.shape_cast %138 : vector<1x120x160xf32> to vector<120x160xf32>
    %cst_92 = arith.constant dense<0.000000e+00> : vector<2x160xf32>
    %140 = tpu.matmul %137, %139, %cst_92 {dimension_numbers = #tpu.dot_dimension_numbers<[1], [0], [0], [1], [0, 0, 1, 1], [], []>} : vector<2x120xf32>, vector<120x160xf32>, vector<2x160xf32> -> vector<2x160xf32>
    %141 = arith.addf %136, %140 : vector<2x160xf32>
    %142 = arith.maximumf %112, %141 : vector<2x160xf32>
    %143 = vector.extract_strided_slice %142 {offsets = [0, 0], sizes = [2, 80], strides = [1, 1]} : vector<2x160xf32> to vector<2x80xf32>
    %144 = vector.extract_strided_slice %142 {offsets = [0, 80], sizes = [2, 80], strides = [1, 1]} : vector<2x160xf32> to vector<2x80xf32>
    %145 = arith.maximumf %143, %144 : vector<2x80xf32>
    %cst_93 = arith.constant 0.000000e+00 : f32
    %146 = vector.broadcast %cst_93 : f32 to vector<2x80xf32>
    %147 = arith.maximumf %145, %146 : vector<2x80xf32>
    %c0_94 = arith.constant 0 : index
    %c0_95 = arith.constant 0 : index
    %c0_96 = arith.constant 0 : index
    %148 = vector.load %arg6[%c0_94, %c0_95, %c0_96] : memref<4x80x10xf32, #tpu.memory_space<vmem>>, vector<1x80x10xf32>
    %149 = vector.shape_cast %148 : vector<1x80x10xf32> to vector<80x10xf32>
    %cst_97 = arith.constant dense<0.000000e+00> : vector<2x10xf32>
    %150 = tpu.matmul %147, %149, %cst_97 {dimension_numbers = #tpu.dot_dimension_numbers<[1], [0], [0], [1], [0, 0, 1, 1], [], []>} : vector<2x80xf32>, vector<80x10xf32>, vector<2x10xf32> -> vector<2x10xf32>
    %151 = arith.addf %83, %150 : vector<2x10xf32>
    %cst_98 = arith.constant 0.000000e+00 : f32
    %152 = vector.broadcast %cst_98 : f32 to vector<2x160xf32>
    %c0_99 = arith.constant 0 : index
    %c0_100 = arith.constant 0 : index
    %153 = vector.load %arg5[%c0_99, %c0_100] : memref<1x160xf32, #tpu.memory_space<vmem>>, vector<1x160xf32>
    %154 = vector.broadcast %153 : vector<1x160xf32> to vector<2x160xf32>
    %155 = arith.addf %152, %154 : vector<2x160xf32>
    %156 = vector.extract_strided_slice %79 {offsets = [4, 0], sizes = [2, 120], strides = [1, 1]} : vector<24x120xf32> to vector<2x120xf32>
    %c0_101 = arith.constant 0 : index
    %c0_102 = arith.constant 0 : index
    %c0_103 = arith.constant 0 : index
    %157 = vector.load %arg4[%c0_101, %c0_102, %c0_103] : memref<5x120x160xf32, #tpu.memory_space<vmem>>, vector<1x120x160xf32>
    %158 = vector.shape_cast %157 : vector<1x120x160xf32> to vector<120x160xf32>
    %cst_104 = arith.constant dense<0.000000e+00> : vector<2x160xf32>
    %159 = tpu.matmul %156, %158, %cst_104 {dimension_numbers = #tpu.dot_dimension_numbers<[1], [0], [0], [1], [0, 0, 1, 1], [], []>} : vector<2x120xf32>, vector<120x160xf32>, vector<2x160xf32> -> vector<2x160xf32>
    %160 = arith.addf %155, %159 : vector<2x160xf32>
    %161 = vector.extract_strided_slice %79 {offsets = [6, 0], sizes = [2, 120], strides = [1, 1]} : vector<24x120xf32> to vector<2x120xf32>
    %c1_105 = arith.constant 1 : index
    %c0_106 = arith.constant 0 : index
    %c0_107 = arith.constant 0 : index
    %162 = vector.load %arg4[%c1_105, %c0_106, %c0_107] : memref<5x120x160xf32, #tpu.memory_space<vmem>>, vector<1x120x160xf32>
    %163 = vector.shape_cast %162 : vector<1x120x160xf32> to vector<120x160xf32>
    %cst_108 = arith.constant dense<0.000000e+00> : vector<2x160xf32>
    %164 = tpu.matmul %161, %163, %cst_108 {dimension_numbers = #tpu.dot_dimension_numbers<[1], [0], [0], [1], [0, 0, 1, 1], [], []>} : vector<2x120xf32>, vector<120x160xf32>, vector<2x160xf32> -> vector<2x160xf32>
    %165 = arith.addf %160, %164 : vector<2x160xf32>
    %166 = vector.extract_strided_slice %79 {offsets = [8, 0], sizes = [2, 120], strides = [1, 1]} : vector<24x120xf32> to vector<2x120xf32>
    %c2_109 = arith.constant 2 : index
    %c0_110 = arith.constant 0 : index
    %c0_111 = arith.constant 0 : index
    %167 = vector.load %arg4[%c2_109, %c0_110, %c0_111] : memref<5x120x160xf32, #tpu.memory_space<vmem>>, vector<1x120x160xf32>
    %168 = vector.shape_cast %167 : vector<1x120x160xf32> to vector<120x160xf32>
    %cst_112 = arith.constant dense<0.000000e+00> : vector<2x160xf32>
    %169 = tpu.matmul %166, %168, %cst_112 {dimension_numbers = #tpu.dot_dimension_numbers<[1], [0], [0], [1], [0, 0, 1, 1], [], []>} : vector<2x120xf32>, vector<120x160xf32>, vector<2x160xf32> -> vector<2x160xf32>
    %170 = arith.addf %165, %169 : vector<2x160xf32>
    %171 = vector.extract_strided_slice %79 {offsets = [10, 0], sizes = [2, 120], strides = [1, 1]} : vector<24x120xf32> to vector<2x120xf32>
    %c3_113 = arith.constant 3 : index
    %c0_114 = arith.constant 0 : index
    %c0_115 = arith.constant 0 : index
    %172 = vector.load %arg4[%c3_113, %c0_114, %c0_115] : memref<5x120x160xf32, #tpu.memory_space<vmem>>, vector<1x120x160xf32>
    %173 = vector.shape_cast %172 : vector<1x120x160xf32> to vector<120x160xf32>
    %cst_116 = arith.constant dense<0.000000e+00> : vector<2x160xf32>
    %174 = tpu.matmul %171, %173, %cst_116 {dimension_numbers = #tpu.dot_dimension_numbers<[1], [0], [0], [1], [0, 0, 1, 1], [], []>} : vector<2x120xf32>, vector<120x160xf32>, vector<2x160xf32> -> vector<2x160xf32>
    %175 = arith.addf %170, %174 : vector<2x160xf32>
    %176 = vector.extract_strided_slice %79 {offsets = [12, 0], sizes = [2, 120], strides = [1, 1]} : vector<24x120xf32> to vector<2x120xf32>
    %c4_117 = arith.constant 4 : index
    %c0_118 = arith.constant 0 : index
    %c0_119 = arith.constant 0 : index
    %177 = vector.load %arg4[%c4_117, %c0_118, %c0_119] : memref<5x120x160xf32, #tpu.memory_space<vmem>>, vector<1x120x160xf32>
    %178 = vector.shape_cast %177 : vector<1x120x160xf32> to vector<120x160xf32>
    %cst_120 = arith.constant dense<0.000000e+00> : vector<2x160xf32>
    %179 = tpu.matmul %176, %178, %cst_120 {dimension_numbers = #tpu.dot_dimension_numbers<[1], [0], [0], [1], [0, 0, 1, 1], [], []>} : vector<2x120xf32>, vector<120x160xf32>, vector<2x160xf32> -> vector<2x160xf32>
    %180 = arith.addf %175, %179 : vector<2x160xf32>
    %cst_121 = arith.constant 0.000000e+00 : f32
    %181 = vector.broadcast %cst_121 : f32 to vector<2x160xf32>
    %c0_122 = arith.constant 0 : index
    %c0_123 = arith.constant 0 : index
    %182 = vector.load %arg5[%c0_122, %c0_123] : memref<1x160xf32, #tpu.memory_space<vmem>>, vector<1x160xf32>
    %183 = vector.broadcast %182 : vector<1x160xf32> to vector<2x160xf32>
    %184 = arith.addf %181, %183 : vector<2x160xf32>
    %185 = vector.extract_strided_slice %79 {offsets = [6, 0], sizes = [2, 120], strides = [1, 1]} : vector<24x120xf32> to vector<2x120xf32>
    %c0_124 = arith.constant 0 : index
    %c0_125 = arith.constant 0 : index
    %c0_126 = arith.constant 0 : index
    %186 = vector.load %arg4[%c0_124, %c0_125, %c0_126] : memref<5x120x160xf32, #tpu.memory_space<vmem>>, vector<1x120x160xf32>
    %187 = vector.shape_cast %186 : vector<1x120x160xf32> to vector<120x160xf32>
    %cst_127 = arith.constant dense<0.000000e+00> : vector<2x160xf32>
    %188 = tpu.matmul %185, %187, %cst_127 {dimension_numbers = #tpu.dot_dimension_numbers<[1], [0], [0], [1], [0, 0, 1, 1], [], []>} : vector<2x120xf32>, vector<120x160xf32>, vector<2x160xf32> -> vector<2x160xf32>
    %189 = arith.addf %184, %188 : vector<2x160xf32>
    %190 = vector.extract_strided_slice %79 {offsets = [8, 0], sizes = [2, 120], strides = [1, 1]} : vector<24x120xf32> to vector<2x120xf32>
    %c1_128 = arith.constant 1 : index
    %c0_129 = arith.constant 0 : index
    %c0_130 = arith.constant 0 : index
    %191 = vector.load %arg4[%c1_128, %c0_129, %c0_130] : memref<5x120x160xf32, #tpu.memory_space<vmem>>, vector<1x120x160xf32>
    %192 = vector.shape_cast %191 : vector<1x120x160xf32> to vector<120x160xf32>
    %cst_131 = arith.constant dense<0.000000e+00> : vector<2x160xf32>
    %193 = tpu.matmul %190, %192, %cst_131 {dimension_numbers = #tpu.dot_dimension_numbers<[1], [0], [0], [1], [0, 0, 1, 1], [], []>} : vector<2x120xf32>, vector<120x160xf32>, vector<2x160xf32> -> vector<2x160xf32>
    %194 = arith.addf %189, %193 : vector<2x160xf32>
    %195 = vector.extract_strided_slice %79 {offsets = [10, 0], sizes = [2, 120], strides = [1, 1]} : vector<24x120xf32> to vector<2x120xf32>
    %c2_132 = arith.constant 2 : index
    %c0_133 = arith.constant 0 : index
    %c0_134 = arith.constant 0 : index
    %196 = vector.load %arg4[%c2_132, %c0_133, %c0_134] : memref<5x120x160xf32, #tpu.memory_space<vmem>>, vector<1x120x160xf32>
    %197 = vector.shape_cast %196 : vector<1x120x160xf32> to vector<120x160xf32>
    %cst_135 = arith.constant dense<0.000000e+00> : vector<2x160xf32>
    %198 = tpu.matmul %195, %197, %cst_135 {dimension_numbers = #tpu.dot_dimension_numbers<[1], [0], [0], [1], [0, 0, 1, 1], [], []>} : vector<2x120xf32>, vector<120x160xf32>, vector<2x160xf32> -> vector<2x160xf32>
    %199 = arith.addf %194, %198 : vector<2x160xf32>
    %200 = vector.extract_strided_slice %79 {offsets = [12, 0], sizes = [2, 120], strides = [1, 1]} : vector<24x120xf32> to vector<2x120xf32>
    %c3_136 = arith.constant 3 : index
    %c0_137 = arith.constant 0 : index
    %c0_138 = arith.constant 0 : index
    %201 = vector.load %arg4[%c3_136, %c0_137, %c0_138] : memref<5x120x160xf32, #tpu.memory_space<vmem>>, vector<1x120x160xf32>
    %202 = vector.shape_cast %201 : vector<1x120x160xf32> to vector<120x160xf32>
    %cst_139 = arith.constant dense<0.000000e+00> : vector<2x160xf32>
    %203 = tpu.matmul %200, %202, %cst_139 {dimension_numbers = #tpu.dot_dimension_numbers<[1], [0], [0], [1], [0, 0, 1, 1], [], []>} : vector<2x120xf32>, vector<120x160xf32>, vector<2x160xf32> -> vector<2x160xf32>
    %204 = arith.addf %199, %203 : vector<2x160xf32>
    %205 = vector.extract_strided_slice %79 {offsets = [14, 0], sizes = [2, 120], strides = [1, 1]} : vector<24x120xf32> to vector<2x120xf32>
    %c4_140 = arith.constant 4 : index
    %c0_141 = arith.constant 0 : index
    %c0_142 = arith.constant 0 : index
    %206 = vector.load %arg4[%c4_140, %c0_141, %c0_142] : memref<5x120x160xf32, #tpu.memory_space<vmem>>, vector<1x120x160xf32>
    %207 = vector.shape_cast %206 : vector<1x120x160xf32> to vector<120x160xf32>
    %cst_143 = arith.constant dense<0.000000e+00> : vector<2x160xf32>
    %208 = tpu.matmul %205, %207, %cst_143 {dimension_numbers = #tpu.dot_dimension_numbers<[1], [0], [0], [1], [0, 0, 1, 1], [], []>} : vector<2x120xf32>, vector<120x160xf32>, vector<2x160xf32> -> vector<2x160xf32>
    %209 = arith.addf %204, %208 : vector<2x160xf32>
    %210 = arith.maximumf %180, %209 : vector<2x160xf32>
    %211 = vector.extract_strided_slice %210 {offsets = [0, 0], sizes = [2, 80], strides = [1, 1]} : vector<2x160xf32> to vector<2x80xf32>
    %212 = vector.extract_strided_slice %210 {offsets = [0, 80], sizes = [2, 80], strides = [1, 1]} : vector<2x160xf32> to vector<2x80xf32>
    %213 = arith.maximumf %211, %212 : vector<2x80xf32>
    %cst_144 = arith.constant 0.000000e+00 : f32
    %214 = vector.broadcast %cst_144 : f32 to vector<2x80xf32>
    %215 = arith.maximumf %213, %214 : vector<2x80xf32>
    %c1_145 = arith.constant 1 : index
    %c0_146 = arith.constant 0 : index
    %c0_147 = arith.constant 0 : index
    %216 = vector.load %arg6[%c1_145, %c0_146, %c0_147] : memref<4x80x10xf32, #tpu.memory_space<vmem>>, vector<1x80x10xf32>
    %217 = vector.shape_cast %216 : vector<1x80x10xf32> to vector<80x10xf32>
    %cst_148 = arith.constant dense<0.000000e+00> : vector<2x10xf32>
    %218 = tpu.matmul %215, %217, %cst_148 {dimension_numbers = #tpu.dot_dimension_numbers<[1], [0], [0], [1], [0, 0, 1, 1], [], []>} : vector<2x80xf32>, vector<80x10xf32>, vector<2x10xf32> -> vector<2x10xf32>
    %219 = arith.addf %151, %218 : vector<2x10xf32>
    %cst_149 = arith.constant 0.000000e+00 : f32
    %220 = vector.broadcast %cst_149 : f32 to vector<2x160xf32>
    %c0_150 = arith.constant 0 : index
    %c0_151 = arith.constant 0 : index
    %221 = vector.load %arg5[%c0_150, %c0_151] : memref<1x160xf32, #tpu.memory_space<vmem>>, vector<1x160xf32>
    %222 = vector.broadcast %221 : vector<1x160xf32> to vector<2x160xf32>
    %223 = arith.addf %220, %222 : vector<2x160xf32>
    %224 = vector.extract_strided_slice %79 {offsets = [8, 0], sizes = [2, 120], strides = [1, 1]} : vector<24x120xf32> to vector<2x120xf32>
    %c0_152 = arith.constant 0 : index
    %c0_153 = arith.constant 0 : index
    %c0_154 = arith.constant 0 : index
    %225 = vector.load %arg4[%c0_152, %c0_153, %c0_154] : memref<5x120x160xf32, #tpu.memory_space<vmem>>, vector<1x120x160xf32>
    %226 = vector.shape_cast %225 : vector<1x120x160xf32> to vector<120x160xf32>
    %cst_155 = arith.constant dense<0.000000e+00> : vector<2x160xf32>
    %227 = tpu.matmul %224, %226, %cst_155 {dimension_numbers = #tpu.dot_dimension_numbers<[1], [0], [0], [1], [0, 0, 1, 1], [], []>} : vector<2x120xf32>, vector<120x160xf32>, vector<2x160xf32> -> vector<2x160xf32>
    %228 = arith.addf %223, %227 : vector<2x160xf32>
    %229 = vector.extract_strided_slice %79 {offsets = [10, 0], sizes = [2, 120], strides = [1, 1]} : vector<24x120xf32> to vector<2x120xf32>
    %c1_156 = arith.constant 1 : index
    %c0_157 = arith.constant 0 : index
    %c0_158 = arith.constant 0 : index
    %230 = vector.load %arg4[%c1_156, %c0_157, %c0_158] : memref<5x120x160xf32, #tpu.memory_space<vmem>>, vector<1x120x160xf32>
    %231 = vector.shape_cast %230 : vector<1x120x160xf32> to vector<120x160xf32>
    %cst_159 = arith.constant dense<0.000000e+00> : vector<2x160xf32>
    %232 = tpu.matmul %229, %231, %cst_159 {dimension_numbers = #tpu.dot_dimension_numbers<[1], [0], [0], [1], [0, 0, 1, 1], [], []>} : vector<2x120xf32>, vector<120x160xf32>, vector<2x160xf32> -> vector<2x160xf32>
    %233 = arith.addf %228, %232 : vector<2x160xf32>
    %234 = vector.extract_strided_slice %79 {offsets = [12, 0], sizes = [2, 120], strides = [1, 1]} : vector<24x120xf32> to vector<2x120xf32>
    %c2_160 = arith.constant 2 : index
    %c0_161 = arith.constant 0 : index
    %c0_162 = arith.constant 0 : index
    %235 = vector.load %arg4[%c2_160, %c0_161, %c0_162] : memref<5x120x160xf32, #tpu.memory_space<vmem>>, vector<1x120x160xf32>
    %236 = vector.shape_cast %235 : vector<1x120x160xf32> to vector<120x160xf32>
    %cst_163 = arith.constant dense<0.000000e+00> : vector<2x160xf32>
    %237 = tpu.matmul %234, %236, %cst_163 {dimension_numbers = #tpu.dot_dimension_numbers<[1], [0], [0], [1], [0, 0, 1, 1], [], []>} : vector<2x120xf32>, vector<120x160xf32>, vector<2x160xf32> -> vector<2x160xf32>
    %238 = arith.addf %233, %237 : vector<2x160xf32>
    %239 = vector.extract_strided_slice %79 {offsets = [14, 0], sizes = [2, 120], strides = [1, 1]} : vector<24x120xf32> to vector<2x120xf32>
    %c3_164 = arith.constant 3 : index
    %c0_165 = arith.constant 0 : index
    %c0_166 = arith.constant 0 : index
    %240 = vector.load %arg4[%c3_164, %c0_165, %c0_166] : memref<5x120x160xf32, #tpu.memory_space<vmem>>, vector<1x120x160xf32>
    %241 = vector.shape_cast %240 : vector<1x120x160xf32> to vector<120x160xf32>
    %cst_167 = arith.constant dense<0.000000e+00> : vector<2x160xf32>
    %242 = tpu.matmul %239, %241, %cst_167 {dimension_numbers = #tpu.dot_dimension_numbers<[1], [0], [0], [1], [0, 0, 1, 1], [], []>} : vector<2x120xf32>, vector<120x160xf32>, vector<2x160xf32> -> vector<2x160xf32>
    %243 = arith.addf %238, %242 : vector<2x160xf32>
    %244 = vector.extract_strided_slice %79 {offsets = [16, 0], sizes = [2, 120], strides = [1, 1]} : vector<24x120xf32> to vector<2x120xf32>
    %c4_168 = arith.constant 4 : index
    %c0_169 = arith.constant 0 : index
    %c0_170 = arith.constant 0 : index
    %245 = vector.load %arg4[%c4_168, %c0_169, %c0_170] : memref<5x120x160xf32, #tpu.memory_space<vmem>>, vector<1x120x160xf32>
    %246 = vector.shape_cast %245 : vector<1x120x160xf32> to vector<120x160xf32>
    %cst_171 = arith.constant dense<0.000000e+00> : vector<2x160xf32>
    %247 = tpu.matmul %244, %246, %cst_171 {dimension_numbers = #tpu.dot_dimension_numbers<[1], [0], [0], [1], [0, 0, 1, 1], [], []>} : vector<2x120xf32>, vector<120x160xf32>, vector<2x160xf32> -> vector<2x160xf32>
    %248 = arith.addf %243, %247 : vector<2x160xf32>
    %cst_172 = arith.constant 0.000000e+00 : f32
    %249 = vector.broadcast %cst_172 : f32 to vector<2x160xf32>
    %c0_173 = arith.constant 0 : index
    %c0_174 = arith.constant 0 : index
    %250 = vector.load %arg5[%c0_173, %c0_174] : memref<1x160xf32, #tpu.memory_space<vmem>>, vector<1x160xf32>
    %251 = vector.broadcast %250 : vector<1x160xf32> to vector<2x160xf32>
    %252 = arith.addf %249, %251 : vector<2x160xf32>
    %253 = vector.extract_strided_slice %79 {offsets = [10, 0], sizes = [2, 120], strides = [1, 1]} : vector<24x120xf32> to vector<2x120xf32>
    %c0_175 = arith.constant 0 : index
    %c0_176 = arith.constant 0 : index
    %c0_177 = arith.constant 0 : index
    %254 = vector.load %arg4[%c0_175, %c0_176, %c0_177] : memref<5x120x160xf32, #tpu.memory_space<vmem>>, vector<1x120x160xf32>
    %255 = vector.shape_cast %254 : vector<1x120x160xf32> to vector<120x160xf32>
    %cst_178 = arith.constant dense<0.000000e+00> : vector<2x160xf32>
    %256 = tpu.matmul %253, %255, %cst_178 {dimension_numbers = #tpu.dot_dimension_numbers<[1], [0], [0], [1], [0, 0, 1, 1], [], []>} : vector<2x120xf32>, vector<120x160xf32>, vector<2x160xf32> -> vector<2x160xf32>
    %257 = arith.addf %252, %256 : vector<2x160xf32>
    %258 = vector.extract_strided_slice %79 {offsets = [12, 0], sizes = [2, 120], strides = [1, 1]} : vector<24x120xf32> to vector<2x120xf32>
    %c1_179 = arith.constant 1 : index
    %c0_180 = arith.constant 0 : index
    %c0_181 = arith.constant 0 : index
    %259 = vector.load %arg4[%c1_179, %c0_180, %c0_181] : memref<5x120x160xf32, #tpu.memory_space<vmem>>, vector<1x120x160xf32>
    %260 = vector.shape_cast %259 : vector<1x120x160xf32> to vector<120x160xf32>
    %cst_182 = arith.constant dense<0.000000e+00> : vector<2x160xf32>
    %261 = tpu.matmul %258, %260, %cst_182 {dimension_numbers = #tpu.dot_dimension_numbers<[1], [0], [0], [1], [0, 0, 1, 1], [], []>} : vector<2x120xf32>, vector<120x160xf32>, vector<2x160xf32> -> vector<2x160xf32>
    %262 = arith.addf %257, %261 : vector<2x160xf32>
    %263 = vector.extract_strided_slice %79 {offsets = [14, 0], sizes = [2, 120], strides = [1, 1]} : vector<24x120xf32> to vector<2x120xf32>
    %c2_183 = arith.constant 2 : index
    %c0_184 = arith.constant 0 : index
    %c0_185 = arith.constant 0 : index
    %264 = vector.load %arg4[%c2_183, %c0_184, %c0_185] : memref<5x120x160xf32, #tpu.memory_space<vmem>>, vector<1x120x160xf32>
    %265 = vector.shape_cast %264 : vector<1x120x160xf32> to vector<120x160xf32>
    %cst_186 = arith.constant dense<0.000000e+00> : vector<2x160xf32>
    %266 = tpu.matmul %263, %265, %cst_186 {dimension_numbers = #tpu.dot_dimension_numbers<[1], [0], [0], [1], [0, 0, 1, 1], [], []>} : vector<2x120xf32>, vector<120x160xf32>, vector<2x160xf32> -> vector<2x160xf32>
    %267 = arith.addf %262, %266 : vector<2x160xf32>
    %268 = vector.extract_strided_slice %79 {offsets = [16, 0], sizes = [2, 120], strides = [1, 1]} : vector<24x120xf32> to vector<2x120xf32>
    %c3_187 = arith.constant 3 : index
    %c0_188 = arith.constant 0 : index
    %c0_189 = arith.constant 0 : index
    %269 = vector.load %arg4[%c3_187, %c0_188, %c0_189] : memref<5x120x160xf32, #tpu.memory_space<vmem>>, vector<1x120x160xf32>
    %270 = vector.shape_cast %269 : vector<1x120x160xf32> to vector<120x160xf32>
    %cst_190 = arith.constant dense<0.000000e+00> : vector<2x160xf32>
    %271 = tpu.matmul %268, %270, %cst_190 {dimension_numbers = #tpu.dot_dimension_numbers<[1], [0], [0], [1], [0, 0, 1, 1], [], []>} : vector<2x120xf32>, vector<120x160xf32>, vector<2x160xf32> -> vector<2x160xf32>
    %272 = arith.addf %267, %271 : vector<2x160xf32>
    %273 = vector.extract_strided_slice %79 {offsets = [18, 0], sizes = [2, 120], strides = [1, 1]} : vector<24x120xf32> to vector<2x120xf32>
    %c4_191 = arith.constant 4 : index
    %c0_192 = arith.constant 0 : index
    %c0_193 = arith.constant 0 : index
    %274 = vector.load %arg4[%c4_191, %c0_192, %c0_193] : memref<5x120x160xf32, #tpu.memory_space<vmem>>, vector<1x120x160xf32>
    %275 = vector.shape_cast %274 : vector<1x120x160xf32> to vector<120x160xf32>
    %cst_194 = arith.constant dense<0.000000e+00> : vector<2x160xf32>
    %276 = tpu.matmul %273, %275, %cst_194 {dimension_numbers = #tpu.dot_dimension_numbers<[1], [0], [0], [1], [0, 0, 1, 1], [], []>} : vector<2x120xf32>, vector<120x160xf32>, vector<2x160xf32> -> vector<2x160xf32>
    %277 = arith.addf %272, %276 : vector<2x160xf32>
    %278 = arith.maximumf %248, %277 : vector<2x160xf32>
    %279 = vector.extract_strided_slice %278 {offsets = [0, 0], sizes = [2, 80], strides = [1, 1]} : vector<2x160xf32> to vector<2x80xf32>
    %280 = vector.extract_strided_slice %278 {offsets = [0, 80], sizes = [2, 80], strides = [1, 1]} : vector<2x160xf32> to vector<2x80xf32>
    %281 = arith.maximumf %279, %280 : vector<2x80xf32>
    %cst_195 = arith.constant 0.000000e+00 : f32
    %282 = vector.broadcast %cst_195 : f32 to vector<2x80xf32>
    %283 = arith.maximumf %281, %282 : vector<2x80xf32>
    %c2_196 = arith.constant 2 : index
    %c0_197 = arith.constant 0 : index
    %c0_198 = arith.constant 0 : index
    %284 = vector.load %arg6[%c2_196, %c0_197, %c0_198] : memref<4x80x10xf32, #tpu.memory_space<vmem>>, vector<1x80x10xf32>
    %285 = vector.shape_cast %284 : vector<1x80x10xf32> to vector<80x10xf32>
    %cst_199 = arith.constant dense<0.000000e+00> : vector<2x10xf32>
    %286 = tpu.matmul %283, %285, %cst_199 {dimension_numbers = #tpu.dot_dimension_numbers<[1], [0], [0], [1], [0, 0, 1, 1], [], []>} : vector<2x80xf32>, vector<80x10xf32>, vector<2x10xf32> -> vector<2x10xf32>
    %287 = arith.addf %219, %286 : vector<2x10xf32>
    %cst_200 = arith.constant 0.000000e+00 : f32
    %288 = vector.broadcast %cst_200 : f32 to vector<2x160xf32>
    %c0_201 = arith.constant 0 : index
    %c0_202 = arith.constant 0 : index
    %289 = vector.load %arg5[%c0_201, %c0_202] : memref<1x160xf32, #tpu.memory_space<vmem>>, vector<1x160xf32>
    %290 = vector.broadcast %289 : vector<1x160xf32> to vector<2x160xf32>
    %291 = arith.addf %288, %290 : vector<2x160xf32>
    %292 = vector.extract_strided_slice %79 {offsets = [12, 0], sizes = [2, 120], strides = [1, 1]} : vector<24x120xf32> to vector<2x120xf32>
    %c0_203 = arith.constant 0 : index
    %c0_204 = arith.constant 0 : index
    %c0_205 = arith.constant 0 : index
    %293 = vector.load %arg4[%c0_203, %c0_204, %c0_205] : memref<5x120x160xf32, #tpu.memory_space<vmem>>, vector<1x120x160xf32>
    %294 = vector.shape_cast %293 : vector<1x120x160xf32> to vector<120x160xf32>
    %cst_206 = arith.constant dense<0.000000e+00> : vector<2x160xf32>
    %295 = tpu.matmul %292, %294, %cst_206 {dimension_numbers = #tpu.dot_dimension_numbers<[1], [0], [0], [1], [0, 0, 1, 1], [], []>} : vector<2x120xf32>, vector<120x160xf32>, vector<2x160xf32> -> vector<2x160xf32>
    %296 = arith.addf %291, %295 : vector<2x160xf32>
    %297 = vector.extract_strided_slice %79 {offsets = [14, 0], sizes = [2, 120], strides = [1, 1]} : vector<24x120xf32> to vector<2x120xf32>
    %c1_207 = arith.constant 1 : index
    %c0_208 = arith.constant 0 : index
    %c0_209 = arith.constant 0 : index
    %298 = vector.load %arg4[%c1_207, %c0_208, %c0_209] : memref<5x120x160xf32, #tpu.memory_space<vmem>>, vector<1x120x160xf32>
    %299 = vector.shape_cast %298 : vector<1x120x160xf32> to vector<120x160xf32>
    %cst_210 = arith.constant dense<0.000000e+00> : vector<2x160xf32>
    %300 = tpu.matmul %297, %299, %cst_210 {dimension_numbers = #tpu.dot_dimension_numbers<[1], [0], [0], [1], [0, 0, 1, 1], [], []>} : vector<2x120xf32>, vector<120x160xf32>, vector<2x160xf32> -> vector<2x160xf32>
    %301 = arith.addf %296, %300 : vector<2x160xf32>
    %302 = vector.extract_strided_slice %79 {offsets = [16, 0], sizes = [2, 120], strides = [1, 1]} : vector<24x120xf32> to vector<2x120xf32>
    %c2_211 = arith.constant 2 : index
    %c0_212 = arith.constant 0 : index
    %c0_213 = arith.constant 0 : index
    %303 = vector.load %arg4[%c2_211, %c0_212, %c0_213] : memref<5x120x160xf32, #tpu.memory_space<vmem>>, vector<1x120x160xf32>
    %304 = vector.shape_cast %303 : vector<1x120x160xf32> to vector<120x160xf32>
    %cst_214 = arith.constant dense<0.000000e+00> : vector<2x160xf32>
    %305 = tpu.matmul %302, %304, %cst_214 {dimension_numbers = #tpu.dot_dimension_numbers<[1], [0], [0], [1], [0, 0, 1, 1], [], []>} : vector<2x120xf32>, vector<120x160xf32>, vector<2x160xf32> -> vector<2x160xf32>
    %306 = arith.addf %301, %305 : vector<2x160xf32>
    %307 = vector.extract_strided_slice %79 {offsets = [18, 0], sizes = [2, 120], strides = [1, 1]} : vector<24x120xf32> to vector<2x120xf32>
    %c3_215 = arith.constant 3 : index
    %c0_216 = arith.constant 0 : index
    %c0_217 = arith.constant 0 : index
    %308 = vector.load %arg4[%c3_215, %c0_216, %c0_217] : memref<5x120x160xf32, #tpu.memory_space<vmem>>, vector<1x120x160xf32>
    %309 = vector.shape_cast %308 : vector<1x120x160xf32> to vector<120x160xf32>
    %cst_218 = arith.constant dense<0.000000e+00> : vector<2x160xf32>
    %310 = tpu.matmul %307, %309, %cst_218 {dimension_numbers = #tpu.dot_dimension_numbers<[1], [0], [0], [1], [0, 0, 1, 1], [], []>} : vector<2x120xf32>, vector<120x160xf32>, vector<2x160xf32> -> vector<2x160xf32>
    %311 = arith.addf %306, %310 : vector<2x160xf32>
    %312 = vector.extract_strided_slice %79 {offsets = [20, 0], sizes = [2, 120], strides = [1, 1]} : vector<24x120xf32> to vector<2x120xf32>
    %c4_219 = arith.constant 4 : index
    %c0_220 = arith.constant 0 : index
    %c0_221 = arith.constant 0 : index
    %313 = vector.load %arg4[%c4_219, %c0_220, %c0_221] : memref<5x120x160xf32, #tpu.memory_space<vmem>>, vector<1x120x160xf32>
    %314 = vector.shape_cast %313 : vector<1x120x160xf32> to vector<120x160xf32>
    %cst_222 = arith.constant dense<0.000000e+00> : vector<2x160xf32>
    %315 = tpu.matmul %312, %314, %cst_222 {dimension_numbers = #tpu.dot_dimension_numbers<[1], [0], [0], [1], [0, 0, 1, 1], [], []>} : vector<2x120xf32>, vector<120x160xf32>, vector<2x160xf32> -> vector<2x160xf32>
    %316 = arith.addf %311, %315 : vector<2x160xf32>
    %cst_223 = arith.constant 0.000000e+00 : f32
    %317 = vector.broadcast %cst_223 : f32 to vector<2x160xf32>
    %c0_224 = arith.constant 0 : index
    %c0_225 = arith.constant 0 : index
    %318 = vector.load %arg5[%c0_224, %c0_225] : memref<1x160xf32, #tpu.memory_space<vmem>>, vector<1x160xf32>
    %319 = vector.broadcast %318 : vector<1x160xf32> to vector<2x160xf32>
    %320 = arith.addf %317, %319 : vector<2x160xf32>
    %321 = vector.extract_strided_slice %79 {offsets = [14, 0], sizes = [2, 120], strides = [1, 1]} : vector<24x120xf32> to vector<2x120xf32>
    %c0_226 = arith.constant 0 : index
    %c0_227 = arith.constant 0 : index
    %c0_228 = arith.constant 0 : index
    %322 = vector.load %arg4[%c0_226, %c0_227, %c0_228] : memref<5x120x160xf32, #tpu.memory_space<vmem>>, vector<1x120x160xf32>
    %323 = vector.shape_cast %322 : vector<1x120x160xf32> to vector<120x160xf32>
    %cst_229 = arith.constant dense<0.000000e+00> : vector<2x160xf32>
    %324 = tpu.matmul %321, %323, %cst_229 {dimension_numbers = #tpu.dot_dimension_numbers<[1], [0], [0], [1], [0, 0, 1, 1], [], []>} : vector<2x120xf32>, vector<120x160xf32>, vector<2x160xf32> -> vector<2x160xf32>
    %325 = arith.addf %320, %324 : vector<2x160xf32>
    %326 = vector.extract_strided_slice %79 {offsets = [16, 0], sizes = [2, 120], strides = [1, 1]} : vector<24x120xf32> to vector<2x120xf32>
    %c1_230 = arith.constant 1 : index
    %c0_231 = arith.constant 0 : index
    %c0_232 = arith.constant 0 : index
    %327 = vector.load %arg4[%c1_230, %c0_231, %c0_232] : memref<5x120x160xf32, #tpu.memory_space<vmem>>, vector<1x120x160xf32>
    %328 = vector.shape_cast %327 : vector<1x120x160xf32> to vector<120x160xf32>
    %cst_233 = arith.constant dense<0.000000e+00> : vector<2x160xf32>
    %329 = tpu.matmul %326, %328, %cst_233 {dimension_numbers = #tpu.dot_dimension_numbers<[1], [0], [0], [1], [0, 0, 1, 1], [], []>} : vector<2x120xf32>, vector<120x160xf32>, vector<2x160xf32> -> vector<2x160xf32>
    %330 = arith.addf %325, %329 : vector<2x160xf32>
    %331 = vector.extract_strided_slice %79 {offsets = [18, 0], sizes = [2, 120], strides = [1, 1]} : vector<24x120xf32> to vector<2x120xf32>
    %c2_234 = arith.constant 2 : index
    %c0_235 = arith.constant 0 : index
    %c0_236 = arith.constant 0 : index
    %332 = vector.load %arg4[%c2_234, %c0_235, %c0_236] : memref<5x120x160xf32, #tpu.memory_space<vmem>>, vector<1x120x160xf32>
    %333 = vector.shape_cast %332 : vector<1x120x160xf32> to vector<120x160xf32>
    %cst_237 = arith.constant dense<0.000000e+00> : vector<2x160xf32>
    %334 = tpu.matmul %331, %333, %cst_237 {dimension_numbers = #tpu.dot_dimension_numbers<[1], [0], [0], [1], [0, 0, 1, 1], [], []>} : vector<2x120xf32>, vector<120x160xf32>, vector<2x160xf32> -> vector<2x160xf32>
    %335 = arith.addf %330, %334 : vector<2x160xf32>
    %336 = vector.extract_strided_slice %79 {offsets = [20, 0], sizes = [2, 120], strides = [1, 1]} : vector<24x120xf32> to vector<2x120xf32>
    %c3_238 = arith.constant 3 : index
    %c0_239 = arith.constant 0 : index
    %c0_240 = arith.constant 0 : index
    %337 = vector.load %arg4[%c3_238, %c0_239, %c0_240] : memref<5x120x160xf32, #tpu.memory_space<vmem>>, vector<1x120x160xf32>
    %338 = vector.shape_cast %337 : vector<1x120x160xf32> to vector<120x160xf32>
    %cst_241 = arith.constant dense<0.000000e+00> : vector<2x160xf32>
    %339 = tpu.matmul %336, %338, %cst_241 {dimension_numbers = #tpu.dot_dimension_numbers<[1], [0], [0], [1], [0, 0, 1, 1], [], []>} : vector<2x120xf32>, vector<120x160xf32>, vector<2x160xf32> -> vector<2x160xf32>
    %340 = arith.addf %335, %339 : vector<2x160xf32>
    %341 = vector.extract_strided_slice %79 {offsets = [22, 0], sizes = [2, 120], strides = [1, 1]} : vector<24x120xf32> to vector<2x120xf32>
    %c4_242 = arith.constant 4 : index
    %c0_243 = arith.constant 0 : index
    %c0_244 = arith.constant 0 : index
    %342 = vector.load %arg4[%c4_242, %c0_243, %c0_244] : memref<5x120x160xf32, #tpu.memory_space<vmem>>, vector<1x120x160xf32>
    %343 = vector.shape_cast %342 : vector<1x120x160xf32> to vector<120x160xf32>
    %cst_245 = arith.constant dense<0.000000e+00> : vector<2x160xf32>
    %344 = tpu.matmul %341, %343, %cst_245 {dimension_numbers = #tpu.dot_dimension_numbers<[1], [0], [0], [1], [0, 0, 1, 1], [], []>} : vector<2x120xf32>, vector<120x160xf32>, vector<2x160xf32> -> vector<2x160xf32>
    %345 = arith.addf %340, %344 : vector<2x160xf32>
    %346 = arith.maximumf %316, %345 : vector<2x160xf32>
    %347 = vector.extract_strided_slice %346 {offsets = [0, 0], sizes = [2, 80], strides = [1, 1]} : vector<2x160xf32> to vector<2x80xf32>
    %348 = vector.extract_strided_slice %346 {offsets = [0, 80], sizes = [2, 80], strides = [1, 1]} : vector<2x160xf32> to vector<2x80xf32>
    %349 = arith.maximumf %347, %348 : vector<2x80xf32>
    %cst_246 = arith.constant 0.000000e+00 : f32
    %350 = vector.broadcast %cst_246 : f32 to vector<2x80xf32>
    %351 = arith.maximumf %349, %350 : vector<2x80xf32>
    %c3_247 = arith.constant 3 : index
    %c0_248 = arith.constant 0 : index
    %c0_249 = arith.constant 0 : index
    %352 = vector.load %arg6[%c3_247, %c0_248, %c0_249] : memref<4x80x10xf32, #tpu.memory_space<vmem>>, vector<1x80x10xf32>
    %353 = vector.shape_cast %352 : vector<1x80x10xf32> to vector<80x10xf32>
    %cst_250 = arith.constant dense<0.000000e+00> : vector<2x10xf32>
    %354 = tpu.matmul %351, %353, %cst_250 {dimension_numbers = #tpu.dot_dimension_numbers<[1], [0], [0], [1], [0, 0, 1, 1], [], []>} : vector<2x80xf32>, vector<80x10xf32>, vector<2x10xf32> -> vector<2x10xf32>
    %355 = arith.addf %287, %354 : vector<2x10xf32>
    %cst_251 = arith.constant dense<0xFF800000> : vector<2xf32>
    %356 = vector.multi_reduction <maximumf>, %355, %cst_251 [1] : vector<2x10xf32> to vector<2xf32>
    %357 = vector.shape_cast %356 : vector<2xf32> to vector<2x1xf32>
    %358 = vector.broadcast %357 : vector<2x1xf32> to vector<2x10xf32>
    %359 = arith.subf %355, %358 : vector<2x10xf32>
    %360 = math.exp %359 : vector<2x10xf32>
    %cst_252 = arith.constant dense<0.000000e+00> : vector<2xf32>
    %361 = vector.multi_reduction <add>, %360, %cst_252 [1] : vector<2x10xf32> to vector<2xf32>
    %362 = vector.shape_cast %361 : vector<2xf32> to vector<2x1xf32>
    %363 = math.log %362 : vector<2x1xf32>
    %364 = vector.broadcast %363 : vector<2x1xf32> to vector<2x10xf32>
    %365 = arith.subf %359, %364 : vector<2x10xf32>
    %c0_253 = arith.constant 0 : index
    %c0_254 = arith.constant 0 : index
    %366 = vector.load %arg8[%c0_253, %c0_254] : memref<2x10xf32, #tpu.memory_space<vmem>>, vector<2x10xf32>
    tpu.vector_store %arg8[%c0_253, %c0_254], %365 {strides = array<i32>} : memref<2x10xf32, #tpu.memory_space<vmem>>, vector<2x10xf32>,
    return
  }
  func.func @transform_0(%arg0: i32) -> (i32, i32, i32) {
    %c0_i32 = arith.constant 0 : i32
    %c0_i32_0 = arith.constant 0 : i32
    %c0_i32_1 = arith.constant 0 : i32
    return %c0_i32, %arg0, %c0_i32_0 : i32, i32, i32
  }
  func.func @transform_1(%arg0: i32) -> (i32, i32, i32) {
    %c0_i32 = arith.constant 0 : i32
    %c0_i32_0 = arith.constant 0 : i32
    %c0_i32_1 = arith.constant 0 : i32
    %c0_i32_2 = arith.constant 0 : i32
    return %c0_i32, %c0_i32_0, %c0_i32_1 : i32, i32, i32
  }
  func.func @transform_2(%arg0: i32) -> (i32, i32) {
    %c0_i32 = arith.constant 0 : i32
    %c0_i32_0 = arith.constant 0 : i32
    %c0_i32_1 = arith.constant 0 : i32
    return %c0_i32, %c0_i32_0 : i32, i32
  }
  func.func @transform_3(%arg0: i32) -> (i32, i32, i32) {
    %c0_i32 = arith.constant 0 : i32
    %c0_i32_0 = arith.constant 0 : i32
    %c0_i32_1 = arith.constant 0 : i32
    %c0_i32_2 = arith.constant 0 : i32
    return %c0_i32, %c0_i32_0, %c0_i32_1 : i32, i32, i32
  }
  func.func @transform_4(%arg0: i32) -> (i32, i32) {
    %c0_i32 = arith.constant 0 : i32
    %c0_i32_0 = arith.constant 0 : i32
    %c0_i32_1 = arith.constant 0 : i32
    return %c0_i32, %c0_i32_0 : i32, i32
  }
  func.func @transform_5(%arg0: i32) -> (i32, i32, i32) {
    %c0_i32 = arith.constant 0 : i32
    %c0_i32_0 = arith.constant 0 : i32
    %c0_i32_1 = arith.constant 0 : i32
    %c0_i32_2 = arith.constant 0 : i32
    return %c0_i32, %c0_i32_0, %c0_i32_1 : i32, i32, i32
  }
  func.func @transform_6(%arg0: i32) -> (i32, i32) {
    %c0_i32 = arith.constant 0 : i32
    %c0_i32_0 = arith.constant 0 : i32
    %c0_i32_1 = arith.constant 0 : i32
    return %c0_i32, %c0_i32_0 : i32, i32
  }
  func.func @transform_7(%arg0: i32) -> (i32, i32) {
    %c0_i32 = arith.constant 0 : i32
    %c0_i32_0 = arith.constant 0 : i32
    return %arg0, %c0_i32 : i32, i32
  }
}

</mosaic_0001>

<bundles_post_ra>
// kernel: net_forward.1
= control target key start
LH: loop header
LB: loop body
LE: loop exit
PB: predicated region body
PF: predicated region fallthrough
CT: control target
= control target key end

     0   :  { %vm147_vm0 = vcmask 1043456   ;;  %v57_v3 = vlaneseq  ;;  %v9152_v8 = vmov 0.0   ;;  %v6825_v15 = vmov 1983009808   ;;  %s9142_s0 = inlined_call_operand.vmem [shape: f32[28,2,28], index: 0, kind: input, shape index: {}]   ;;  %s9143_s1 = inlined_call_operand.vmem [shape: f32[5,28,240], index: 1, kind: input, shape index: {}]   ;;  %s9144_s2 = inlined_call_operand.vmem [shape: f32[1,240], index: 2, kind: input, shape index: {}]   ;;  %s9145_s3 = inlined_call_operand.vmem [shape: f32[5,120,160], index: 3, kind: input, shape index: {}]   ;;  %s9146_s4 = inlined_call_operand.vmem [shape: f32[1,160], index: 4, kind: input, shape index: {}]   ;;  %s9147_s5 = inlined_call_operand.vmem [shape: f32[4,80,10], index: 5, kind: input, shape index: {}]   ;;  %s9148_s6 = inlined_call_operand.vmem [shape: f32[1,10], index: 6, kind: input, shape index: {}]   ;;  %s9149_s7 = inlined_call_operand.hbm [shape: f32[2,10], index: 7, kind: output, shape index: {}]  }
   0x1   :  { %v70_v0 = vld [vmem:[%s9143_s1 + $0x8] sm:$0xff]  ;;  %v72_v1 = vld [vmem:[%s9143_s1 + $0x18] sm:$0xff]  ;;  %v69_v6 = vld [vmem:[%s9143_s1] sm:$0xff]  ;;  %218 = vmatprep.mubr.f32.mxu1 %v9152_v8  ;;  %391 = vmatprep.mubr.f32.mxu0 %v9152_v8  ;;  %v92_v16 = vunpack.c.l.s4 %v6825_v15  ;;  %vm6826_vm1 = vmmov 1   ;;  %vm140_vm3 = vcmask 228352  }
   0x2   :  { %v4918_v2 = vld [vmem:[%s9143_s1 + $0x48] sm:$0xff]  ;;  %v5325_v4 = vpack.c.bf16 %v72_v1, %v70_v0  ;;  %v4920_v5 = vld [vmem:[%s9143_s1 + $0x58] sm:$0xff]  ;;  %v71_v7 = vld [vmem:[%s9143_s1 + $0x10] sm:$0xff]  ;;  %v6905_v14 = vshrl.u32 %v57_v3, 7 }
   0x3   :  { %v6892_v9 = vpack.c.bf16 %v4920_v5, %v4918_v2  ;;  %v6894_v10 = vpack.c.bf16 %v71_v7, %v69_v6  ;;  %v4917_v11 = vld [vmem:[%s9143_s1 + $0x40] sm:$0xff]  ;;  %v4919_v12 = vld [vmem:[%s9143_s1 + $0x50] sm:$0xff]  ;;  %v74_v13 = vld [vmem:[%s9143_s1 + $0x28] sm:$0xff]  ;;  %v93_v25 = vunpack.c.0.s8 %v92_v16 }
   0x4   :  { %9326 = vst [vmem:[#allocation5_spill] sm:$0xff] %v6905_v14  ;;  %5326 = vmatprep.subr.bf16.mxu1 %v5325_v4  ;;  %v6907_v17 = vpack.c.bf16 %v4919_v12, %v4917_v11  ;;  %v76_v18 = vld [vmem:[%s9143_s1 + $0x38] sm:$0xf]  ;;  %vm6913_vm2 = vmpackc.low %vm147_vm0, %vm6826_vm1  ;;  %v4922_v20 = vld [vmem:[%s9143_s1 + $0x68] sm:$0xff] }
   0x5   :  { %5336 = vmatprep.subr.bf16.mxu0 %v6892_v9  ;;  %5328 = vmatpush1.bf16.msra.mxu1 %v6894_v10  ;;  %v6922_v21 = vpack.c.bf16 %v76_v18, %v74_v13  ;;  %v4924_v22 = vld [vmem:[%s9143_s1 + $0x78] sm:$0xf]  ;;  %v73_v23 = vld [vmem:[%s9143_s1 + $0x20] sm:$0xff]  ;;  %v75_v24 = vld [vmem:[%s9143_s1 + $0x30] sm:$0xf]  ;;  %v6962_v35 = vsub.s32 %v93_v25, %v6905_v14 }
   0x6   :  { %5338 = vmatpush1.bf16.msra.mxu0 %v6907_v17  ;;  %v6934_v26 = vpack.c.bf16 %v4924_v22, %v4922_v20  ;;  %v6936_v27 = vpack.c.bf16 %v75_v24, %v73_v23  ;;  %v4921_v28 = vld [vmem:[%s9143_s1 + $0x60] sm:$0xff]  ;;  %v4923_v29 = vld [vmem:[%s9143_s1 + $0x70] sm:$0xf]  ;;  %v31_v33 = vld [vmem:[%s9142_s0 + $0x8] sm:$0x3] }
   0x7   :  { %v27_v30 = vld [vmem:[%s9142_s0] sm:$0x3]  ;;  %5331 = vmatprep.subr.msk.bf16.mxu1 %vm6913_vm2, %v6922_v21  ;;  %v6950_v31 = vpack.c.bf16 %v4923_v29, %v4921_v28  ;;  %v29_v32 = vld [vmem:[%s9142_s0 + $0x4] sm:$0x3]  ;;  %v33_v34 = vld [vmem:[%s9142_s0 + $0xc] sm:$0x3] }
   0x8   :  { %5341 = vmatprep.subr.msk.bf16.mxu0 %vm6913_vm2, %v6934_v26  ;;  %v89_v36 = vcombine.low %v27_v30, %v29_v32  ;;  %v90_v37 = vcombine.low %v31_v33, %v33_v34  ;;  %v28_v38 = vld [vmem:[%s9142_s0 + $0x2] sm:$0x3]  ;;  %v6973_v39 = vld [vmem:[%s9142_s0 + $0x6] sm:$0x3]  ;;  %v6978_v40 = vld [vmem:[%s9142_s0 + $0xa] sm:$0x3]  ;;  %v426_v51 = vcombine.low %v29_v32, %v31_v33 }
   0x9   :  { %5334 = vmatpush1.bf16.msk.msra.mxu1 %vm6913_vm2, %v6936_v27  ;;  %v6986_v41 = vld [vmem:[%s9142_s0 + $0xe] sm:$0x3]  ;;  %v264_v42 = vcombine.low %v28_v38, %v6973_v39  ;;  %v35_v43 = vld [vmem:[%s9142_s0 + $0x10] sm:$0x3]  ;;  %v6995_v44 = vld [vmem:[%s9142_s0 + $0x14] sm:$0x3] }
   0xa   :  { %5344 = vmatpush1.bf16.msk.msra.mxu0 %vm6913_vm2, %v6950_v31  ;;  %v97_v45 = vrot.slane %v89_v36, %v6962_v35  ;;  %v7002_v46 = vrot.slane %v90_v37, %v6962_v35  ;;  %v265_v47 = vcombine.low %v6978_v40, %v6986_v41  ;;  %v7009_v48 = vld [vmem:[%s9142_s0 + $0x18] sm:$0x3]  ;;  %v7014_v49 = vld [vmem:[%s9142_s0 + $0x1c] sm:$0x3]  ;;  %v7019_v50 = vld [vmem:[%s9142_s0 + $0x12] sm:$0x3]  ;;  %5376 = vmatprep.subr.bf16.mxu1 %v5325_v4 }
   0xb   :  { %v272_v52 = vrot.slane %v264_v42, %v6962_v35  ;;  %v106_v53 = vcombine.low %v35_v43, %v6995_v44  ;;  %v107_v54 = vcombine.low %v7009_v48, %v7014_v49  ;;  %v7028_v55 = vld [vmem:[%s9142_s0 + $0x16] sm:$0x3]  ;;  %v7033_v56 = vld [vmem:[%s9142_s0 + $0x1a] sm:$0x3]  ;;  %v7038_v57 = vld [vmem:[%s9142_s0 + $0x1e] sm:$0x3]  ;;  %v427_v60 = vcombine.low %v33_v34, %v35_v43 }
   0xc   :  { %v105_v58 = vcombine.low %v97_v45, %v7002_v46  ;;  %v7042_v59 = vrot.slane %v265_v47, %v6962_v35  ;;  %v281_v61 = vcombine.low %v7019_v50, %v7028_v55  ;;  %v4931_v62 = vld [vmem:[%s9143_s1 + $0x88] sm:$0xff]  ;;  %v4933_v63 = vld [vmem:[%s9143_s1 + $0x98] sm:$0xff]  ;;  %v4930_v0 = vld [vmem:[%s9143_s1 + $0x80] sm:$0xff]  ;;  %v282_v3 = vcombine.low %v7033_v56, %v7038_v57 }
   0xd   :  { %v7056_v1 = vrot.slane %v106_v53, %v6962_v35  ;;  %v7059_v2 = vrot.slane %v107_v54, %v6962_v35  ;;  %v4932_v4 = vld [vmem:[%s9143_s1 + $0x90] sm:$0xff]  ;;  %v7069_v5 = vld [vmem:[%s9142_s0 + $0x20] sm:$0x3]  ;;  %v7074_v6 = vld [vmem:[%s9142_s0 + $0x24] sm:$0x3]  ;;  %v7083_v12 = vpack.c.bf16 %v4933_v63, %v4931_v62  ;;  %v434_v24 = vrot.slane %v426_v51, %v6962_v35 }
   0xe   :  { %4914 = vmatmul.mubr.msk.f32.vlgmr.msra.gmra.mrb[0].mxu1 %vm140_vm3, %v105_v58  ;;  %v7078_v7 = vcombine.low %v272_v52, %v7042_v59  ;;  %v7081_v11 = vrot.slane %v281_v61, %v6962_v35  ;;  %v7088_v13 = vld [vmem:[%s9142_s0 + $0x28] sm:$0x3]  ;;  %v7093_v15 = vld [vmem:[%s9142_s0 + $0x2c] sm:$0x3]  ;;  %v7098_v16 = vld [vmem:[%s9142_s0 + $0x22] sm:$0x3]  ;;  %v7105_v20 = vrot.slane %v282_v3, %v6962_v35  ;;  %v441_v25 = vrot.slane %v427_v60, %v6962_v35 }
   0xf   :  { %5378 = vmatpush1.bf16.msra.mxu1 %v6894_v10  ;;  %224 = vmatprep.mubr.f32.mxu1 %v9152_v8  ;;  %v122_v18 = vcombine.low %v7056_v1, %v7059_v2  ;;  %v7110_v22 = vld [vmem:[%s9142_s0 + $0x26] sm:$0x3]  ;;  %v7115_v23 = vld [vmem:[%s9142_s0 + $0x2a] sm:$0x3]  ;;  %v7120_v10 = vld [vmem:[%s9142_s0 + $0x2e] sm:$0x3]  ;;  %v7127_v28 = vpack.c.bf16 %v4932_v4, %v4930_v0  ;;  %v123_v34 = vcombine.low %v7069_v5, %v7074_v6 }
  0x10   :  { %4927 = vmatmul.mubr.msk.f32.vlgmr.msra.gmra.mrb[0].mxu0 %vm140_vm3, %v7078_v7  ;;  %5346 = vmatprep.subr.bf16.mxu0 %v7083_v12  ;;  %v4935_v29 = vld [vmem:[%s9143_s1 + $0xa8] sm:$0xff]  ;;  %v4937_v30 = vld [vmem:[%s9143_s1 + $0xb8] sm:$0xf]  ;;  %v4934_v32 = vld [vmem:[%s9143_s1 + $0xa0] sm:$0xff]  ;;  %v7141_v33 = vcombine.low %v7081_v11, %v7105_v20  ;;  %v124_v36 = vcombine.low %v7088_v13, %v7093_v15  ;;  %v298_v38 = vcombine.low %v7098_v16, %v7110_v22 }
  0x11   :  { %397 = vmatprep.mubr.f32.mxu0 %v9152_v8  ;;  %5381 = vmatprep.subr.msk.bf16.mxu1 %vm6913_vm2, %v6922_v21  ;;  %v4936_v37 = vld [vmem:[%s9143_s1 + $0xb0] sm:$0xf]  ;;  %v299_v21 = vcombine.low %v7115_v23, %v7120_v10  ;;  %v7159_v42 = vpack.c.bf16 %v4937_v30, %v4935_v29  ;;  %v7166_v43 = vrot.slane %v123_v34, %v6962_v35  ;;  %v4944_v51 = vld [vmem:[%s9143_s1 + $0xc8] sm:$0xff]  ;;  %v4946_v52 = vld [vmem:[%s9143_s1 + $0xd8] sm:$0xff] }
  0x12   :  { %4915 = vmatmul.mubr.msk.f32.gmra.mrb[2].mxu1 %vm140_vm3, %v122_v18  ;;  %5348 = vmatpush1.bf16.msra.mxu0 %v7127_v28  ;;  %v7169_v45 = vrot.slane %v124_v36, %v6962_v35  ;;  %v7171_v47 = vpack.c.bf16 %v4936_v37, %v4934_v32  ;;  %v443_v58 = vcombine.low %v6995_v44, %v7009_v48  ;;  %v7201_v61 = vld [vmem:[%s9142_s0 + $0x30] sm:$0x3]  ;;  %v4943_v44 = vld [vmem:[%s9143_s1 + $0xc0] sm:$0xff]  ;;  %v4950_v18 = vld [vmem:[%s9143_s1 + $0xf8] sm:$0xf] }
  0x13   :  { %230 = vmatprep.mubr.f32.mxu1 %v9152_v8  ;;  %5384 = vmatpush1.bf16.msk.msra.mxu1 %vm6913_vm2, %v6936_v27  ;;  %v7182_v27 = vrot.slane %v298_v38, %v6962_v35  ;;  %v7185_v53 = vrot.slane %v299_v21, %v6962_v35  ;;  %v444_v60 = vcombine.low %v7014_v49, %v7069_v5  ;;  %v4945_v48 = vld [vmem:[%s9143_s1 + $0xd0] sm:$0xff]  ;;  %v4948_v5 = vld [vmem:[%s9143_s1 + $0xe8] sm:$0xff] }
  0x14   :  { %4928 = vmatmul.mubr.msk.f32.gmra.mrb[2].mxu0 %vm140_vm3, %v7141_v33  ;;  %5351 = vmatprep.subr.msk.bf16.mxu0 %vm6913_vm2, %v7159_v42  ;;  %v139_v54 = vcombine.low %v7166_v43, %v7169_v45  ;;  %v7208_v63 = vpack.c.bf16 %v4946_v52, %v4944_v51  ;;  %v460_v49 = vcombine.low %v7074_v6, %v7088_v13 }
  0x15   :  { %403 = vmatprep.mubr.f32.mxu0 %v9152_v8  ;;  %5386 = vmatprep.subr.bf16.mxu1 %v6892_v9  ;;  %v314_v62 = vcombine.low %v7182_v27, %v7185_v53  ;;  %v7211_v9 = vcombine.low %v434_v24, %v441_v25  ;;  %v451_v0 = vrot.slane %v443_v58, %v6962_v35 }
  0x16   :  { %5354 = vmatpush1.bf16.msk.msra.mxu0 %vm6913_vm2, %v7171_v47  ;;  %4916 = vmatmul.mubr.msk.f32.gmra.mrb[4].mxu1 %vm140_vm3, %v139_v54  ;;  %v458_v3 = vrot.slane %v444_v60, %v6962_v35  ;;  %v461_v4 = vcombine.low %v7093_v15, %v7201_v61 }
  0x17   :  { %926 = vmatprep.mubr.f32.mxu1 %v9152_v8 }
  0x18   :  { %4929 = vmatmul.mubr.msk.f32.gmra.mrb[4].mxu0 %vm140_vm3, %v314_v62 }
  0x19   :  { %12 = vsyncpa [#allocation3], 0  ;;  %553 = vmatprep.mubr.f32.mxu0 %v9152_v8  ;;  %5356 = vmatprep.subr.bf16.mxu0 %v7208_v63  ;;  %v7235_v6 = vpack.c.bf16 %v4945_v48, %v4943_v44  ;;  %v588_v13 = vcombine.low %v6973_v39, %v6978_v40  ;;  %v589_v15 = vcombine.low %v6986_v41, %v7019_v50  ;;  %v4947_v25 = vld [vmem:[%s9143_s1 + $0xe0] sm:$0xff]  ;;  %v4949_v29 = vld [vmem:[%s9143_s1 + $0xf0] sm:$0xf]  ;;  %s6827_s20 = smov 8  }
  0x1a   :  { %4971 = vmatmul.mubr.msk.f32.vlgmr.msra.gmra.mrb[6].mxu1 %vm140_vm3, %v7078_v7  ;;  %v7243_v24 = vpack.c.bf16 %v4950_v18, %v4948_v5  ;;  %v459_v39 = vcombine.low %v451_v0, %v458_v3  ;;  %v468_v40 = vrot.slane %v460_v49, %v6962_v35  ;;  %v475_v41 = vrot.slane %v461_v4, %v6962_v35  ;;  %v4957_v50 = vld [vmem:[%s9143_s1 + $0x108] sm:$0xff]  ;;  %v4959_v7 = vld [vmem:[%s9143_s1 + $0x118] sm:$0xff]  ;;  %v4960_v52 = vld [vmem:[%s9143_s1 + $0x120] sm:$0xff] }
  0x1b   :  { %5388 = vmatpush1.bf16.msra.mxu1 %v6907_v17  ;;  %932 = vmatprep.mubr.f32.mxu1 %v9152_v8  ;;  %v7268_v17 = vpack.c.bf16 %v4949_v29, %v4947_v25  ;;  %v596_v30 = vrot.slane %v588_v13, %v6962_v35  ;;  %v603_v32 = vrot.slane %v589_v15, %v6962_v35  ;;  %v4961_v21 = vld [vmem:[%s9143_s1 + $0x128] sm:$0xff]  ;;  %v4963_v51 = vld [vmem:[%s9143_s1 + $0x138] sm:$0xf]  ;;  %v4996_v3 = vld [vmem:[%s9145_s3 + $0xf0] sm:$0xff]  ;;  %vm1349_vm4 = vcmask 64512  }
  0x1c   :  { %4940 = vmatmul.mubr.msk.f32.vlgmr.msra.gmra.mrb[0].mxu0 %vm140_vm3, %v7211_v9  ;;  %5391 = vmatprep.subr.msk.bf16.mxu1 %vm6913_vm2, %v6934_v26  ;;  %v7277_v34 = vpack.c.bf16 %v4959_v7, %v4957_v50  ;;  %v476_v26 = vcombine.low %v468_v40, %v475_v41  ;;  %v605_v36 = vcombine.low %v7028_v55, %v7033_v56  ;;  %v4958_v56 = vld [vmem:[%s9143_s1 + $0x110] sm:$0xff]  ;;  %v4999_v48 = vld [vmem:[%s9145_s3 + $0x108] sm:$0xff]  ;;  %v4998_v4 = vld [vmem:[%s9145_s3 + $0x100] sm:$0xff]  ;;  %vm1414_vm5 = vcmask 982016  }
  0x1d   :  { %559 = vmatprep.mubr.f32.mxu0 %v9152_v8  ;;  %5358 = vmatpush1.bf16.msra.mxu0 %v7235_v6  ;;  %v606_v37 = vcombine.low %v7038_v57, %v7098_v16  ;;  %v604_v55 = vcombine.low %v596_v30, %v603_v32  ;;  %v622_v57 = vcombine.low %v7110_v22, %v7115_v23  ;;  %v1389_v5 = vld [vmem:[%s9145_s3 + $0x28] sm:$0xff]  ;;  %v1388_v13 = vld [vmem:[%s9145_s3 + $0x20] sm:$0xff]  ;;  %v1390_v15 = vld [vmem:[%s9145_s3 + $0x30] sm:$0xff]  ;;  %vm6829_vm6 = vmmov 0  }
  0x1e   :  { %4972 = vmatmul.mubr.msk.f32.gmra.mrb[8].mxu1 %vm140_vm3, %v7141_v33  ;;  %5361 = vmatprep.subr.msk.bf16.mxu0 %vm6913_vm2, %v7243_v24  ;;  %v7292_v33 = vld [vmem:[%s9142_s0 + $0x32] sm:$0x3]  ;;  %v5369_v23 = vpack.c.bf16 %v4963_v51, %v4961_v21  ;;  %v7444_v18 = vpack.c.bf16 %v4998_v4, %v4996_v3  ;;  %v7459_v25 = vpack.c.bf16 %v1390_v15, %v1388_v13  ;;  %v5001_v29 = vld [vmem:[%s9145_s3 + $0x118] sm:$0xff]  ;;  %v5002_v50 = vld [vmem:[%s9145_s3 + $0x120] sm:$0xff]  ;;  %v9151_v13 = vsub.s32 0, %v6905_v14 }
  0x1f   :  { %938 = vmatprep.mubr.f32.mxu1 %v9152_v8  ;;  %5394 = vmatpush1.bf16.msk.msra.mxu1 %vm6913_vm2, %v6950_v31  ;;  %v4956_v31 = vld [vmem:[%s9143_s1 + $0x100] sm:$0xff]  ;;  %v620_v16 = vrot.slane %v606_v37, %v6962_v35  ;;  %v623_v38 = vcombine.low %v7120_v10, %v7292_v33  ;;  %v4962_v10 = vld [vmem:[%s9143_s1 + $0x130] sm:$0xf]  ;;  %v630_v58 = vrot.slane %v622_v57, %v6962_v35  ;;  %v1393_v7 = vld [vmem:[%s9145_s3 + $0x48] sm:$0xff]  ;;  %s6830_s1 = smov 48   ;;  %vm2295_vm7 = vcmask 392192  }
  0x20   :  { %4941 = vmatmul.mubr.msk.f32.gmra.mrb[2].mxu0 %vm140_vm3, %v459_v39  ;;  %5396 = vmatprep.subr.bf16.mxu1 %v7083_v12  ;;  %v613_v12 = vrot.slane %v605_v36, %v6962_v35  ;;  %v5367_v22 = vpack.c.bf16 %v4958_v56, %v4956_v31  ;;  %9332 = vst [vmem:[#allocation9_spill] sm:$0xff] %v7444_v18  ;;  %v5000_v40 = vld [vmem:[%s9145_s3 + $0x110] sm:$0xff]  ;;  %v5005_v36 = vld [vmem:[%s9145_s3 + $0x138] sm:$0xff]  ;;  %v5007_v37 = vld [vmem:[%s9145_s3 + $0x148] sm:$0xff]  ;;  %vm2310_vm8 = vcmask 654336   ;;  %vm4884_vm9 = vcmask 74752  }
  0x21   :  { %565 = vmatprep.mubr.f32.mxu0 %v9152_v8  ;;  %5364 = vmatpush1.bf16.msk.msra.mxu0 %vm6913_vm2, %v7268_v17  ;;  %v637_v60 = vrot.slane %v623_v38, %v6962_v35  ;;  %v7483_v30 = vpack.c.bf16 %v5002_v50, %v5000_v40  ;;  %v7509_v56 = vpack.c.bf16 %v5007_v37, %v5005_v36  ;;  %v1397_v57 = vld [vmem:[%s9145_s3 + $0x68] sm:$0xff]  ;;  %v1398_v51 = vld [vmem:[%s9145_s3 + $0x70] sm:$0xff]  ;;  %v55_v15 = vld [vmem:[%s9144_s2] sm:$0x3] }
  0x22   :  { %4973 = vmatmul.mubr.msk.f32.gmra.mrb[10].mxu1 %vm140_vm3, %v314_v62  ;;  %5366 = vmatprep.subr.bf16.mxu0 %v7277_v34  ;;  %v621_v54 = vcombine.low %v613_v12, %v620_v16  ;;  %v5372_v62 = vpack.c.bf16 %v4962_v10, %v4960_v52  ;;  %v1399_v12 = vld [vmem:[%s9145_s3 + $0x78] sm:$0xff]  ;;  %v1396_v16 = vld [vmem:[%s9145_s3 + $0x60] sm:$0xff]  ;;  %v5008_v10 = vld [vmem:[%s9145_s3 + $0x150] sm:$0xff] }
  0x23   :  { %1015 = vmatprep.mubr.f32.mxu1 %v9152_v8  ;;  %9334 = vst [vmem:[#allocation11_spill] sm:$0xff] %v7483_v30  ;;  %9335 = vst [vmem:[#allocation12_spill] sm:$0xff] %v7509_v56  ;;  %v7524_v21 = vpack.c.bf16 %v1399_v12, %v1397_v57 }
  0x24   :  { %4942 = vmatmul.mubr.msk.f32.gmra.mrb[4].mxu0 %vm140_vm3, %v476_v26 }
  0x25   :  { %715 = vmatprep.mubr.f32.mxu0 %v9152_v8 }
  0x26   :  { %4976 = vmatmul.mubr.msk.f32.vlgmr.msra.gmra.mrb[6].mxu1 %vm140_vm3, %v7211_v9  ;;  %v750_v9 = vcombine.low %v7002_v46, %v7056_v1  ;;  %v54_v1 = vld [vmem:[%s9142_s0 + $0x36] sm:$0x3] }
  0x27   :  { %5398 = vmatpush1.bf16.msra.mxu1 %v7127_v28  ;;  %1021 = vmatprep.mubr.f32.mxu1 %v9152_v8  ;;  %v638_v28 = vcombine.low %v630_v58, %v637_v60  ;;  %v1401_v58 = vld [vmem:[%s9145_s3 + $0x88] sm:$0xff]  ;;  %v1403_v60 = vld [vmem:[%s9145_s3 + $0x98] sm:$0xff] }
  0x28   :  { %4953 = vmatmul.mubr.msk.f32.vlgmr.msra.gmra.mrb[0].mxu0 %vm140_vm3, %v604_v55  ;;  %5401 = vmatprep.subr.msk.bf16.mxu1 %vm6913_vm2, %v7159_v42  ;;  %v53_v42 = vld [vmem:[%s9142_s0 + $0x34] sm:$0x3] }
  0x29   :  { %721 = vmatprep.mubr.f32.mxu0 %v9152_v8  ;;  %5368 = vmatpush1.bf16.msra.mxu0 %v5367_v22 }
  0x2a   :  { %4977 = vmatmul.mubr.msk.f32.gmra.mrb[8].mxu1 %vm140_vm3, %v459_v39  ;;  %5371 = vmatprep.subr.msk.bf16.mxu0 %vm6913_vm2, %v5369_v23  ;;  %v5003_v39 = vld [vmem:[%s9145_s3 + $0x128] sm:$0xff] }
  0x2b   :  { %1027 = vmatprep.mubr.f32.mxu1 %v9152_v8  ;;  %5404 = vmatpush1.bf16.msk.msra.mxu1 %vm6913_vm2, %v7171_v47  ;;  %v752_v47 = vcombine.low %v7201_v61, %v53_v42  ;;  %v7471_v41 = vpack.c.bf16 %v5003_v39, %v5001_v29  ;;  %v5015_v42 = vld [vmem:[%s9145_s3 + $0x188] sm:$0xff]  ;;  %v9150_v29 = vsub.s32 1, %v6905_v14  ;;  %v7615_v39 = vrot.slane %v55_v15, %v9151_v13  ;;  %v5070_v14 = vld [vmem:[%s9145_s3 + $0x330] sm:$0xff] }
  0x2c   :  { %4954 = vmatmul.mubr.msk.f32.gmra.mrb[2].mxu0 %vm140_vm3, %v621_v54  ;;  %5406 = vmatprep.subr.bf16.mxu1 %v7208_v63  ;;  %v751_v63 = vcombine.low %v7059_v2, %v7166_v43  ;;  %v1219_v2 = vcombine.low %v7042_v59, %v7081_v11  ;;  %v1221_v43 = vcombine.low %v7292_v33, %v54_v1  ;;  %v1385_v59 = vld [vmem:[%s9145_s3 + $0x8] sm:$0xff]  ;;  %v1384_v11 = vld [vmem:[%s9145_s3] sm:$0xff]  ;;  %v5004_v33 = vld [vmem:[%s9145_s3 + $0x130] sm:$0xff] }
  0x2d   :  { %727 = vmatprep.mubr.f32.mxu0 %v9152_v8  ;;  %5374 = vmatpush1.bf16.msk.msra.mxu0 %vm6913_vm2, %v5372_v62  ;;  %v759_v44 = vrot.slane %v752_v47, %v6962_v35  ;;  %9333 = vst [vmem:[#allocation10_spill] sm:$0xff] %v7471_v41  ;;  %v7563_v47 = vpack.c.bf16 %v1403_v60, %v1401_v58  ;;  %v5017_v60 = vld [vmem:[%s9145_s3 + $0x198] sm:$0xff] }
  0x2e   :  { %4978 = vmatmul.mubr.msk.f32.gmra.mrb[10].mxu1 %vm140_vm3, %v476_v26  ;;  %v1228_v19 = vrot.slane %v1221_v43, %v6962_v35  ;;  %v1387_v35 = vld [vmem:[%s9145_s3 + $0x18] sm:$0xff]  ;;  %v1394_v26 = vld [vmem:[%s9145_s3 + $0x50] sm:$0xff]  ;;  %v1405_v43 = vld [vmem:[%s9145_s3 + $0xa8] sm:$0xff]  ;;  %v7619_v40 = vrot.slane %v55_v15, %v9150_v29 }
  0x2f   :  { %1104 = vmatprep.mubr.f32.mxu1 %v9152_v8  ;;  %v760_v46 = vcombine.low %v7169_v45, %v759_v44  ;;  %v1220_v45 = vcombine.low %v7105_v20, %v7182_v27  ;;  %v7419_v20 = vpack.c.bf16 %v1387_v35, %v1385_v59  ;;  %v1386_v27 = vld [vmem:[%s9145_s3 + $0x10] sm:$0xff]  ;;  %9339 = vst [vmem:[#allocation16_spill] sm:$0xff] %v7563_v47  ;;  %v1404_v35 = vld [vmem:[%s9145_s3 + $0xa0] sm:$0xff] }
  0x30   :  { %4955 = vmatmul.mubr.msk.f32.gmra.mrb[4].mxu0 %vm140_vm3, %v638_v28  ;;  %v1229_v61 = vcombine.low %v7185_v53, %v1228_v19  ;;  %v4997_v53 = vld [vmem:[%s9145_s3 + $0xf8] sm:$0xff]  ;;  %v7430_v49 = vpack.c.bf16 %v1386_v27, %v1384_v11  ;;  %v1402_v44 = vld [vmem:[%s9145_s3 + $0x90] sm:$0xff] }
  0x31   :  { %837 = vmatprep.mubr.f32.mxu0 %v9152_v8  ;;  %9329 = vst [vmem:[#allocation6_spill] sm:$0xff] %v7419_v20  ;;  %v7432_v0 = vpack.c.bf16 %v4999_v48, %v4997_v53  ;;  %v1406_v11 = vld [vmem:[%s9145_s3 + $0xb0] sm:$0xff] }
  0x32   :  { %4981 = vmatmul.mubr.msk.f32.vlgmr.msra.gmra.mrb[6].mxu1 %vm140_vm3, %v604_v55  ;;  %9330 = vst [vmem:[#allocation7_spill] sm:$0xff] %v7430_v49  ;;  %v5006_v55 = vld [vmem:[%s9145_s3 + $0x140] sm:$0xff]  ;;  %v7603_v27 = vpack.c.bf16 %v1406_v11, %v1404_v35  ;;  %v1410_v35 = vld [vmem:[%s9145_s3 + $0xd0] sm:$0xff] }
  0x33   :  { %5408 = vmatpush1.bf16.msra.mxu1 %v7235_v6  ;;  %1110 = vmatprep.mubr.f32.mxu1 %v9152_v8  ;;  %9331 = vst [vmem:[#allocation8_spill] sm:$0xff] %v7432_v0  ;;  %v1391_v6 = vld [vmem:[%s9145_s3 + $0x38] sm:$0xff]  ;;  %v7522_v38 = vpack.c.bf16 %v5006_v55, %v5004_v33 }
  0x34   :  { %4966 = vmatmul.mubr.msk.f32.vlgmr.msra.gmra.mrb[0].mxu0 %vm140_vm3, %v750_v9  ;;  %5411 = vmatprep.subr.msk.bf16.mxu1 %vm6913_vm2, %v7243_v24  ;;  %v7457_v24 = vpack.c.bf16 %v1391_v6, %v1389_v5  ;;  %9344 = vst [vmem:[#allocation21_spill] sm:$0xff] %v7603_v27 }
  0x35   :  { %843 = vmatprep.mubr.f32.mxu0 %v9152_v8  ;;  %5454 = vmatprep.subr.bf16.mxu0 %v7432_v0  ;;  %9336 = vst [vmem:[#allocation13_spill] sm:$0xff] %v7522_v38 }
  0x36   :  { %4982 = vmatmul.mubr.msk.f32.gmra.mrb[8].mxu1 %vm140_vm3, %v621_v54  ;;  %5456 = vmatpush1.bf16.msra.mxu0 %v7444_v18  ;;  %v5010_v54 = vld [vmem:[%s9145_s3 + $0x160] sm:$0xff] }
  0x37   :  { %1116 = vmatprep.mubr.f32.mxu1 %v9152_v8  ;;  %5414 = vmatpush1.bf16.msk.msra.mxu1 %vm6913_vm2, %v7268_v17  ;;  %v1395_v17 = vld [vmem:[%s9145_s3 + $0x58] sm:$0xff] }
  0x38   :  { %4967 = vmatmul.mubr.msk.f32.gmra.mrb[2].mxu0 %vm140_vm3, %v751_v63  ;;  %5416 = vmatprep.subr.bf16.mxu1 %v7277_v34  ;;  %v7485_v32 = vpack.c.bf16 %v1395_v17, %v1393_v7  ;;  %v1392_v34 = vld [vmem:[%s9145_s3 + $0x40] sm:$0xff] }
  0x39   :  { %849 = vmatprep.mubr.f32.mxu0 %v9152_v8  ;;  %5458 = vmatprep.subr.bf16.mxu0 %v7471_v41  ;;  %v7507_v31 = vpack.c.bf16 %v1394_v26, %v1392_v34 }
  0x3a   :  { %4983 = vmatmul.mubr.msk.f32.gmra.mrb[10].mxu1 %vm140_vm3, %v638_v28  ;;  %5460 = vmatpush1.bf16.msra.mxu0 %v7483_v30  ;;  %v5013_v28 = vld [vmem:[%s9145_s3 + $0x178] sm:$0xff] }
  0x3b   :  { %1193 = vmatprep.mubr.f32.mxu1 %v9152_v8  ;;  %5462 = vmatprep.subr.bf16.mxu0 %v7509_v56  ;;  %v7575_v1 = vpack.c.bf16 %v5015_v42, %v5013_v28  ;;  %v5019_v28 = vld [vmem:[%s9145_s3 + $0x1a8] sm:$0xff] }
  0x3c   :  { %4968 = vmatmul.mubr.msk.f32.gmra.mrb[4].mxu0 %vm140_vm3, %v760_v46  ;;  %v7639_v42 = vpack.c.bf16 %v5019_v28, %v5017_v60 }
  0x3d   :  { %1589 = vmatprep.mubr.f32.mxu0 %v9152_v8  ;;  %9340 = vst [vmem:[#allocation17_spill] sm:$0xff] %v7575_v1 }
  0x3e   :  { %4986 = vmatmul.mubr.msk.f32.vlgmr.msra.gmra.mrb[6].mxu1 %vm140_vm3, %v750_v9  ;;  %5464 = vmatpush1.bf16.msra.mxu0 %v7522_v38  ;;  %v7561_v9 = vpack.c.bf16 %v5010_v54, %v5008_v10  ;;  %9346 = vst [vmem:[#allocation23_spill] sm:$0xff] %v7639_v42 }
  0x3f   :  { %5418 = vmatpush1.bf16.msra.mxu1 %v5367_v22  ;;  %1199 = vmatprep.mubr.f32.mxu1 %v9152_v8  ;;  %v5009_v22 = vld [vmem:[%s9145_s3 + $0x158] sm:$0xff] }
  0x40   :  { %5421 = vmatprep.subr.msk.bf16.mxu1 %vm6913_vm2, %v5369_v23  ;;  %v5011_v23 = vld [vmem:[%s9145_s3 + $0x168] sm:$0xff]  ;;  %9338 = vst [vmem:[#allocation15_spill] sm:$0xff] %v7561_v9 }
  0x41   :  { %v7536_v52 = vpack.c.bf16 %v5011_v23, %v5009_v22 }
  0x42   :  { %4987 = vmatmul.mubr.msk.f32.gmra.mrb[8].mxu1 %vm140_vm3, %v751_v63  ;;  %v1400_v63 = vld [vmem:[%s9145_s3 + $0x80] sm:$0xff] }
  0x43   :  { %1205 = vmatprep.mubr.f32.mxu1 %v9152_v8  ;;  %5424 = vmatpush1.bf16.msk.msra.mxu1 %vm6913_vm2, %v5372_v62  ;;  %9337 = vst [vmem:[#allocation14_spill] sm:$0xff] %v7536_v52  ;;  %v7551_v62 = vpack.c.bf16 %v1398_v51, %v1396_v16  ;;  %v7587_v19 = vpack.c.bf16 %v1402_v44, %v1400_v63  ;;  %v5016_v63 = vld [vmem:[%s9145_s3 + $0x190] sm:$0xff]  ;;  %v5018_v44 = vld [vmem:[%s9145_s3 + $0x1a0] sm:$0xff] }
  0x44   :  { %5426 = vmatprep.subr.bf16.mxu1 %v7419_v20  ;;  %5466 = vmatprep.subr.bf16.mxu0 %v7536_v52 }
  0x45   :  { %9341 = vst [vmem:[#allocation18_spill] sm:$0xff] %v7587_v19  ;;  %5468 = vmatpush1.bf16.msra.mxu0 %v7561_v9 }
  0x46   :  { %4988 = vmatmul.mubr.msk.f32.gmra.mrb[10].mxu1 %vm140_vm3, %v760_v46  ;;  %v5012_v46 = vld [vmem:[%s9145_s3 + $0x170] sm:$0xff]  ;;  %5470 = vmatprep.subr.bf16.mxu0 %v7575_v1 }
  0x47   :  { %1300 = vmatprep.mubr.f32.mxu1 %v9152_v8 }
  0x4a   :  { %4991 = vmatmul.mubr.msk.f32.vlgmr.msra.gmra.mrb[6].mxu1 %vm140_vm3, %v1219_v2  ;;  %v5014_v2 = vld [vmem:[%s9145_s3 + $0x180] sm:$0xff] }
  0x4b   :  { %1306 = vmatprep.mubr.f32.mxu1 %v9152_v8  ;;  %5428 = vmatpush1.bf16.msra.mxu1 %v7430_v49 }
  0x4c   :  { %5430 = vmatprep.subr.bf16.mxu1 %v7457_v24 }
  0x4e   :  { %4992 = vmatmul.mubr.msk.f32.gmra.mrb[8].mxu1 %vm140_vm3, %v1220_v45  ;;  %v1407_v45 = vld [vmem:[%s9145_s3 + $0xb8] sm:$0xff] }
  0x4f   :  { %1312 = vmatprep.mubr.f32.mxu1 %v9152_v8  ;;  %5432 = vmatpush1.bf16.msra.mxu1 %v7459_v25  ;;  %v7593_v59 = vpack.c.bf16 %v1407_v45, %v1405_v43  ;;  %v1411_v43 = vld [vmem:[%s9145_s3 + $0xd8] sm:$0xff]  ;;  %v1408_v45 = vld [vmem:[%s9145_s3 + $0xc0] sm:$0xff] }
  0x50   :  { %5434 = vmatprep.subr.bf16.mxu1 %v7485_v32 }
  0x51   :  { %9343 = vst [vmem:[#allocation20_spill] sm:$0xff] %v7593_v59 }
  0x52   :  { %4993 = vmatmul.mubr.msk.f32.gmra.mrb[10].mxu1 %vm140_vm3, %v1229_v61  ;;  %v7591_v61 = vpack.c.bf16 %v5014_v2, %v5012_v46  ;;  %v1409_v46 = vld [vmem:[%s9145_s3 + $0xc8] sm:$0xff]  ;;  %v7650_v2 = vpack.c.bf16 %v5018_v44, %v5016_v63 }
  0x53   :  { %1482 = vmatprep.mubr.f32.mxu1 %v9152_v8  ;;  %5436 = vmatpush1.bf16.msra.mxu1 %v7507_v31  ;;  %v7662_v11 = vpack.c.bf16 %v1411_v43, %v1409_v46 }
  0x54   :  { %5438 = vmatprep.subr.bf16.mxu1 %v7524_v21  ;;  %9342 = vst [vmem:[#allocation19_spill] sm:$0xff] %v7591_v61  ;;  %5472 = vmatpush1.bf16.msra.mxu0 %v7591_v61  ;;  %9347 = vst [vmem:[#allocation24_spill] sm:$0xff] %v7650_v2 }
  0x55   :  { %5474 = vmatprep.subr.bf16.mxu0 %v7639_v42  ;;  %9348 = vst [vmem:[#allocation25_spill] sm:$0xff] %v7662_v11 }
  0x57   :  { %5440 = vmatpush1.bf16.msra.mxu1 %v7551_v62 }
  0x58   :  { %5442 = vmatprep.subr.bf16.mxu1 %v7563_v47  ;;  %5476 = vmatpush1.bf16.msra.mxu0 %v7650_v2 }
  0x5b   :  { %5444 = vmatpush1.bf16.msra.mxu1 %v7587_v19 }
  0x5c   :  { %5446 = vmatprep.subr.bf16.mxu1 %v7593_v59 }
  0x5f   :  { %5448 = vmatpush1.bf16.msra.mxu1 %v7603_v27 }
  0x60   :  { %5450 = vmatprep.subr.bf16.mxu1 %v7662_v11 }
  0xe1   :  { %v220_v53 = vpop.f32.mrb[0].mxu1 }
  0xe2   :  { %v222_v48 = vpop.f32.mrb[1].mxu1  ;;  %v237_v50 = vadd.f32 %v220_v53, %v7615_v39  ;;  %v7664_v53 = vpack.c.bf16 %v1410_v35, %v1408_v45 }
  0xe3   :  { %v238_v7 = vadd.f32 %v222_v48, %v7619_v40  ;;  %v5021_v48 = vld [vmem:[%s9145_s3 + $0x1b8] sm:$0xff] }
  0xe4   :  { %9349 = vst [vmem:[#allocation26_spill] sm:$0xff] %v7664_v53  ;;  %5452 = vmatpush1.bf16.msra.mxu1 %v7664_v53 }
  0xe5   :  { %v226_v3 = vpop.f32.mrb[2].mxu1 }
  0xe6   :  { %v228_v4 = vpop.f32.mrb[3].mxu1  ;;  %v239_v37 = vadd.f32 %v226_v3, %v7615_v39  ;;  %v5023_v3 = vld [vmem:[%s9145_s3 + $0x1c8] sm:$0xff] }
  0xe7   :  { %v240_v33 = vadd.f32 %v228_v4, %v7619_v40  ;;  %v7674_v4 = vpack.c.bf16 %v5023_v3, %v5021_v48 }
  0xe9   :  { %v232_v5 = vpop.f32.mrb[4].mxu1  ;;  %9350 = vst [vmem:[#allocation27_spill] sm:$0xff] %v7674_v4  ;;  %5478 = vmatprep.subr.bf16.mxu0 %v7674_v4 }
  0xea   :  { %v234_v6 = vpop.f32.mrb[5].mxu1  ;;  %v241_v51 = vadd.f32 %v232_v5, %v7615_v39  ;;  %v5020_v5 = vld [vmem:[%s9145_s3 + $0x1b0] sm:$0xff] }
  0xeb   :  { %v242_v22 = vadd.f32 %v234_v6, %v7619_v40  ;;  %v5022_v6 = vld [vmem:[%s9145_s3 + $0x1c0] sm:$0xff] }
  0xec   :  { %v7683_v15 = vpack.c.bf16 %v5022_v6, %v5020_v5 }
  0xee   :  { %9351 = vst [vmem:[#allocation28_spill] sm:$0xff] %v7683_v15  ;;  %5480 = vmatpush1.bf16.msra.mxu0 %v7683_v15 }
 0x107   :  { %v839_v17 = vpop.f32.mrb[0].mxu0 }
 0x108   :  { %v6606_v34 = vadd.f32 %v839_v17, %v237_v50  ;;  %v841_v26 = vpop.f32.mrb[1].mxu0  ;;  %v7690_v50 = vld [vmem:[%s9145_s3 + $0xe8] sm:$0xff] }
 0x109   :  { %v7623_v36 = vadd.f32 %v841_v26, %v238_v7  ;;  %9352 = vst [vmem:[#allocation29_spill] sm:$0xff] %v7690_v50  ;;  %1446 = vmatprep.subr.mxu1 %v7690_v50  ;;  %v7696_v7 = vld [vmem:[%s9145_s3 + $0xe0] sm:$0xff]  ;;  %v7702_v26 = vld [vmem:[%s9145_s3 + $0x1d8] sm:$0xff] }
 0x10a   :  { %9353 = vst [vmem:[#allocation30_spill] sm:$0xff] %v7696_v7  ;;  %1447 = vmatpush1.msra.mxu1 %v7696_v7  ;;  %9354 = vst [vmem:[#allocation31_spill] sm:$0xff] %v7702_v26  ;;  %1553 = vmatprep.subr.mxu0 %v7702_v26 }
 0x10b   :  { %v845_v55 = vpop.f32.mrb[2].mxu0  ;;  %5566 = vmatprep.subr.bf16.mxu1 %v7419_v20 }
 0x10c   :  { %v6610_v57 = vadd.f32 %v845_v55, %v239_v37  ;;  %v847_v12 = vpop.f32.mrb[3].mxu0  ;;  %v5028_v37 = vld [vmem:[%s9145_s3 + $0x1e8] sm:$0xff] }
 0x10d   :  { %v7627_v16 = vadd.f32 %v847_v12, %v240_v33  ;;  %v5030_v33 = vld [vmem:[%s9145_s3 + $0x1f8] sm:$0xff] }
 0x10f   :  { %v851_v23 = vpop.f32.mrb[4].mxu0 }
 0x110   :  { %v6614_v10 = vadd.f32 %v851_v23, %v241_v51  ;;  %v853_v54 = vpop.f32.mrb[5].mxu0  ;;  %v7716_v51 = vld [vmem:[%s9145_s3 + $0x1d0] sm:$0xff] }
 0x111   :  { %v7631_v58 = vadd.f32 %v853_v54, %v242_v22  ;;  %9355 = vst [vmem:[#allocation32_spill] sm:$0xff] %v7716_v51  ;;  %v7718_v22 = vpack.c.bf16 %v5030_v33, %v5028_v37  ;;  %1554 = vmatpush1.msra.mxu0 %v7716_v51  ;;  %v5034_v37 = vld [vmem:[%s9145_s3 + $0x218] sm:$0xff] }
 0x113   :  { %9345 = vst [vmem:[#allocation22_spill] sm:$0xff] %v7631_v58  ;;  %9356 = vst [vmem:[#allocation33_spill] sm:$0xff] %v7718_v22  ;;  %5482 = vmatprep.subr.bf16.mxu0 %v7718_v22  ;;  %v5068_v58 = vld [vmem:[%s9145_s3 + $0x320] sm:$0xff] }
 0x11d   :  { %v1302_v17 = vpop.f32.mrb[6].mxu1 }
 0x11e   :  { %v6617_v55 = vadd.f32 %v1302_v17, %v7615_v39  ;;  %v1304_v12 = vpop.f32.mrb[7].mxu1  ;;  %v5027_v17 = vld [vmem:[%s9145_s3 + $0x1e0] sm:$0xff] }
 0x11f   :  { %v6618_v23 = vadd.f32 %v1304_v12, %v7619_v40 }
 0x120   :  { %v1325_v54 = vmax.f32 %v6606_v34, %v6617_v55 }
 0x121   :  { %v1326_v60 = vmax.f32 %v7623_v36, %v6618_v23  ;;  %v1308_v28 = vpop.f32.mrb[8].mxu1 }
 0x122   :  { %v6619_v63 = vadd.f32 %v1308_v28, %v7615_v39  ;;  %1337 = vrot.lane.b32.xlu0 %v1325_v54, %s6827_s20  ;;  %v1310_v44 = vpop.f32.mrb[9].mxu1  ;;  %v5036_v28 = vld [vmem:[%s9145_s3 + $0x228] sm:$0xff] }
 0x123   :  { %v6620_v46 = vadd.f32 %v1310_v44, %v7619_v40 }
 0x124   :  { %v7727_v43 = vmax.f32 %v6610_v57, %v6619_v63  ;;  %v5038_v63 = vld [vmem:[%s9145_s3 + $0x238] sm:$0xff]  ;;  %v7911_v57 = vld [vmem:[%s9145_s3 + $0x2c0] sm:$0xff] }
 0x125   :  { %v1328_v45 = vmax.f32 %v7627_v16, %v6620_v46  ;;  %v1314_v35 = vpop.f32.mrb[10].mxu1  ;;  %v7787_v46 = vpack.c.bf16 %v5038_v63, %v5036_v28  ;;  %v5048_v28 = vld [vmem:[%s9145_s3 + $0x288] sm:$0xff]  ;;  %v5050_v63 = vld [vmem:[%s9145_s3 + $0x298] sm:$0xff] }
 0x126   :  { %v6621_v34 = vadd.f32 %v1314_v35, %v7615_v39  ;;  %1339 = vrot.lane.b32.xlu0 %v1326_v60, %s6827_s20  ;;  %1341 = vrot.lane.b32.xlu1 %v7727_v43, %s6827_s20  ;;  %v1316_v36 = vpop.f32.mrb[11].mxu1  ;;  %v5033_v60 = vld [vmem:[%s9145_s3 + $0x210] sm:$0xff] }
 0x127   :  { %v7735_v48 = vadd.f32 %v1316_v36, %v7619_v40  ;;  %v5029_v40 = vld [vmem:[%s9145_s3 + $0x1f0] sm:$0xff]  ;;  %9362 = vst [vmem:[#allocation39_spill] sm:$0xff] %v7787_v46  ;;  %v5042_v36 = vld [vmem:[%s9145_s3 + $0x258] sm:$0xff] }
 0x128   :  { %v7737_v3 = vmax.f32 %v6614_v10, %v6621_v34  ;;  %v5032_v10 = vld [vmem:[%s9145_s3 + $0x208] sm:$0xff]  ;;  %v7757_v55 = vpack.c.bf16 %v5029_v40, %v5027_v17  ;;  %v5037_v35 = vld [vmem:[%s9145_s3 + $0x230] sm:$0xff]  ;;  %v5046_v40 = vld [vmem:[%s9145_s3 + $0x278] sm:$0xff] }
 0x129   :  { %9357 = vst [vmem:[#allocation34_spill] sm:$0xff] %v7735_v48  ;;  %v7762_v23 = vpack.c.bf16 %v5034_v37, %v5032_v10  ;;  %v5040_v34 = vld [vmem:[%s9145_s3 + $0x248] sm:$0xff] }
 0x12a   :  { %9358 = vst [vmem:[#allocation35_spill] sm:$0xff] %v7737_v3  ;;  %1343 = vrot.lane.b32.xlu1 %v1328_v45, %s6827_s20  ;;  %9359 = vst [vmem:[#allocation36_spill] sm:$0xff] %v7757_v55  ;;  %v5035_v45 = vld [vmem:[%s9145_s3 + $0x220] sm:$0xff]  ;;  %v5044_v17 = vld [vmem:[%s9145_s3 + $0x268] sm:$0xff]  ;;  %v9374_v3 = vmov 0.0  }
 0x12b   :  { %9360 = vst [vmem:[#allocation37_spill] sm:$0xff] %v7762_v23  ;;  %v7827_v37 = vpack.c.bf16 %v5046_v40, %v5044_v17 }
 0x12d   :  { %9366 = vst [vmem:[#allocation43_spill] sm:$0xff] %v7827_v37 }
 0x194   :  { %v1338_v16 = vpop.permute.xlu0 %1337 }
 0x198   :  { %v1340_v5 = vpop.permute.xlu0 %1339 }
 0x199   :  { %v1350_v39 = vsel %vm1349_vm4, %v1338_v16, %v1340_v5  ;;  %v7804_v16 = vpack.c.bf16 %v5037_v35, %v5035_v45  ;;  %v7807_v5 = vpack.c.bf16 %v5042_v36, %v5040_v34  ;;  %v7847_v35 = vpack.c.bf16 %v5050_v63, %v5048_v28  ;;  %v5047_v34 = vld [vmem:[%s9145_s3 + $0x280] sm:$0xff]  ;;  %v5049_v36 = vld [vmem:[%s9145_s3 + $0x290] sm:$0xff]  ;;  %v7885_v63 = vld [vmem:[%s9145_s3 + $0x2c8] sm:$0xff] }
 0x19a   :  { %v1356_v6 = vmax.f32 %v1325_v54, %v1350_v39  ;;  %v5031_v54 = vld [vmem:[%s9145_s3 + $0x200] sm:$0xff]  ;;  %v7864_v17 = vpack.c.bf16 %v5049_v36, %v5047_v34  ;;  %v5059_v34 = vld [vmem:[%s9145_s3 + $0x2d8] sm:$0xff]  ;;  %v5061_v36 = vld [vmem:[%s9145_s3 + $0x2e8] sm:$0xff] }
 0x19b   :  { %v7783_v44 = vpack.c.bf16 %v5033_v60, %v5031_v54  ;;  %9363 = vst [vmem:[#allocation40_spill] sm:$0xff] %v7804_v16  ;;  %9364 = vst [vmem:[#allocation41_spill] sm:$0xff] %v7807_v5  ;;  %v5039_v39 = vld [vmem:[%s9145_s3 + $0x240] sm:$0xff]  ;;  %v5045_v60 = vld [vmem:[%s9145_s3 + $0x270] sm:$0xff]  ;;  %v7913_v29 = vpack.c.bf16 %v5061_v36, %v5059_v34 }
 0x19c   :  { %v7755_v33 = vmax.f32 %v1356_v6, 0.0  ;;  %v5041_v6 = vld [vmem:[%s9145_s3 + $0x250] sm:$0xff]  ;;  %v5043_v54 = vld [vmem:[%s9145_s3 + $0x260] sm:$0xff] }
 0x19d   :  { %9361 = vst [vmem:[#allocation38_spill] sm:$0xff] %v7783_v44  ;;  %v7824_v10 = vpack.c.bf16 %v5041_v6, %v5039_v39  ;;  %v7844_v45 = vpack.c.bf16 %v5045_v60, %v5043_v54  ;;  %v5052_v39 = vld [vmem:[%s9145_s3 + $0x2a8] sm:$0xff]  ;;  %v5054_v6 = vld [vmem:[%s9145_s3 + $0x2b8] sm:$0xff]  ;;  %v5051_v54 = vld [vmem:[%s9145_s3 + $0x2a0] sm:$0xff] }
 0x19e   :  { %v1522_v12 = vrot.slane %v7755_v33, 2  ;;  %4995 = vmatmul.mubr.msk.f32.vlgmr.msra.gmra.mrb[12].mxu1 %vm1414_vm5, %v7755_v33  ;;  %v7867_v40 = vpack.c.bf16 %v5054_v6, %v5052_v39  ;;  %v5053_v60 = vld [vmem:[%s9145_s3 + $0x2b0] sm:$0xff]  ;;  %v5060_v6 = vld [vmem:[%s9145_s3 + $0x2e0] sm:$0xff]  ;;  %9369 = vst [vmem:[#allocation46_spill] sm:$0xff] %v7913_v29 }
 0x19f   :  { %5568 = vmatpush1.bf16.msra.mxu1 %v7430_v49  ;;  %1983 = vmatprep.mubr.f32.mxu1 %v9152_v8  ;;  %9365 = vst [vmem:[#allocation42_spill] sm:$0xff] %v7824_v10  ;;  %9367 = vst [vmem:[#allocation44_spill] sm:$0xff] %v7844_v45  ;;  %v7878_v28 = vpack.c.bf16 %v5053_v60, %v5051_v54  ;;  %v5058_v39 = vld [vmem:[%s9145_s3 + $0x2d0] sm:$0xff]  ;;  %v5063_v54 = vld [vmem:[%s9145_s3 + $0x2f8] sm:$0xff] }
 0x1a0   :  { %5026 = vmatmul.mubr.msk.f32.vlgmr.msra.gmra.mrb[6].mxu0 %vm1414_vm5, %v1522_v12  ;;  %5570 = vmatprep.subr.bf16.mxu1 %v7457_v24  ;;  %v5065_v60 = vld [vmem:[%s9145_s3 + $0x308] sm:$0xff]  ;;  %v7916_v13 = vpack.c.bf16 %v5060_v6, %v5058_v39  ;;  %v5062_v34 = vld [vmem:[%s9145_s3 + $0x2f0] sm:$0xff]  ;;  %v5064_v36 = vld [vmem:[%s9145_s3 + $0x300] sm:$0xff] }
 0x1a1   :  { %5484 = vmatpush1.bf16.msra.mxu0 %v7757_v55  ;;  %1696 = vmatprep.mubr.f32.mxu0 %v9152_v8  ;;  %9368 = vst [vmem:[#allocation45_spill] sm:$0xff] %v7878_v28  ;;  %v7919_v8 = vrot.slane %v7755_v33, 4  ;;  %v7925_v48 = vpack.c.bf16 %v5065_v60, %v5063_v54  ;;  %v5069_v39 = vld [vmem:[%s9145_s3 + $0x328] sm:$0xff]  ;;  %v7946_v6 = vpack.c.bf16 %v5064_v36, %v5062_v34  ;;  %v5066_v60 = vld [vmem:[%s9145_s3 + $0x310] sm:$0xff]  ;;  %v5071_v34 = vld [vmem:[%s9145_s3 + $0x338] sm:$0xff] }
 0x1a2   :  { %5486 = vmatprep.subr.bf16.mxu0 %v7762_v23  ;;  %9370 = vst [vmem:[#allocation47_spill] sm:$0xff] %v7916_v13  ;;  %v5073_v36 = vld [vmem:[%s9145_s3 + $0x348] sm:$0xff] }
 0x1a3   :  { %5572 = vmatpush1.bf16.msra.mxu1 %v7459_v25  ;;  %9371 = vst [vmem:[#allocation48_spill] sm:$0xff] %v7925_v48  ;;  %9372 = vst [vmem:[#allocation49_spill] sm:$0xff] %v7946_v6 }
 0x1a4   :  { %5574 = vmatprep.subr.bf16.mxu1 %v7485_v32 }
 0x1a5   :  { %5488 = vmatpush1.bf16.msra.mxu0 %v7783_v44 }
 0x1a6   :  { %5490 = vmatprep.subr.bf16.mxu0 %v7787_v46 }
 0x1a7   :  { %5576 = vmatpush1.bf16.msra.mxu1 %v7507_v31 }
 0x1a8   :  { %5578 = vmatprep.subr.bf16.mxu1 %v7524_v21 }
 0x1a9   :  { %5492 = vmatpush1.bf16.msra.mxu0 %v7804_v16 }
 0x1aa   :  { %5494 = vmatprep.subr.bf16.mxu0 %v7807_v5 }
 0x1ab   :  { %5580 = vmatpush1.bf16.msra.mxu1 %v7551_v62 }
 0x1ac   :  { %5582 = vmatprep.subr.bf16.mxu1 %v7563_v47 }
 0x1ad   :  { %5496 = vmatpush1.bf16.msra.mxu0 %v7824_v10 }
 0x1ae   :  { %5498 = vmatprep.subr.bf16.mxu0 %v7827_v37 }
 0x1af   :  { %5584 = vmatpush1.bf16.msra.mxu1 %v7587_v19 }
 0x1b0   :  { %5586 = vmatprep.subr.bf16.mxu1 %v7593_v59 }
 0x1b1   :  { %5500 = vmatpush1.bf16.msra.mxu0 %v7844_v45 }
 0x1b2   :  { %5502 = vmatprep.subr.bf16.mxu0 %v7847_v35 }
 0x1b3   :  { %5588 = vmatpush1.bf16.msra.mxu1 %v7603_v27 }
 0x1b4   :  { %5590 = vmatprep.subr.bf16.mxu1 %v7662_v11 }
 0x1b5   :  { %5504 = vmatpush1.bf16.msra.mxu0 %v7864_v17 }
 0x1b6   :  { %5506 = vmatprep.subr.bf16.mxu0 %v7867_v40 }
 0x1b7   :  { %5592 = vmatpush1.bf16.msra.mxu1 %v7664_v53 }
 0x1b8   :  { %1947 = vmatprep.subr.mxu1 %v7690_v50 }
 0x1b9   :  { %5508 = vmatpush1.bf16.msra.mxu0 %v7878_v28 }
 0x1ba   :  { %1660 = vmatprep.subr.mxu0 %v7885_v63 }
 0x1bb   :  { %1948 = vmatpush1.msra.mxu1 %v7696_v7 }
 0x1bc   :  { %5120 = vmatmul.mubr.msk.f32.vlgmr.msra.gmra.mrb[14].mxu1 %vm1414_vm5, %v1522_v12  ;;  %5594 = vmatprep.subr.bf16.mxu1 %v7432_v0  ;;  %v5067_v12 = vld [vmem:[%s9145_s3 + $0x318] sm:$0xff]  ;;  %v5093_v0 = vld [vmem:[%s9145_s3 + $0x3e0] sm:$0xff] }
 0x1bd   :  { %1661 = vmatpush1.msra.mxu0 %v7911_v57  ;;  %5596 = vmatpush1.bf16.msra.mxu1 %v7444_v18  ;;  %v7949_v54 = vpack.c.bf16 %v5069_v39, %v5067_v12  ;;  %v7968_v12 = vpack.c.bf16 %v5068_v58, %v5066_v60  ;;  %v7971_v39 = vpack.c.bf16 %v5073_v36, %v5071_v34  ;;  %v5077_v58 = vld [vmem:[%s9145_s3 + $0x368] sm:$0xff]  ;;  %v5074_v36 = vld [vmem:[%s9145_s3 + $0x350] sm:$0xff] }
 0x1be   :  { %5057 = vmatmul.mubr.msk.f32.vlgmr.msra.gmra.mrb[6].mxu0 %vm1414_vm5, %v7919_v8  ;;  %5510 = vmatprep.subr.bf16.mxu0 %v7913_v29 }
 0x1bf   :  { %5512 = vmatpush1.bf16.msra.mxu0 %v7916_v13  ;;  %5598 = vmatprep.subr.bf16.mxu1 %v7471_v41  ;;  %9373 = vst [vmem:[#allocation50_spill] sm:$0xff] %v7949_v54  ;;  %9375 = vst [vmem:[#allocation51_spill] sm:$0xff] %v7968_v12  ;;  %v8083_v41 = vrot.slane %v7755_v33, 6  ;;  %v5098_v33 = vld [vmem:[%s9145_s3 + $0x408] sm:$0xff] }
 0x1c0   :  { %5514 = vmatprep.subr.bf16.mxu0 %v7925_v48  ;;  %2056 = vmatprep.mubr.f32.mxu1 %v9374_v3  ;;  %9376 = vst [vmem:[#allocation52_spill] sm:$0xff] %v7971_v39 }
 0x1c1   :  { %5600 = vmatpush1.bf16.msra.mxu1 %v7483_v30  ;;  %1803 = vmatprep.mubr.f32.mxu0 %v9374_v3  ;;  %v5072_v30 = vld [vmem:[%s9145_s3 + $0x340] sm:$0xff]  ;;  %9386 = vst [vmem:[#allocation62_spill] sm:$0xff] %v8083_v41 }
 0x1c2   :  { %5602 = vmatprep.subr.bf16.mxu1 %v7509_v56  ;;  %v5075_v56 = vld [vmem:[%s9145_s3 + $0x358] sm:$0xff]  ;;  %v7988_v60 = vpack.c.bf16 %v5072_v30, %v5070_v14  ;;  %v5081_v14 = vld [vmem:[%s9145_s3 + $0x388] sm:$0xff] }
 0x1c3   :  { %5516 = vmatpush1.bf16.msra.mxu0 %v7946_v6  ;;  %v7991_v34 = vpack.c.bf16 %v5077_v58, %v5075_v56  ;;  %v5078_v58 = vld [vmem:[%s9145_s3 + $0x370] sm:$0xff] }
 0x1c4   :  { %5518 = vmatprep.subr.bf16.mxu0 %v7949_v54  ;;  %9377 = vst [vmem:[#allocation53_spill] sm:$0xff] %v7988_v60 }
 0x1c5   :  { %5604 = vmatpush1.bf16.msra.mxu1 %v7522_v38  ;;  %9378 = vst [vmem:[#allocation54_spill] sm:$0xff] %v7991_v34  ;;  %v5076_v38 = vld [vmem:[%s9145_s3 + $0x360] sm:$0xff] }
 0x1c6   :  { %5606 = vmatprep.subr.bf16.mxu1 %v7536_v52  ;;  %v5079_v52 = vld [vmem:[%s9145_s3 + $0x378] sm:$0xff]  ;;  %v8008_v30 = vpack.c.bf16 %v5076_v38, %v5074_v36  ;;  %v5085_v38 = vld [vmem:[%s9145_s3 + $0x3a8] sm:$0xff] }
 0x1c7   :  { %5520 = vmatpush1.bf16.msra.mxu0 %v7968_v12  ;;  %v8011_v56 = vpack.c.bf16 %v5081_v14, %v5079_v52  ;;  %v5082_v14 = vld [vmem:[%s9145_s3 + $0x390] sm:$0xff] }
 0x1c8   :  { %5522 = vmatprep.subr.bf16.mxu0 %v7971_v39  ;;  %9379 = vst [vmem:[#allocation55_spill] sm:$0xff] %v8008_v30 }
 0x1c9   :  { %5608 = vmatpush1.bf16.msra.mxu1 %v7561_v9  ;;  %9380 = vst [vmem:[#allocation56_spill] sm:$0xff] %v8011_v56  ;;  %v5080_v9 = vld [vmem:[%s9145_s3 + $0x380] sm:$0xff] }
 0x1ca   :  { %5610 = vmatprep.subr.bf16.mxu1 %v7575_v1  ;;  %v5083_v1 = vld [vmem:[%s9145_s3 + $0x398] sm:$0xff]  ;;  %v8028_v52 = vpack.c.bf16 %v5080_v9, %v5078_v58  ;;  %v5090_v58 = vld [vmem:[%s9145_s3 + $0x3c8] sm:$0xff] }
 0x1cb   :  { %5524 = vmatpush1.bf16.msra.mxu0 %v7988_v60  ;;  %v8031_v36 = vpack.c.bf16 %v5085_v38, %v5083_v1  ;;  %v8049_v1 = vld [vmem:[%s9145_s3 + $0x3b8] sm:$0xff] }
 0x1cc   :  { %5526 = vmatprep.subr.bf16.mxu0 %v7991_v34  ;;  %9381 = vst [vmem:[#allocation57_spill] sm:$0xff] %v8028_v52  ;;  %v5092_v38 = vld [vmem:[%s9145_s3 + $0x3d8] sm:$0xff] }
 0x1cd   :  { %5612 = vmatpush1.bf16.msra.mxu1 %v7591_v61  ;;  %9382 = vst [vmem:[#allocation58_spill] sm:$0xff] %v8031_v36  ;;  %v5084_v61 = vld [vmem:[%s9145_s3 + $0x3a0] sm:$0xff] }
 0x1ce   :  { %5614 = vmatprep.subr.bf16.mxu1 %v7639_v42  ;;  %v8042_v9 = vpack.c.bf16 %v5084_v61, %v5082_v14  ;;  %v5089_v61 = vld [vmem:[%s9145_s3 + $0x3c0] sm:$0xff]  ;;  %v5091_v14 = vld [vmem:[%s9145_s3 + $0x3d0] sm:$0xff] }
 0x1cf   :  { %5528 = vmatpush1.bf16.msra.mxu0 %v8008_v30  ;;  %v8080_v42 = vpack.c.bf16 %v5091_v14, %v5089_v61  ;;  %v5097_v61 = vld [vmem:[%s9145_s3 + $0x400] sm:$0xff]  ;;  %v5099_v14 = vld [vmem:[%s9145_s3 + $0x410] sm:$0xff] }
 0x1d0   :  { %5530 = vmatprep.subr.bf16.mxu0 %v8011_v56  ;;  %9383 = vst [vmem:[#allocation59_spill] sm:$0xff] %v8042_v9 }
 0x1d1   :  { %5616 = vmatpush1.bf16.msra.mxu1 %v7650_v2  ;;  %v8077_v2 = vpack.c.bf16 %v5092_v38, %v5090_v58  ;;  %9385 = vst [vmem:[#allocation61_spill] sm:$0xff] %v8080_v42  ;;  %v5095_v58 = vld [vmem:[%s9145_s3 + $0x3f0] sm:$0xff] }
 0x1d2   :  { %5618 = vmatprep.subr.bf16.mxu1 %v7674_v4  ;;  %v5096_v4 = vld [vmem:[%s9145_s3 + $0x3f8] sm:$0xff] }
 0x1d3   :  { %5532 = vmatpush1.bf16.msra.mxu0 %v8028_v52  ;;  %9384 = vst [vmem:[#allocation60_spill] sm:$0xff] %v8077_v2 }
 0x1d4   :  { %5534 = vmatprep.subr.bf16.mxu0 %v8031_v36 }
 0x1d5   :  { %5620 = vmatpush1.bf16.msra.mxu1 %v7683_v15  ;;  %v5094_v15 = vld [vmem:[%s9145_s3 + $0x3e8] sm:$0xff] }
 0x1d6   :  { %2020 = vmatprep.subr.mxu1 %v7702_v26  ;;  %v8075_v26 = vld [vmem:[%s9145_s3 + $0x3b0] sm:$0xff]  ;;  %v8088_v18 = vpack.c.bf16 %v5096_v4, %v5094_v15  ;;  %v5100_v4 = vld [vmem:[%s9145_s3 + $0x418] sm:$0xff]  ;;  %v8109_v15 = vpack.c.bf16 %v5095_v58, %v5093_v0  ;;  %v5102_v0 = vld [vmem:[%s9145_s3 + $0x428] sm:$0xff] }
 0x1d7   :  { %5536 = vmatpush1.bf16.msra.mxu0 %v8042_v9  ;;  %v8112_v38 = vpack.c.bf16 %v5100_v4, %v5098_v33  ;;  %v5104_v58 = vld [vmem:[%s9145_s3 + $0x438] sm:$0xff]  ;;  %v8131_v33 = vpack.c.bf16 %v5099_v14, %v5097_v61 }
 0x1d8   :  { %1767 = vmatprep.subr.mxu0 %v8049_v1  ;;  %9387 = vst [vmem:[#allocation63_spill] sm:$0xff] %v8088_v18  ;;  %9388 = vst [vmem:[#allocation64_spill] sm:$0xff] %v8109_v15  ;;  %v8134_v4 = vpack.c.bf16 %v5104_v58, %v5102_v0  ;;  %v5108_v61 = vld [vmem:[%s9145_s3 + $0x458] sm:$0xff]  ;;  %v5105_v58 = vld [vmem:[%s9145_s3 + $0x440] sm:$0xff] }
 0x1d9   :  { %2021 = vmatpush1.msra.mxu1 %v7716_v51  ;;  %9389 = vst [vmem:[#allocation65_spill] sm:$0xff] %v8112_v38  ;;  %9390 = vst [vmem:[#allocation66_spill] sm:$0xff] %v8131_v33 }
 0x1da   :  { %5121 = vmatmul.mubr.msk.f32.vlgmr.msra.gmra.mrb[14].mxu1 %vm1414_vm5, %v7919_v8  ;;  %5622 = vmatprep.subr.bf16.mxu1 %v7718_v22  ;;  %9391 = vst [vmem:[#allocation67_spill] sm:$0xff] %v8134_v4  ;;  %v5115_v22 = vld [vmem:[%s9145_s3 + $0x490] sm:$0xff] }
 0x1db   :  { %1768 = vmatpush1.msra.mxu0 %v8075_v26  ;;  %5624 = vmatpush1.bf16.msra.mxu1 %v7757_v55  ;;  %v5111_v55 = vld [vmem:[%s9145_s3 + $0x470] sm:$0xff] }
 0x1dc   :  { %5088 = vmatmul.mubr.msk.f32.vlgmr.msra.gmra.mrb[6].mxu0 %vm1414_vm5, %v8083_v41  ;;  %5538 = vmatprep.subr.bf16.mxu0 %v8077_v2 }
 0x1dd   :  { %5540 = vmatpush1.bf16.msra.mxu0 %v8080_v42  ;;  %5626 = vmatprep.subr.bf16.mxu1 %v7762_v23  ;;  %v5103_v23 = vld [vmem:[%s9145_s3 + $0x430] sm:$0xff] }
 0x1de   :  { %5542 = vmatprep.subr.bf16.mxu0 %v8088_v18  ;;  %2129 = vmatprep.mubr.f32.mxu1 %v9374_v3 }
 0x1df   :  { %5628 = vmatpush1.bf16.msra.mxu1 %v7783_v44  ;;  %1910 = vmatprep.mubr.f32.mxu0 %v9374_v3  ;;  %v5101_v44 = vld [vmem:[%s9145_s3 + $0x420] sm:$0xff] }
 0x1e0   :  { %5630 = vmatprep.subr.bf16.mxu1 %v7787_v46  ;;  %v5106_v46 = vld [vmem:[%s9145_s3 + $0x448] sm:$0xff]  ;;  %v8151_v14 = vpack.c.bf16 %v5103_v23, %v5101_v44  ;;  %v5112_v23 = vld [vmem:[%s9145_s3 + $0x478] sm:$0xff]  ;;  %v1342_v44 = vpop.permute.xlu1 %1341 }
 0x1e1   :  { %5544 = vmatpush1.bf16.msra.mxu0 %v8109_v15  ;;  %v8154_v0 = vpack.c.bf16 %v5108_v61, %v5106_v46 }
 0x1e2   :  { %5546 = vmatprep.subr.bf16.mxu0 %v8112_v38  ;;  %9392 = vst [vmem:[#allocation68_spill] sm:$0xff] %v8151_v14 }
 0x1e3   :  { %5632 = vmatpush1.bf16.msra.mxu1 %v7804_v16  ;;  %9393 = vst [vmem:[#allocation69_spill] sm:$0xff] %v8154_v0  ;;  %v5107_v16 = vld [vmem:[%s9145_s3 + $0x450] sm:$0xff] }
 0x1e4   :  { %5634 = vmatprep.subr.bf16.mxu1 %v7807_v5  ;;  %v5110_v5 = vld [vmem:[%s9145_s3 + $0x468] sm:$0xff]  ;;  %v8171_v46 = vpack.c.bf16 %v5107_v16, %v5105_v58  ;;  %v5116_v16 = vld [vmem:[%s9145_s3 + $0x498] sm:$0xff]  ;;  %v1344_v58 = vpop.permute.xlu1 %1343 }
 0x1e5   :  { %5548 = vmatpush1.bf16.msra.mxu0 %v8131_v33  ;;  %v8174_v61 = vpack.c.bf16 %v5112_v23, %v5110_v5 }
 0x1e6   :  { %5550 = vmatprep.subr.bf16.mxu0 %v8134_v4  ;;  %9394 = vst [vmem:[#allocation70_spill] sm:$0xff] %v8171_v46 }
 0x1e7   :  { %5636 = vmatpush1.bf16.msra.mxu1 %v7824_v10  ;;  %9395 = vst [vmem:[#allocation71_spill] sm:$0xff] %v8174_v61  ;;  %v5109_v10 = vld [vmem:[%s9145_s3 + $0x460] sm:$0xff] }
 0x1e8   :  { %5638 = vmatprep.subr.bf16.mxu1 %v7827_v37  ;;  %v5114_v37 = vld [vmem:[%s9145_s3 + $0x488] sm:$0xff]  ;;  %v8191_v5 = vpack.c.bf16 %v5111_v55, %v5109_v10  ;;  %v1351_v55 = vsel %vm1349_vm4, %v1342_v44, %v1344_v58  ;;  %v9400_v44 = vld [vmem:[#allocation8_spill] sm:$0xff]  ;;  %v9401_v58 = vld [vmem:[#allocation9_spill] sm:$0xff] }
 0x1e9   :  { %5552 = vmatpush1.bf16.msra.mxu0 %v8151_v14  ;;  %v8194_v23 = vpack.c.bf16 %v5116_v16, %v5114_v37  ;;  %v8213_v37 = vld [vmem:[%s9145_s3 + $0x4a8] sm:$0xff]  ;;  %v1357_v16 = vmax.f32 %v7727_v43, %v1351_v55 }
 0x1ea   :  { %5554 = vmatprep.subr.bf16.mxu0 %v8154_v0  ;;  %9396 = vst [vmem:[#allocation72_spill] sm:$0xff] %v8191_v5  ;;  %v9402_v55 = vld [vmem:[#allocation10_spill] sm:$0xff] }
 0x1eb   :  { %5640 = vmatpush1.bf16.msra.mxu1 %v7844_v45  ;;  %9397 = vst [vmem:[#allocation73_spill] sm:$0xff] %v8194_v23  ;;  %v5113_v45 = vld [vmem:[%s9145_s3 + $0x480] sm:$0xff] }
 0x1ec   :  { %5642 = vmatprep.subr.bf16.mxu1 %v7847_v35  ;;  %v8206_v10 = vpack.c.bf16 %v5115_v22, %v5113_v45  ;;  %v8222_v22 = vld [vmem:[%s9145_s3 + $0x4a0] sm:$0xff]  ;;  %v8225_v45 = vmax.f32 %v1357_v16, 0.0  ;;  %v9403_v16 = vld [vmem:[#allocation11_spill] sm:$0xff] }
 0x1ed   :  { %5556 = vmatpush1.bf16.msra.mxu0 %v8171_v46  ;;  %9399 = vst [vmem:[#allocation75_spill] sm:$0xff] %v8222_v22 }
 0x1ee   :  { %5558 = vmatprep.subr.bf16.mxu0 %v8174_v61  ;;  %9398 = vst [vmem:[#allocation74_spill] sm:$0xff] %v8206_v10  ;;  %v8268_v43 = vrot.slane %v8225_v45, 2 }
 0x1ef   :  { %5644 = vmatpush1.bf16.msra.mxu1 %v7864_v17 }
 0x1f0   :  { %5646 = vmatprep.subr.bf16.mxu1 %v7867_v40 }
 0x1f1   :  { %5560 = vmatpush1.bf16.msra.mxu0 %v8191_v5 }
 0x1f2   :  { %5562 = vmatprep.subr.bf16.mxu0 %v8194_v23 }
 0x1f3   :  { %5648 = vmatpush1.bf16.msra.mxu1 %v7878_v28 }
 0x1f4   :  { %2093 = vmatprep.subr.mxu1 %v7885_v63 }
 0x1f5   :  { %5564 = vmatpush1.bf16.msra.mxu0 %v8206_v10 }
 0x1f6   :  { %1874 = vmatprep.subr.mxu0 %v8213_v37 }
 0x1f7   :  { %2094 = vmatpush1.msra.mxu1 %v7911_v57 }
 0x1f8   :  { %5122 = vmatmul.mubr.msk.f32.vlgmr.msra.gmra.mrb[14].mxu1 %vm1414_vm5, %v8083_v41  ;;  %5650 = vmatprep.subr.bf16.mxu1 %v7913_v29 }
 0x1f9   :  { %1875 = vmatpush1.msra.mxu0 %v8222_v22  ;;  %5652 = vmatpush1.bf16.msra.mxu1 %v7916_v13 }
 0x1fa   :  { %5119 = vmatmul.mubr.msk.f32.vlgmr.msra.gmra.mrb[6].mxu0 %vm1414_vm5, %v8225_v45  ;;  %5654 = vmatprep.subr.bf16.mxu1 %v7925_v48 }
 0x1fb   :  { %2202 = vmatprep.mubr.f32.mxu1 %v9374_v3  ;;  %5253 = vmatprep.mubr.msk.f32.mxu0 %vm6829_vm6, %v9374_v3 }
 0x1fd   :  { %5656 = vmatpush1.bf16.msra.mxu1 %v7946_v6 }
 0x1fe   :  { %5658 = vmatprep.subr.bf16.mxu1 %v7949_v54 }
 0x201   :  { %5660 = vmatpush1.bf16.msra.mxu1 %v7968_v12 }
 0x202   :  { %5662 = vmatprep.subr.bf16.mxu1 %v7971_v39 }
 0x205   :  { %5664 = vmatpush1.bf16.msra.mxu1 %v7988_v60 }
 0x206   :  { %5666 = vmatprep.subr.bf16.mxu1 %v7991_v34 }
 0x209   :  { %5668 = vmatpush1.bf16.msra.mxu1 %v8008_v30 }
 0x20a   :  { %5670 = vmatprep.subr.bf16.mxu1 %v8011_v56 }
 0x20d   :  { %5672 = vmatpush1.bf16.msra.mxu1 %v8028_v52 }
 0x20e   :  { %5674 = vmatprep.subr.bf16.mxu1 %v8031_v36 }
 0x211   :  { %5676 = vmatpush1.bf16.msra.mxu1 %v8042_v9 }
 0x212   :  { %2166 = vmatprep.subr.mxu1 %v8049_v1 }
 0x215   :  { %2167 = vmatpush1.msra.mxu1 %v8075_v26 }
 0x216   :  { %5123 = vmatmul.mubr.msk.f32.vlgmr.msra.gmra.mrb[14].mxu1 %vm1414_vm5, %v8225_v45  ;;  %5678 = vmatprep.subr.bf16.mxu1 %v8077_v2 }
 0x217   :  { %5680 = vmatpush1.bf16.msra.mxu1 %v8080_v42  ;;  %2278 = vmatprep.mubr.f32.mxu1 %v9374_v3 }
 0x218   :  { %5682 = vmatprep.subr.bf16.mxu1 %v8088_v18 }
 0x21b   :  { %5684 = vmatpush1.bf16.msra.mxu1 %v8109_v15 }
 0x21c   :  { %5686 = vmatprep.subr.bf16.mxu1 %v8112_v38 }
 0x21f   :  { %5688 = vmatpush1.bf16.msra.mxu1 %v8131_v33 }
 0x220   :  { %5690 = vmatprep.subr.bf16.mxu1 %v8134_v4 }
 0x223   :  { %5692 = vmatpush1.bf16.msra.mxu1 %v8151_v14 }
 0x224   :  { %5694 = vmatprep.subr.bf16.mxu1 %v8154_v0 }
 0x227   :  { %5696 = vmatpush1.bf16.msra.mxu1 %v8171_v46 }
 0x228   :  { %5698 = vmatprep.subr.bf16.mxu1 %v8174_v61 }
 0x22b   :  { %5700 = vmatpush1.bf16.msra.mxu1 %v8191_v5 }
 0x22c   :  { %5702 = vmatprep.subr.bf16.mxu1 %v8194_v23 }
 0x22f   :  { %5704 = vmatpush1.bf16.msra.mxu1 %v8206_v10 }
 0x230   :  { %2242 = vmatprep.subr.mxu1 %v8213_v37 }
 0x233   :  { %2243 = vmatpush1.msra.mxu1 %v8222_v22 }
 0x234   :  { %5124 = vmatmul.mubr.msk.f32.vlgmr.msra.gmra.mrb[14].mxu1 %vm1414_vm5, %v8268_v43  ;;  %5721 = vmatprep.subr.bf16.mxu1 %v7419_v20 }
 0x235   :  { %5723 = vmatpush1.bf16.msra.mxu1 %v7430_v49  ;;  %2449 = vmatprep.mubr.f32.mxu1 %v9374_v3 }
 0x236   :  { %5725 = vmatprep.subr.bf16.mxu1 %v7457_v24 }
 0x239   :  { %5727 = vmatpush1.bf16.msra.mxu1 %v7459_v25 }
 0x23a   :  { %5729 = vmatprep.subr.bf16.mxu1 %v7485_v32 }
 0x23d   :  { %5731 = vmatpush1.bf16.msra.mxu1 %v7507_v31 }
 0x23e   :  { %5733 = vmatprep.subr.bf16.mxu1 %v7524_v21 }
 0x241   :  { %5735 = vmatpush1.bf16.msra.mxu1 %v7551_v62 }
 0x242   :  { %5737 = vmatprep.subr.bf16.mxu1 %v7563_v47 }
 0x245   :  { %5739 = vmatpush1.bf16.msra.mxu1 %v7587_v19 }
 0x246   :  { %5741 = vmatprep.subr.bf16.mxu1 %v7593_v59  ;;  %v9412_v59 = vld [vmem:[#allocation27_spill] sm:$0xff] }
 0x249   :  { %5743 = vmatpush1.bf16.msra.mxu1 %v7603_v27  ;;  %v9408_v27 = vld [vmem:[#allocation17_spill] sm:$0xff] }
 0x24a   :  { %5745 = vmatprep.subr.bf16.mxu1 %v7662_v11  ;;  %v9404_v11 = vld [vmem:[#allocation12_spill] sm:$0xff] }
 0x24d   :  { %5747 = vmatpush1.bf16.msra.mxu1 %v7664_v53  ;;  %v9405_v53 = vld [vmem:[#allocation13_spill] sm:$0xff] }
 0x24e   :  { %2413 = vmatprep.subr.mxu1 %v7690_v50  ;;  %v9406_v50 = vld [vmem:[#allocation14_spill] sm:$0xff] }
 0x251   :  { %2414 = vmatpush1.msra.mxu1 %v7696_v7  ;;  %v9407_v7 = vld [vmem:[#allocation15_spill] sm:$0xff] }
 0x252   :  { %5126 = vmatmul.mubr.msk.f32.vlgmr.msra.gmra.mrb[16].mxu1 %vm1414_vm5, %v7919_v8  ;;  %5749 = vmatprep.subr.bf16.mxu1 %v9400_v44  ;;  %v9409_v8 = vld [vmem:[#allocation19_spill] sm:$0xff] }
 0x253   :  { %5751 = vmatpush1.bf16.msra.mxu1 %v9401_v58  ;;  %2522 = vmatprep.mubr.f32.mxu1 %v9374_v3  ;;  %v9410_v44 = vld [vmem:[#allocation23_spill] sm:$0xff]  ;;  %v9411_v58 = vld [vmem:[#allocation24_spill] sm:$0xff] }
 0x254   :  { %5753 = vmatprep.subr.bf16.mxu1 %v9402_v55  ;;  %v9413_v55 = vld [vmem:[#allocation28_spill] sm:$0xff] }
 0x257   :  { %5755 = vmatpush1.bf16.msra.mxu1 %v9403_v16  ;;  %v9414_v16 = vld [vmem:[#allocation31_spill] sm:$0xff] }
 0x258   :  { %5757 = vmatprep.subr.bf16.mxu1 %v9404_v11 }
 0x25b   :  { %5759 = vmatpush1.bf16.msra.mxu1 %v9405_v53 }
 0x25c   :  { %5761 = vmatprep.subr.bf16.mxu1 %v9406_v50 }
 0x25f   :  { %5763 = vmatpush1.bf16.msra.mxu1 %v9407_v7  ;;  %v9415_v7 = vld [vmem:[#allocation33_spill] sm:$0xff] }
 0x260   :  { %5765 = vmatprep.subr.bf16.mxu1 %v9408_v27  ;;  %v9416_v27 = vld [vmem:[#allocation36_spill] sm:$0xff] }
 0x263   :  { %5767 = vmatpush1.bf16.msra.mxu1 %v9409_v8 }
 0x264   :  { %5769 = vmatprep.subr.bf16.mxu1 %v9410_v44  ;;  %v9421_v44 = vld [vmem:[#allocation41_spill] sm:$0xff] }
 0x267   :  { %5771 = vmatpush1.bf16.msra.mxu1 %v9411_v58 }
 0x268   :  { %5773 = vmatprep.subr.bf16.mxu1 %v9412_v59  ;;  %v9417_v59 = vld [vmem:[#allocation37_spill] sm:$0xff] }
 0x26b   :  { %5775 = vmatpush1.bf16.msra.mxu1 %v9413_v55  ;;  %v9418_v55 = vld [vmem:[#allocation38_spill] sm:$0xff] }
 0x26c   :  { %2486 = vmatprep.subr.mxu1 %v9414_v16  ;;  %v9419_v16 = vld [vmem:[#allocation39_spill] sm:$0xff] }
 0x26f   :  { %2487 = vmatpush1.msra.mxu1 %v7716_v51  ;;  %v9420_v51 = vld [vmem:[#allocation40_spill] sm:$0xff] }
 0x270   :  { %5127 = vmatmul.mubr.msk.f32.vlgmr.msra.gmra.mrb[16].mxu1 %vm1414_vm5, %v8083_v41  ;;  %5777 = vmatprep.subr.bf16.mxu1 %v9415_v7  ;;  %v9422_v41 = vld [vmem:[#allocation42_spill] sm:$0xff]  ;;  %v9423_v7 = vld [vmem:[#allocation43_spill] sm:$0xff] }
 0x271   :  { %5779 = vmatpush1.bf16.msra.mxu1 %v9416_v27  ;;  %v8313_v8 = vpop.f32.mrb[12].mxu1  ;;  %2595 = vmatprep.mubr.f32.mxu1 %v9374_v3  ;;  %v9424_v27 = vld [vmem:[#allocation44_spill] sm:$0xff] }
 0x272   :  { %v8316_v58 = vpop.f32.mrb[13].mxu1  ;;  %5781 = vmatprep.subr.bf16.mxu1 %v9417_v59 }
 0x275   :  { %5783 = vmatpush1.bf16.msra.mxu1 %v9418_v55 }
 0x276   :  { %5785 = vmatprep.subr.bf16.mxu1 %v9419_v16 }
 0x279   :  { %5787 = vmatpush1.bf16.msra.mxu1 %v9420_v51 }
 0x27a   :  { %5789 = vmatprep.subr.bf16.mxu1 %v9421_v44 }
 0x27d   :  { %5791 = vmatpush1.bf16.msra.mxu1 %v9422_v41 }
 0x27e   :  { %5793 = vmatprep.subr.bf16.mxu1 %v9423_v7 }
 0x281   :  { %5795 = vmatpush1.bf16.msra.mxu1 %v9424_v27 }
 0x282   :  { %5797 = vmatprep.subr.bf16.mxu1 %v7847_v35 }
 0x285   :  { %5799 = vmatpush1.bf16.msra.mxu1 %v7864_v17 }
 0x286   :  { %5801 = vmatprep.subr.bf16.mxu1 %v7867_v40 }
 0x289   :  { %5803 = vmatpush1.bf16.msra.mxu1 %v7878_v28 }
 0x28a   :  { %2559 = vmatprep.subr.mxu1 %v7885_v63 }
 0x28d   :  { %2560 = vmatpush1.msra.mxu1 %v7911_v57 }
 0x28e   :  { %5128 = vmatmul.mubr.msk.f32.vlgmr.msra.gmra.mrb[16].mxu1 %vm1414_vm5, %v8225_v45  ;;  %5805 = vmatprep.subr.bf16.mxu1 %v7913_v29 }
 0x28f   :  { %5807 = vmatpush1.bf16.msra.mxu1 %v7916_v13  ;;  %2668 = vmatprep.mubr.f32.mxu1 %v9374_v3 }
 0x290   :  { %5809 = vmatprep.subr.bf16.mxu1 %v7925_v48 }
 0x293   :  { %5811 = vmatpush1.bf16.msra.mxu1 %v7946_v6 }
 0x294   :  { %5813 = vmatprep.subr.bf16.mxu1 %v7949_v54 }
 0x297   :  { %5815 = vmatpush1.bf16.msra.mxu1 %v7968_v12 }
 0x298   :  { %5817 = vmatprep.subr.bf16.mxu1 %v7971_v39 }
 0x29b   :  { %5819 = vmatpush1.bf16.msra.mxu1 %v7988_v60 }
 0x29c   :  { %5821 = vmatprep.subr.bf16.mxu1 %v7991_v34 }
 0x29f   :  { %5823 = vmatpush1.bf16.msra.mxu1 %v8008_v30 }
 0x2a0   :  { %5825 = vmatprep.subr.bf16.mxu1 %v8011_v56 }
 0x2a3   :  { %5827 = vmatpush1.bf16.msra.mxu1 %v8028_v52 }
 0x2a4   :  { %5829 = vmatprep.subr.bf16.mxu1 %v8031_v36 }
 0x2a7   :  { %5831 = vmatpush1.bf16.msra.mxu1 %v8042_v9 }
 0x2a8   :  { %2632 = vmatprep.subr.mxu1 %v8049_v1 }
 0x2ab   :  { %2633 = vmatpush1.msra.mxu1 %v8075_v26 }
 0x2ac   :  { %5129 = vmatmul.mubr.msk.f32.vlgmr.msra.gmra.mrb[16].mxu1 %vm1414_vm5, %v8268_v43  ;;  %5833 = vmatprep.subr.bf16.mxu1 %v8077_v2 }
 0x2ad   :  { %5835 = vmatpush1.bf16.msra.mxu1 %v8080_v42  ;;  %2744 = vmatprep.mubr.f32.mxu1 %v9374_v3 }
 0x2ae   :  { %5837 = vmatprep.subr.bf16.mxu1 %v8088_v18 }
 0x2b1   :  { %5839 = vmatpush1.bf16.msra.mxu1 %v8109_v15 }
 0x2b2   :  { %5841 = vmatprep.subr.bf16.mxu1 %v8112_v38  ;;  %v2300_v38 = vld [vmem:[%s9147_s5] sm:$0xff] }
 0x2b5   :  { %5843 = vmatpush1.bf16.msra.mxu1 %v8131_v33  ;;  %v9425_v33 = vld [vmem:[#allocation5_spill] sm:$0xff] }
 0x2b6   :  { %5845 = vmatprep.subr.bf16.mxu1 %v8134_v4  ;;  %v2301_v4 = vld [vmem:[%s9147_s5 + $0x8] sm:$0xff]  ;;  %v9426_v15 = vsub.s32 0, %v9425_v33 }
 0x2b9   :  { %5847 = vmatpush1.bf16.msra.mxu1 %v8151_v14  ;;  %v9245_v14 = vmov 0.0|0.0  }
 0x2ba   :  { %5849 = vmatprep.subr.bf16.mxu1 %v8154_v0  ;;  %v2302_v0 = vld [vmem:[%s9147_s5 + $0x10] sm:$0xff]  ;;  %5705 = vmatprep.subr.bf16.mxu0 %v9245_v14 }
 0x2bd   :  { %5851 = vmatpush1.bf16.msra.mxu1 %v8171_v46 }
 0x2be   :  { %5853 = vmatprep.subr.bf16.mxu1 %v8174_v61  ;;  %v5706_v61 = vpack.c.bf16 %v2301_v4, %v2300_v38  ;;  %v2304_v38 = vld [vmem:[%s9147_s5 + $0x20] sm:$0xff]  ;;  %v2305_v4 = vld [vmem:[%s9147_s5 + $0x28] sm:$0xff] }
 0x2c0   :  { %5707 = vmatpush3.bf16.msra.mxu0 %v5706_v61 }
 0x2c1   :  { %5855 = vmatpush1.bf16.msra.mxu1 %v8191_v5  ;;  %v1370_v5 = vld [vmem:[%s9146_s4] sm:$0x3]  ;;  %5708 = vmatprep.subr.bf16.mxu0 %v9245_v14  ;;  %v2307_v14 = vld [vmem:[%s9147_s5 + $0x38] sm:$0xff] }
 0x2c2   :  { %5857 = vmatprep.subr.bf16.mxu1 %v8194_v23  ;;  %v2303_v23 = vld [vmem:[%s9147_s5 + $0x18] sm:$0xff]  ;;  %v8394_v18 = vrot.slane %v1370_v5, %v9426_v15  ;;  %v2306_v15 = vld [vmem:[%s9147_s5 + $0x30] sm:$0xff] }
 0x2c3   :  { %v5709_v46 = vpack.c.bf16 %v2303_v23, %v2302_v0  ;;  %v9428_v0 = vsub.s32 1, %v9425_v33  ;;  %v5712_v23 = vpack.c.bf16 %v2305_v4, %v2304_v38  ;;  %v5715_v4 = vpack.c.bf16 %v2307_v14, %v2306_v15  ;;  %v9431_v14 = vld [vmem:[#allocation20_spill] sm:$0xff]  ;;  %v9436_v15 = vld [vmem:[#allocation30_spill] sm:$0xff] }
 0x2c4   :  { %9427 = vst [vmem:[#allocation37_spill] sm:$0xff] %v8394_v18  ;;  %v1489_v33 = vadd.f32 %v8313_v8, %v8394_v18  ;;  %v9434_v8 = vld [vmem:[#allocation26_spill] sm:$0xff] }
 0x2c5   :  { %5859 = vmatpush1.bf16.msra.mxu1 %v8206_v10  ;;  %v8397_v10 = vrot.slane %v8225_v45, 4  ;;  %v8401_v61 = vrot.slane %v1370_v5, %v9428_v0  ;;  %5710 = vmatpush3.bf16.msra.mxu0 %v5709_v46  ;;  %v9430_v46 = vmov 0.0|0.0  }
 0x2c6   :  { %2708 = vmatprep.subr.mxu1 %v8213_v37  ;;  %5711 = vmatprep.subr.bf16.mxu0 %v9430_v46 }
 0x2c7   :  { %9429 = vst [vmem:[#allocation38_spill] sm:$0xff] %v8401_v61  ;;  %v1490_v5 = vadd.f32 %v8316_v58, %v8401_v61  ;;  %v9433_v58 = vld [vmem:[#allocation25_spill] sm:$0xff] }
 0x2c9   :  { %2709 = vmatpush1.msra.mxu1 %v8222_v22  ;;  %5713 = vmatpush3.bf16.msra.mxu0 %v5712_v23  ;;  %v9435_v23 = vld [vmem:[#allocation29_spill] sm:$0xff] }
 0x2ca   :  { %5130 = vmatmul.mubr.msk.f32.vlgmr.msra.gmra.mrb[16].mxu1 %vm1414_vm5, %v8397_v10  ;;  %6016 = vmatprep.subr.bf16.mxu1 %v7419_v20 }
 0x2cb   :  { %6018 = vmatpush1.bf16.msra.mxu1 %v7430_v49  ;;  %3282 = vmatprep.mubr.f32.mxu1 %v9374_v3 }
 0x2cc   :  { %6020 = vmatprep.subr.bf16.mxu1 %v7457_v24  ;;  %5714 = vmatprep.subr.bf16.mxu0 %v9430_v46 }
 0x2cd   :  { %v1912_v38 = vpop.f32.mrb[6].mxu0  ;;  %5716 = vmatpush3.bf16.msra.mxu0 %v5715_v4  ;;  %v9440_v4 = vld [vmem:[#allocation11_spill] sm:$0xff] }
 0x2ce   :  { %v6624_v0 = vadd.f32 %v1912_v38, %v1489_v33  ;;  %v1914_v22 = vpop.f32.mrb[7].mxu0  ;;  %5717 = vmatprep.subr.bf16.mxu0 %v9430_v46  ;;  %v9437_v33 = vld [vmem:[#allocation8_spill] sm:$0xff]  ;;  %v9439_v38 = vld [vmem:[#allocation10_spill] sm:$0xff]  ;;  %v9443_v46 = vld [vmem:[#allocation19_spill] sm:$0xff] }
 0x2cf   :  { %v6626_v49 = vadd.f32 %v1914_v22, %v1490_v5  ;;  %6022 = vmatpush1.bf16.msra.mxu1 %v7459_v25  ;;  %v9432_v22 = vld [vmem:[#allocation21_spill] sm:$0xff] }
 0x2d0   :  { %6024 = vmatprep.subr.bf16.mxu1 %v7485_v32  ;;  %v9438_v5 = vld [vmem:[#allocation9_spill] sm:$0xff] }
 0x2d3   :  { %6026 = vmatpush1.bf16.msra.mxu1 %v7507_v31 }
 0x2d4   :  { %6028 = vmatprep.subr.bf16.mxu1 %v7524_v21 }
 0x2d7   :  { %6030 = vmatpush1.bf16.msra.mxu1 %v7551_v62 }
 0x2d8   :  { %6032 = vmatprep.subr.bf16.mxu1 %v7563_v47 }
 0x2db   :  { %6034 = vmatpush1.bf16.msra.mxu1 %v7587_v19 }
 0x2dc   :  { %6036 = vmatprep.subr.bf16.mxu1 %v9431_v14 }
 0x2df   :  { %6038 = vmatpush1.bf16.msra.mxu1 %v9432_v22 }
 0x2e0   :  { %6040 = vmatprep.subr.bf16.mxu1 %v9433_v58 }
 0x2e3   :  { %6042 = vmatpush1.bf16.msra.mxu1 %v9434_v8  ;;  %v9446_v8 = vld [vmem:[#allocation27_spill] sm:$0xff] }
 0x2e4   :  { %3246 = vmatprep.subr.mxu1 %v9435_v23  ;;  %v9441_v23 = vld [vmem:[#allocation15_spill] sm:$0xff] }
 0x2e7   :  { %3247 = vmatpush1.msra.mxu1 %v9436_v15  ;;  %v9442_v15 = vld [vmem:[#allocation17_spill] sm:$0xff] }
 0x2e8   :  { %5147 = vmatmul.mubr.msk.f32.vlgmr.msra.gmra.mrb[18].mxu1 %vm1414_vm5, %v8225_v45  ;;  %6044 = vmatprep.subr.bf16.mxu1 %v9437_v33  ;;  %v9444_v33 = vld [vmem:[#allocation23_spill] sm:$0xff] }
 0x2e9   :  { %6046 = vmatpush1.bf16.msra.mxu1 %v9438_v5  ;;  %3355 = vmatprep.mubr.f32.mxu1 %v9374_v3  ;;  %v9445_v5 = vld [vmem:[#allocation24_spill] sm:$0xff] }
 0x2ea   :  { %6048 = vmatprep.subr.bf16.mxu1 %v9439_v38 }
 0x2ed   :  { %6050 = vmatpush1.bf16.msra.mxu1 %v9440_v4 }
 0x2ee   :  { %6052 = vmatprep.subr.bf16.mxu1 %v9404_v11  ;;  %v2308_v11 = vld [vmem:[%s9147_s5 + $0x40] sm:$0xff] }
 0x2f1   :  { %6054 = vmatpush1.bf16.msra.mxu1 %v9405_v53 }
 0x2f2   :  { %6056 = vmatprep.subr.bf16.mxu1 %v9406_v50  ;;  %v2309_v50 = vld [vmem:[%s9147_s5 + $0x48] sm:$0xff] }
 0x2f3   :  { %v5718_v53 = vpack.c.bf16 %v2309_v50, %v2308_v11  ;;  %v9451_v11 = vld [vmem:[#allocation36_spill] sm:$0xff] }
 0x2f5   :  { %6058 = vmatpush1.bf16.msra.mxu1 %v9441_v23  ;;  %v9447_v23 = vld [vmem:[#allocation28_spill] sm:$0xff]  ;;  %5719 = vmatpush3.bf16.msra.mxu0 %v5718_v53 }
 0x2f6   :  { %6060 = vmatprep.subr.bf16.mxu1 %v9442_v15  ;;  %v9448_v15 = vld [vmem:[#allocation31_spill] sm:$0xff]  ;;  %5861 = vmatprep.subr.bf16.mxu0 %v7419_v20 }
 0x2f9   :  { %6062 = vmatpush1.bf16.msra.mxu1 %v9443_v46 }
 0x2fa   :  { %6064 = vmatprep.subr.bf16.mxu1 %v9444_v33 }
 0x2fd   :  { %6066 = vmatpush1.bf16.msra.mxu1 %v9445_v5  ;;  %v9450_v5 = vld [vmem:[#allocation33_spill] sm:$0xff] }
 0x2fe   :  { %6068 = vmatprep.subr.bf16.mxu1 %v9446_v8  ;;  %v9449_v8 = vld [vmem:[#allocation32_spill] sm:$0xff] }
 0x301   :  { %6070 = vmatpush1.bf16.msra.mxu1 %v9447_v23 }
 0x302   :  { %3319 = vmatprep.subr.mxu1 %v9448_v15 }
 0x305   :  { %3320 = vmatpush1.msra.mxu1 %v9449_v8  ;;  %v9455_v8 = vld [vmem:[#allocation65_spill] sm:$0xff] }
 0x306   :  { %5148 = vmatmul.mubr.msk.f32.vlgmr.msra.gmra.mrb[18].mxu1 %vm1414_vm5, %v8268_v43  ;;  %6072 = vmatprep.subr.bf16.mxu1 %v9450_v5 }
 0x307   :  { %v2280_v33 = vpop.f32.mrb[14].mxu1  ;;  %6074 = vmatpush1.bf16.msra.mxu1 %v9451_v11  ;;  %3428 = vmatprep.mubr.f32.mxu1 %v9374_v3 }
 0x308   :  { %v6627_v53 = vadd.f32 %v2280_v33, %v8394_v18  ;;  %v2282_v50 = vpop.f32.mrb[15].mxu1  ;;  %6076 = vmatprep.subr.bf16.mxu1 %v9417_v59  ;;  %v9456_v33 = vld [vmem:[#allocation66_spill] sm:$0xff]  ;;  %v9461_v18 = vld [vmem:[#allocation71_spill] sm:$0xff] }
 0x309   :  { %v6628_v15 = vadd.f32 %v2282_v50, %v8401_v61  ;;  %v9458_v50 = vld [vmem:[#allocation68_spill] sm:$0xff]  ;;  %v9460_v61 = vld [vmem:[#allocation70_spill] sm:$0xff] }
 0x30a   :  { %v2287_v23 = vmax.f32 %v6624_v0, %v6627_v53  ;;  %v9454_v0 = vld [vmem:[#allocation64_spill] sm:$0xff]  ;;  %v9457_v53 = vld [vmem:[#allocation67_spill] sm:$0xff] }
 0x30b   :  { %v2288_v46 = vmax.f32 %v6626_v49, %v6628_v15  ;;  %6078 = vmatpush1.bf16.msra.mxu1 %v9418_v55  ;;  %v8506_v49 = vrot.slane %v8225_v45, 6  ;;  %v9459_v15 = vld [vmem:[#allocation69_spill] sm:$0xff] }
 0x30c   :  { %2291 = vrot.lane.b32.xlu0 %v2287_v23, %s6830_s1  ;;  %6080 = vmatprep.subr.bf16.mxu1 %v9419_v16 }
 0x30d   :  { %2293 = vrot.lane.b32.xlu1 %v2288_v46, %s6830_s1  ;;  %9452 = vst [vmem:[#allocation39_spill] sm:$0xff] %v8506_v49  ;;  %v9453_v46 = vld [vmem:[#allocation63_spill] sm:$0xff] }
 0x30f   :  { %6082 = vmatpush1.bf16.msra.mxu1 %v9420_v51 }
 0x310   :  { %6084 = vmatprep.subr.bf16.mxu1 %v9421_v44 }
 0x313   :  { %6086 = vmatpush1.bf16.msra.mxu1 %v9422_v41 }
 0x314   :  { %6088 = vmatprep.subr.bf16.mxu1 %v9423_v7 }
 0x317   :  { %6090 = vmatpush1.bf16.msra.mxu1 %v9424_v27 }
 0x318   :  { %6092 = vmatprep.subr.bf16.mxu1 %v7847_v35 }
 0x31b   :  { %6094 = vmatpush1.bf16.msra.mxu1 %v7864_v17 }
 0x31c   :  { %6096 = vmatprep.subr.bf16.mxu1 %v7867_v40 }
 0x31f   :  { %6098 = vmatpush1.bf16.msra.mxu1 %v7878_v28 }
 0x320   :  { %3392 = vmatprep.subr.mxu1 %v7885_v63 }
 0x323   :  { %3393 = vmatpush1.msra.mxu1 %v7911_v57 }
 0x324   :  { %5149 = vmatmul.mubr.msk.f32.vlgmr.msra.gmra.mrb[18].mxu1 %vm1414_vm5, %v8397_v10  ;;  %6100 = vmatprep.subr.bf16.mxu1 %v7913_v29 }
 0x325   :  { %6102 = vmatpush1.bf16.msra.mxu1 %v7916_v13  ;;  %3501 = vmatprep.mubr.f32.mxu1 %v9374_v3 }
 0x326   :  { %6104 = vmatprep.subr.bf16.mxu1 %v7925_v48 }
 0x329   :  { %6106 = vmatpush1.bf16.msra.mxu1 %v7946_v6 }
 0x32a   :  { %6108 = vmatprep.subr.bf16.mxu1 %v7949_v54 }
 0x32d   :  { %6110 = vmatpush1.bf16.msra.mxu1 %v7968_v12 }
 0x32e   :  { %6112 = vmatprep.subr.bf16.mxu1 %v7971_v39 }
 0x331   :  { %6114 = vmatpush1.bf16.msra.mxu1 %v7988_v60 }
 0x332   :  { %6116 = vmatprep.subr.bf16.mxu1 %v7991_v34 }
 0x335   :  { %6118 = vmatpush1.bf16.msra.mxu1 %v8008_v30 }
 0x336   :  { %6120 = vmatprep.subr.bf16.mxu1 %v8011_v56 }
 0x339   :  { %6122 = vmatpush1.bf16.msra.mxu1 %v8028_v52 }
 0x33a   :  { %6124 = vmatprep.subr.bf16.mxu1 %v8031_v36 }
 0x33d   :  { %6126 = vmatpush1.bf16.msra.mxu1 %v8042_v9 }
 0x33e   :  { %3465 = vmatprep.subr.mxu1 %v8049_v1 }
 0x341   :  { %3466 = vmatpush1.msra.mxu1 %v8075_v26 }
 0x342   :  { %5150 = vmatmul.mubr.msk.f32.vlgmr.msra.gmra.mrb[18].mxu1 %vm1414_vm5, %v8506_v49  ;;  %6128 = vmatprep.subr.bf16.mxu1 %v8077_v2  ;;  %v9462_v49 = vld [vmem:[#allocation72_spill] sm:$0xff] }
 0x343   :  { %6130 = vmatpush1.bf16.msra.mxu1 %v8080_v42  ;;  %3577 = vmatprep.mubr.f32.mxu1 %v9374_v3  ;;  %v9463_v42 = vld [vmem:[#allocation73_spill] sm:$0xff] }
 0x344   :  { %6132 = vmatprep.subr.bf16.mxu1 %v9453_v46  ;;  %v9464_v46 = vld [vmem:[#allocation74_spill] sm:$0xff] }
 0x347   :  { %6134 = vmatpush1.bf16.msra.mxu1 %v9454_v0 }
 0x348   :  { %6136 = vmatprep.subr.bf16.mxu1 %v9455_v8  ;;  %v9465_v8 = vld [vmem:[#allocation75_spill] sm:$0xff] }
 0x34b   :  { %6138 = vmatpush1.bf16.msra.mxu1 %v9456_v33 }
 0x34c   :  { %6140 = vmatprep.subr.bf16.mxu1 %v9457_v53 }
 0x34f   :  { %6142 = vmatpush1.bf16.msra.mxu1 %v9458_v50 }
 0x350   :  { %6144 = vmatprep.subr.bf16.mxu1 %v9459_v15 }
 0x353   :  { %6146 = vmatpush1.bf16.msra.mxu1 %v9460_v61 }
 0x354   :  { %6148 = vmatprep.subr.bf16.mxu1 %v9461_v18 }
 0x357   :  { %6150 = vmatpush1.bf16.msra.mxu1 %v9462_v49  ;;  %v9466_v49 = vld [vmem:[#allocation7_spill] sm:$0xff] }
 0x358   :  { %6152 = vmatprep.subr.bf16.mxu1 %v9463_v42 }
 0x35b   :  { %6154 = vmatpush1.bf16.msra.mxu1 %v9464_v46 }
 0x35c   :  { %3541 = vmatprep.subr.mxu1 %v8213_v37 }
 0x35f   :  { %3542 = vmatpush1.msra.mxu1 %v9465_v8 }
 0x360   :  { %6311 = vmatprep.subr.bf16.mxu1 %v7419_v20 }
 0x37e   :  { %v2292_v50 = vpop.permute.xlu0 %2291 }
 0x37f   :  { %v2294_v53 = vpop.permute.xlu1 %2293 }
 0x380   :  { %v2296_v15 = vsel %vm2295_vm7, %v2292_v50, %v2294_v53  ;;  %v8552_v53 = vld [vmem:[%s9145_s3 + $0xe8] sm:$0xff]  ;;  %v8558_v50 = vld [vmem:[%s9145_s3 + $0xe0] sm:$0xff] }
 0x381   :  { %v2298_v61 = vmax.f32 %v2287_v23, %v2296_v15  ;;  %9468 = vst [vmem:[#allocation40_spill] sm:$0xff] %v8552_v53  ;;  %9469 = vst [vmem:[#allocation41_spill] sm:$0xff] %v8558_v50  ;;  %v9470_v15 = vld [vmem:[#allocation62_spill] sm:$0xff] }
 0x383   :  { %v2299_v18 = vmax.f32 %v2298_v61, 0.0  ;;  %v9467_v61 = vld [vmem:[#allocation26_spill] sm:$0xff] }
 0x385   :  { %5254 = vmatmul.mubr.msk.f32.vlgmr.msra.gmra.mrb[8].mxu0 %vm2310_vm8, %v2299_v18 }
 0x386   :  { %5863 = vmatpush1.bf16.msra.mxu0 %v9466_v49  ;;  %2817 = vmatprep.mubr.f32.mxu0 %v9374_v3 }
 0x387   :  { %5865 = vmatprep.subr.bf16.mxu0 %v7457_v24 }
 0x38a   :  { %5867 = vmatpush1.bf16.msra.mxu0 %v7459_v25 }
 0x38b   :  { %5869 = vmatprep.subr.bf16.mxu0 %v7485_v32 }
 0x38e   :  { %5871 = vmatpush1.bf16.msra.mxu0 %v7507_v31 }
 0x38f   :  { %5873 = vmatprep.subr.bf16.mxu0 %v7524_v21 }
 0x392   :  { %5875 = vmatpush1.bf16.msra.mxu0 %v7551_v62 }
 0x393   :  { %5877 = vmatprep.subr.bf16.mxu0 %v7563_v47  ;;  %v9481_v47 = vld [vmem:[#allocation27_spill] sm:$0xff] }
 0x396   :  { %5879 = vmatpush1.bf16.msra.mxu0 %v7587_v19  ;;  %v9477_v19 = vld [vmem:[#allocation17_spill] sm:$0xff] }
 0x397   :  { %5881 = vmatprep.subr.bf16.mxu0 %v9431_v14  ;;  %v9475_v14 = vld [vmem:[#allocation14_spill] sm:$0xff] }
 0x39a   :  { %5883 = vmatpush1.bf16.msra.mxu0 %v9432_v22  ;;  %v9474_v22 = vld [vmem:[#allocation13_spill] sm:$0xff] }
 0x39b   :  { %5885 = vmatprep.subr.bf16.mxu0 %v9433_v58  ;;  %v9472_v58 = vld [vmem:[#allocation9_spill] sm:$0xff] }
 0x39d   :  { %v8544_v18 = vpop.f32.mrb[16].mxu1 }
 0x39e   :  { %5887 = vmatpush1.bf16.msra.mxu0 %v9467_v61  ;;  %v8547_v23 = vpop.f32.mrb[17].mxu1  ;;  %v9471_v61 = vld [vmem:[#allocation8_spill] sm:$0xff] }
 0x39f   :  { %2781 = vmatprep.subr.mxu0 %v8552_v53  ;;  %v9473_v53 = vld [vmem:[#allocation12_spill] sm:$0xff] }
 0x3a2   :  { %2782 = vmatpush1.msra.mxu0 %v8558_v50  ;;  %v9476_v50 = vld [vmem:[#allocation15_spill] sm:$0xff] }
 0x3a3   :  { %5131 = vmatmul.mubr.msk.f32.vlgmr.msra.gmra.mrb[10].mxu0 %vm1414_vm5, %v9470_v15  ;;  %5889 = vmatprep.subr.bf16.mxu0 %v9471_v61  ;;  %v9478_v15 = vld [vmem:[#allocation19_spill] sm:$0xff] }
 0x3a4   :  { %5891 = vmatpush1.bf16.msra.mxu0 %v9472_v58  ;;  %2890 = vmatprep.mubr.f32.mxu0 %v9374_v3  ;;  %v9479_v61 = vld [vmem:[#allocation23_spill] sm:$0xff]  ;;  %v9480_v58 = vld [vmem:[#allocation24_spill] sm:$0xff] }
 0x3a5   :  { %5893 = vmatprep.subr.bf16.mxu0 %v9439_v38  ;;  %v9482_v38 = vld [vmem:[#allocation28_spill] sm:$0xff] }
 0x3a8   :  { %5895 = vmatpush1.bf16.msra.mxu0 %v9440_v4 }
 0x3a9   :  { %5897 = vmatprep.subr.bf16.mxu0 %v9473_v53 }
 0x3ac   :  { %5899 = vmatpush1.bf16.msra.mxu0 %v9474_v22  ;;  %v8581_v22 = vld [vmem:[%s9145_s3 + $0x1d8] sm:$0xff] }
 0x3ad   :  { %5901 = vmatprep.subr.bf16.mxu0 %v9475_v14 }
 0x3b0   :  { %5903 = vmatpush1.bf16.msra.mxu0 %v9476_v50 }
 0x3b1   :  { %5905 = vmatprep.subr.bf16.mxu0 %v9477_v19  ;;  %v8587_v19 = vld [vmem:[%s9145_s3 + $0x1d0] sm:$0xff] }
 0x3b4   :  { %5907 = vmatpush1.bf16.msra.mxu0 %v9478_v15 }
 0x3b5   :  { %5909 = vmatprep.subr.bf16.mxu0 %v9479_v61 }
 0x3b8   :  { %5911 = vmatpush1.bf16.msra.mxu0 %v9480_v58 }
 0x3b9   :  { %5913 = vmatprep.subr.bf16.mxu0 %v9481_v47 }
 0x3bc   :  { %5915 = vmatpush1.bf16.msra.mxu0 %v9482_v38 }
 0x3bd   :  { %2854 = vmatprep.subr.mxu0 %v8581_v22 }
 0x3c0   :  { %2855 = vmatpush1.msra.mxu0 %v8587_v19 }
 0x3c1   :  { %5132 = vmatmul.mubr.msk.f32.vlgmr.msra.gmra.mrb[10].mxu0 %vm1414_vm5, %v8225_v45  ;;  %5917 = vmatprep.subr.bf16.mxu0 %v9450_v5  ;;  %v9485_v45 = vld [vmem:[#allocation65_spill] sm:$0xff] }
 0x3c2   :  { %5919 = vmatpush1.bf16.msra.mxu0 %v9451_v11  ;;  %2963 = vmatprep.mubr.f32.mxu0 %v9374_v3 }
 0x3c3   :  { %5921 = vmatprep.subr.bf16.mxu0 %v9417_v59 }
 0x3c6   :  { %5923 = vmatpush1.bf16.msra.mxu0 %v9418_v55 }
 0x3c7   :  { %5925 = vmatprep.subr.bf16.mxu0 %v9419_v16 }
 0x3ca   :  { %5927 = vmatpush1.bf16.msra.mxu0 %v9420_v51 }
 0x3cb   :  { %5929 = vmatprep.subr.bf16.mxu0 %v9421_v44 }
 0x3ce   :  { %5931 = vmatpush1.bf16.msra.mxu0 %v9422_v41 }
 0x3cf   :  { %5933 = vmatprep.subr.bf16.mxu0 %v9423_v7 }
 0x3d2   :  { %5935 = vmatpush1.bf16.msra.mxu0 %v9424_v27 }
 0x3d3   :  { %5937 = vmatprep.subr.bf16.mxu0 %v7847_v35 }
 0x3d6   :  { %5939 = vmatpush1.bf16.msra.mxu0 %v7864_v17 }
 0x3d7   :  { %5941 = vmatprep.subr.bf16.mxu0 %v7867_v40 }
 0x3da   :  { %5943 = vmatpush1.bf16.msra.mxu0 %v7878_v28 }
 0x3db   :  { %2927 = vmatprep.subr.mxu0 %v7885_v63  ;;  %v9484_v63 = vld [vmem:[#allocation63_spill] sm:$0xff] }
 0x3de   :  { %2928 = vmatpush1.msra.mxu0 %v7911_v57  ;;  %v9483_v57 = vld [vmem:[#allocation61_spill] sm:$0xff] }
 0x3df   :  { %5133 = vmatmul.mubr.msk.f32.vlgmr.msra.gmra.mrb[10].mxu0 %vm1414_vm5, %v8268_v43  ;;  %5945 = vmatprep.subr.bf16.mxu0 %v7913_v29 }
 0x3e0   :  { %5947 = vmatpush1.bf16.msra.mxu0 %v7916_v13  ;;  %3036 = vmatprep.mubr.f32.mxu0 %v9374_v3 }
 0x3e1   :  { %5949 = vmatprep.subr.bf16.mxu0 %v7925_v48 }
 0x3e4   :  { %5951 = vmatpush1.bf16.msra.mxu0 %v7946_v6 }
 0x3e5   :  { %5953 = vmatprep.subr.bf16.mxu0 %v7949_v54 }
 0x3e8   :  { %5955 = vmatpush1.bf16.msra.mxu0 %v7968_v12 }
 0x3e9   :  { %5957 = vmatprep.subr.bf16.mxu0 %v7971_v39 }
 0x3ec   :  { %5959 = vmatpush1.bf16.msra.mxu0 %v7988_v60 }
 0x3ed   :  { %5961 = vmatprep.subr.bf16.mxu0 %v7991_v34 }
 0x3f0   :  { %5963 = vmatpush1.bf16.msra.mxu0 %v8008_v30 }
 0x3f1   :  { %5965 = vmatprep.subr.bf16.mxu0 %v8011_v56 }
 0x3f4   :  { %5967 = vmatpush1.bf16.msra.mxu0 %v8028_v52 }
 0x3f5   :  { %5969 = vmatprep.subr.bf16.mxu0 %v8031_v36  ;;  %v9489_v36 = vld [vmem:[#allocation70_spill] sm:$0xff] }
 0x3f8   :  { %5971 = vmatpush1.bf16.msra.mxu0 %v8042_v9  ;;  %v9488_v9 = vld [vmem:[#allocation69_spill] sm:$0xff] }
 0x3f9   :  { %3000 = vmatprep.subr.mxu0 %v8049_v1  ;;  %v9486_v1 = vld [vmem:[#allocation67_spill] sm:$0xff] }
 0x3fc   :  { %3001 = vmatpush1.msra.mxu0 %v8075_v26  ;;  %v9487_v26 = vld [vmem:[#allocation68_spill] sm:$0xff] }
 0x3fd   :  { %5134 = vmatmul.mubr.msk.f32.vlgmr.msra.gmra.mrb[10].mxu0 %vm1414_vm5, %v8397_v10  ;;  %5973 = vmatprep.subr.bf16.mxu0 %v8077_v2  ;;  %v9490_v2 = vld [vmem:[#allocation71_spill] sm:$0xff] }
 0x3fe   :  { %5975 = vmatpush1.bf16.msra.mxu0 %v9483_v57  ;;  %3112 = vmatprep.mubr.f32.mxu0 %v9374_v3  ;;  %v9491_v57 = vld [vmem:[#allocation72_spill] sm:$0xff] }
 0x3ff   :  { %5977 = vmatprep.subr.bf16.mxu0 %v9484_v63 }
 0x402   :  { %5979 = vmatpush1.bf16.msra.mxu0 %v9454_v0 }
 0x403   :  { %5981 = vmatprep.subr.bf16.mxu0 %v9485_v45 }
 0x406   :  { %5983 = vmatpush1.bf16.msra.mxu0 %v9456_v33  ;;  %v9492_v33 = vld [vmem:[#allocation39_spill] sm:$0xff] }
 0x407   :  { %5985 = vmatprep.subr.bf16.mxu0 %v9486_v1 }
 0x40a   :  { %5987 = vmatpush1.bf16.msra.mxu0 %v9487_v26  ;;  %v9493_v26 = vmov 0.0|0.0  }
 0x40b   :  { %5989 = vmatprep.subr.bf16.mxu0 %v9488_v9  ;;  %v5141_v9 = vld [vmem:[%s9147_s5 + $0x78] sm:$0xff] }
 0x40e   :  { %5991 = vmatpush1.bf16.msra.mxu0 %v9489_v36  ;;  %v5140_v36 = vld [vmem:[%s9147_s5 + $0x70] sm:$0xff] }
 0x40f   :  { %5993 = vmatprep.subr.bf16.mxu0 %v9490_v2  ;;  %v6007_v1 = vpack.c.bf16 %v5141_v9, %v5140_v36  ;;  %v5145_v36 = vld [vmem:[%s9147_s5 + $0x98] sm:$0xff] }
 0x412   :  { %5995 = vmatpush1.bf16.msra.mxu0 %v9491_v57  ;;  %v5136_v57 = vld [vmem:[%s9147_s5 + $0x50] sm:$0xff] }
 0x413   :  { %5997 = vmatprep.subr.bf16.mxu0 %v9463_v42  ;;  %v5139_v42 = vld [vmem:[%s9147_s5 + $0x68] sm:$0xff] }
 0x416   :  { %5999 = vmatpush1.bf16.msra.mxu0 %v9464_v46  ;;  %v5137_v46 = vld [vmem:[%s9147_s5 + $0x58] sm:$0xff] }
 0x417   :  { %3076 = vmatprep.subr.mxu0 %v8213_v37  ;;  %v5138_v37 = vld [vmem:[%s9147_s5 + $0x60] sm:$0xff] }
 0x418   :  { %v6004_v2 = vpack.c.bf16 %v5139_v42, %v5138_v37  ;;  %v5143_v42 = vld [vmem:[%s9147_s5 + $0x88] sm:$0xff] }
 0x41a   :  { %3077 = vmatpush1.msra.mxu0 %v9465_v8  ;;  %v6001_v8 = vpack.c.bf16 %v5137_v46, %v5136_v57  ;;  %v5142_v46 = vld [vmem:[%s9147_s5 + $0x80] sm:$0xff] }
 0x41b   :  { %5135 = vmatmul.mubr.msk.f32.vlgmr.msra.gmra.mrb[10].mxu0 %vm1414_vm5, %v9492_v33  ;;  %6000 = vmatprep.subr.bf16.mxu0 %v9493_v26  ;;  %v6010_v57 = vpack.c.bf16 %v5143_v42, %v5142_v46 }
 0x41c   :  { %5276 = vmatprep.mubr.msk.f32.mxu0 %vm6829_vm6, %v9374_v3  ;;  %6002 = vmatpush3.bf16.msra.mxu0 %v6001_v8 }
 0x41d   :  { %6003 = vmatprep.subr.bf16.mxu0 %v9493_v26 }
 0x420   :  { %6005 = vmatpush3.bf16.msra.mxu0 %v6004_v2  ;;  %v5144_v2 = vld [vmem:[%s9147_s5 + $0x90] sm:$0xff] }
 0x421   :  { %6006 = vmatprep.subr.bf16.mxu0 %v9493_v26  ;;  %v6013_v9 = vpack.c.bf16 %v5145_v36, %v5144_v2  ;;  %v9496_v2 = vld [vmem:[#allocation35_spill] sm:$0xff]  ;;  %v9497_v36 = vld [vmem:[#allocation22_spill] sm:$0xff] }
 0x424   :  { %6008 = vmatpush3.bf16.msra.mxu0 %v6007_v1  ;;  %v9494_v1 = vld [vmem:[#allocation37_spill] sm:$0xff] }
 0x425   :  { %6009 = vmatprep.subr.bf16.mxu0 %v9493_v26  ;;  %v6630_v8 = vadd.f32 %v8544_v18, %v9494_v1  ;;  %v9498_v18 = vld [vmem:[#allocation34_spill] sm:$0xff] }
 0x428   :  { %6011 = vmatpush3.bf16.msra.mxu0 %v6010_v57  ;;  %v9495_v57 = vld [vmem:[#allocation38_spill] sm:$0xff] }
 0x429   :  { %6012 = vmatprep.subr.bf16.mxu0 %v9493_v26  ;;  %v6631_v26 = vadd.f32 %v8547_v23, %v9495_v57 }
 0x42c   :  { %6014 = vmatpush3.bf16.msra.mxu0 %v6013_v9  ;;  %v9499_v9 = vmax.f32 %v9497_v36, %v9498_v18  ;;  %v9504_v36 = vld [vmem:[#allocation25_spill] sm:$0xff]  ;;  %v9505_v18 = vld [vmem:[#allocation26_spill] sm:$0xff] }
 0x42d   :  { %6156 = vmatprep.subr.bf16.mxu0 %v7419_v20 }
 0x4ee   :  { %v3114_v37 = vpop.f32.mrb[10].mxu0 }
 0x4ef   :  { %v6632_v46 = vadd.f32 %v3114_v37, %v9494_v1  ;;  %v3116_v42 = vpop.f32.mrb[11].mxu0 }
 0x4f0   :  { %v6633_v45 = vadd.f32 %v3116_v42, %v9495_v57 }
 0x4f1   :  { %v3121_v0 = vmax.f32 %v6630_v8, %v6632_v46 }
 0x4f2   :  { %v3122_v63 = vmax.f32 %v6631_v26, %v6633_v45 }
 0x4f3   :  { %3125 = vrot.lane.b32.xlu0 %v3121_v0, %s6830_s1 }
 0x4f4   :  { %3127 = vrot.lane.b32.xlu1 %v3122_v63, %s6830_s1 }
 0x4f7   :  { %1345 = vrot.lane.b32.xlu0 %v9496_v2, %s6827_s20 }
 0x4f8   :  { %1347 = vrot.lane.b32.xlu1 %v9499_v9, %s6827_s20  ;;  %v9506_v9 = vld [vmem:[#allocation40_spill] sm:$0xff] }
 0x565   :  { %v3126_v37 = vpop.permute.xlu0 %3125 }
 0x566   :  { %v3128_v1 = vpop.permute.xlu1 %3127 }
 0x567   :  { %v3129_v23 = vsel %vm2295_vm7, %v3126_v37, %v3128_v1  ;;  %v9502_v1 = vld [vmem:[#allocation20_spill] sm:$0xff]  ;;  %v9507_v37 = vld [vmem:[#allocation41_spill] sm:$0xff] }
 0x568   :  { %v3131_v20 = vmax.f32 %v3121_v0, %v3129_v23  ;;  %v9501_v0 = vld [vmem:[#allocation18_spill] sm:$0xff]  ;;  %v9508_v23 = vld [vmem:[#allocation8_spill] sm:$0xff] }
 0x569   :  { %v1346_v42 = vpop.permute.xlu0 %1345 }
 0x56a   :  { %v3132_v8 = vmax.f32 %v3131_v20, 0.0  ;;  %v1348_v45 = vpop.permute.xlu1 %1347  ;;  %v9500_v20 = vld [vmem:[#allocation16_spill] sm:$0xff] }
 0x56b   :  { %v1352_v26 = vsel %vm1349_vm4, %v1346_v42, %v1348_v45  ;;  %v9509_v42 = vld [vmem:[#allocation9_spill] sm:$0xff] }
 0x56c   :  { %v1358_v63 = vmax.f32 %v9496_v2, %v1352_v26  ;;  %5277 = vmatmul.mubr.msk.f32.vlgmr.msra.gmra.mrb[8].mxu0 %vm2310_vm8, %v3132_v8  ;;  %v9503_v2 = vld [vmem:[#allocation21_spill] sm:$0xff]  ;;  %v9510_v8 = vld [vmem:[#allocation10_spill] sm:$0xff] }
 0x56d   :  { %6158 = vmatpush1.bf16.msra.mxu0 %v9466_v49  ;;  %3650 = vmatprep.mubr.f32.mxu0 %v9374_v3  ;;  %v9512_v45 = vld [vmem:[#allocation17_spill] sm:$0xff] }
 0x56e   :  { %v8707_v46 = vmax.f32 %v1358_v63, 0.0  ;;  %6160 = vmatprep.subr.bf16.mxu0 %v7457_v24  ;;  %v8821_v26 = vld [vmem:[%s9145_s3 + $0x2c0] sm:$0xff] }
 0x56f   :  { %9514 = vst [vmem:[#allocation43_spill] sm:$0xff] %v8821_v26  ;;  %v9515_v63 = vld [vmem:[#allocation58_spill] sm:$0xff] }
 0x570   :  { %5151 = vmatmul.mubr.msk.f32.vlgmr.msra.gmra.mrb[18].mxu1 %vm1414_vm5, %v8707_v46 }
 0x571   :  { %6162 = vmatpush1.bf16.msra.mxu0 %v7459_v25  ;;  %6313 = vmatpush1.bf16.msra.mxu1 %v9466_v49 }
 0x572   :  { %6164 = vmatprep.subr.bf16.mxu0 %v7485_v32  ;;  %6315 = vmatprep.subr.bf16.mxu1 %v7457_v24 }
 0x573   :  { %4115 = vmatprep.mubr.f32.mxu1 %v9374_v3 }
 0x575   :  { %6166 = vmatpush1.bf16.msra.mxu0 %v7507_v31  ;;  %6317 = vmatpush1.bf16.msra.mxu1 %v7459_v25 }
 0x576   :  { %6168 = vmatprep.subr.bf16.mxu0 %v7524_v21  ;;  %6319 = vmatprep.subr.bf16.mxu1 %v7485_v32 }
 0x579   :  { %6170 = vmatpush1.bf16.msra.mxu0 %v7551_v62  ;;  %6321 = vmatpush1.bf16.msra.mxu1 %v7507_v31 }
 0x57a   :  { %6172 = vmatprep.subr.bf16.mxu0 %v9500_v20  ;;  %6323 = vmatprep.subr.bf16.mxu1 %v7524_v21 }
 0x57d   :  { %6174 = vmatpush1.bf16.msra.mxu0 %v9501_v0  ;;  %6325 = vmatpush1.bf16.msra.mxu1 %v7551_v62 }
 0x57e   :  { %6176 = vmatprep.subr.bf16.mxu0 %v9502_v1  ;;  %6327 = vmatprep.subr.bf16.mxu1 %v9500_v20 }
 0x581   :  { %6178 = vmatpush1.bf16.msra.mxu0 %v9503_v2  ;;  %6329 = vmatpush1.bf16.msra.mxu1 %v9501_v0 }
 0x582   :  { %6180 = vmatprep.subr.bf16.mxu0 %v9504_v36  ;;  %6331 = vmatprep.subr.bf16.mxu1 %v9502_v1 }
 0x585   :  { %6182 = vmatpush1.bf16.msra.mxu0 %v9505_v18  ;;  %6333 = vmatpush1.bf16.msra.mxu1 %v9503_v2 }
 0x586   :  { %3614 = vmatprep.subr.mxu0 %v9506_v9  ;;  %6335 = vmatprep.subr.bf16.mxu1 %v9504_v36 }
 0x589   :  { %3615 = vmatpush1.msra.mxu0 %v9507_v37  ;;  %6337 = vmatpush1.bf16.msra.mxu1 %v9505_v18 }
 0x58a   :  { %5152 = vmatmul.mubr.msk.f32.vlgmr.msra.gmra.mrb[12].mxu0 %vm1414_vm5, %v8268_v43  ;;  %6184 = vmatprep.subr.bf16.mxu0 %v9508_v23  ;;  %v9511_v43 = vld [vmem:[#allocation13_spill] sm:$0xff] }
 0x58b   :  { %6186 = vmatpush1.bf16.msra.mxu0 %v9509_v42  ;;  %4079 = vmatprep.subr.mxu1 %v9506_v9 }
 0x58c   :  { %6188 = vmatprep.subr.bf16.mxu0 %v9510_v8  ;;  %3723 = vmatprep.mubr.f32.mxu0 %v9374_v3 }
 0x58d   :  { %4080 = vmatpush1.msra.mxu1 %v9507_v37 }
 0x58e   :  { %5168 = vmatmul.mubr.msk.f32.vlgmr.msra.gmra.mrb[20].mxu1 %vm1414_vm5, %v8397_v10  ;;  %6339 = vmatprep.subr.bf16.mxu1 %v9508_v23 }
 0x58f   :  { %6190 = vmatpush1.bf16.msra.mxu0 %v9440_v4  ;;  %6341 = vmatpush1.bf16.msra.mxu1 %v9509_v42 }
 0x590   :  { %6192 = vmatprep.subr.bf16.mxu0 %v9473_v53  ;;  %6343 = vmatprep.subr.bf16.mxu1 %v9510_v8 }
 0x591   :  { %4188 = vmatprep.mubr.f32.mxu1 %v9374_v3 }
 0x593   :  { %6194 = vmatpush1.bf16.msra.mxu0 %v9511_v43  ;;  %6345 = vmatpush1.bf16.msra.mxu1 %v9440_v4 }
 0x594   :  { %6196 = vmatprep.subr.bf16.mxu0 %v9475_v14  ;;  %6347 = vmatprep.subr.bf16.mxu1 %v9473_v53 }
 0x597   :  { %6198 = vmatpush1.bf16.msra.mxu0 %v9476_v50  ;;  %6349 = vmatpush1.bf16.msra.mxu1 %v9511_v43 }
 0x598   :  { %6200 = vmatprep.subr.bf16.mxu0 %v9512_v45  ;;  %6351 = vmatprep.subr.bf16.mxu1 %v9475_v14 }
 0x59b   :  { %6202 = vmatpush1.bf16.msra.mxu0 %v9478_v15  ;;  %6353 = vmatpush1.bf16.msra.mxu1 %v9476_v50 }
 0x59c   :  { %6204 = vmatprep.subr.bf16.mxu0 %v9479_v61  ;;  %6355 = vmatprep.subr.bf16.mxu1 %v9512_v45 }
 0x59f   :  { %6206 = vmatpush1.bf16.msra.mxu0 %v9480_v58  ;;  %6357 = vmatpush1.bf16.msra.mxu1 %v9478_v15 }
 0x5a0   :  { %6208 = vmatprep.subr.bf16.mxu0 %v9481_v47  ;;  %6359 = vmatprep.subr.bf16.mxu1 %v9479_v61 }
 0x5a3   :  { %6210 = vmatpush1.bf16.msra.mxu0 %v9482_v38  ;;  %6361 = vmatpush1.bf16.msra.mxu1 %v9480_v58 }
 0x5a4   :  { %3687 = vmatprep.subr.mxu0 %v8581_v22  ;;  %6363 = vmatprep.subr.bf16.mxu1 %v9481_v47 }
 0x5a7   :  { %3688 = vmatpush1.msra.mxu0 %v8587_v19  ;;  %6365 = vmatpush1.bf16.msra.mxu1 %v9482_v38 }
 0x5a8   :  { %5153 = vmatmul.mubr.msk.f32.vlgmr.msra.gmra.mrb[12].mxu0 %vm1414_vm5, %v8397_v10  ;;  %6212 = vmatprep.subr.bf16.mxu0 %v9450_v5  ;;  %v8814_v10 = vld [vmem:[%s9145_s3 + $0x2c8] sm:$0xff] }
 0x5a9   :  { %6214 = vmatpush1.bf16.msra.mxu0 %v9451_v11  ;;  %4152 = vmatprep.subr.mxu1 %v8581_v22  ;;  %9513 = vst [vmem:[#allocation42_spill] sm:$0xff] %v8814_v10 }
 0x5aa   :  { %6216 = vmatprep.subr.bf16.mxu0 %v9417_v59  ;;  %3796 = vmatprep.mubr.f32.mxu0 %v9374_v3 }
 0x5ab   :  { %4153 = vmatpush1.msra.mxu1 %v8587_v19 }
 0x5ac   :  { %5169 = vmatmul.mubr.msk.f32.vlgmr.msra.gmra.mrb[20].mxu1 %vm1414_vm5, %v9492_v33  ;;  %6367 = vmatprep.subr.bf16.mxu1 %v9450_v5 }
 0x5ad   :  { %6218 = vmatpush1.bf16.msra.mxu0 %v9418_v55  ;;  %6369 = vmatpush1.bf16.msra.mxu1 %v9451_v11 }
 0x5ae   :  { %6220 = vmatprep.subr.bf16.mxu0 %v9419_v16  ;;  %6371 = vmatprep.subr.bf16.mxu1 %v9417_v59 }
 0x5af   :  { %4261 = vmatprep.mubr.f32.mxu1 %v9374_v3 }
 0x5b1   :  { %6222 = vmatpush1.bf16.msra.mxu0 %v9420_v51  ;;  %6373 = vmatpush1.bf16.msra.mxu1 %v9418_v55 }
 0x5b2   :  { %6224 = vmatprep.subr.bf16.mxu0 %v9421_v44  ;;  %6375 = vmatprep.subr.bf16.mxu1 %v9419_v16 }
 0x5b5   :  { %6226 = vmatpush1.bf16.msra.mxu0 %v9422_v41  ;;  %6377 = vmatpush1.bf16.msra.mxu1 %v9420_v51 }
 0x5b6   :  { %6228 = vmatprep.subr.bf16.mxu0 %v9423_v7  ;;  %6379 = vmatprep.subr.bf16.mxu1 %v9421_v44 }
 0x5b9   :  { %6230 = vmatpush1.bf16.msra.mxu0 %v9424_v27  ;;  %6381 = vmatpush1.bf16.msra.mxu1 %v9422_v41 }
 0x5ba   :  { %6232 = vmatprep.subr.bf16.mxu0 %v7847_v35  ;;  %6383 = vmatprep.subr.bf16.mxu1 %v9423_v7 }
 0x5bd   :  { %6234 = vmatpush1.bf16.msra.mxu0 %v7864_v17  ;;  %6385 = vmatpush1.bf16.msra.mxu1 %v9424_v27 }
 0x5be   :  { %6236 = vmatprep.subr.bf16.mxu0 %v7867_v40  ;;  %6387 = vmatprep.subr.bf16.mxu1 %v7847_v35 }
 0x5c1   :  { %6238 = vmatpush1.bf16.msra.mxu0 %v7878_v28  ;;  %6389 = vmatpush1.bf16.msra.mxu1 %v7864_v17 }
 0x5c2   :  { %3760 = vmatprep.subr.mxu0 %v8814_v10  ;;  %6391 = vmatprep.subr.bf16.mxu1 %v7867_v40 }
 0x5c5   :  { %3761 = vmatpush1.msra.mxu0 %v8821_v26  ;;  %6393 = vmatpush1.bf16.msra.mxu1 %v7878_v28 }
 0x5c6   :  { %5154 = vmatmul.mubr.msk.f32.vlgmr.msra.gmra.mrb[12].mxu0 %vm1414_vm5, %v9492_v33  ;;  %6240 = vmatprep.subr.bf16.mxu0 %v7913_v29 }
 0x5c7   :  { %6242 = vmatpush1.bf16.msra.mxu0 %v7916_v13  ;;  %4225 = vmatprep.subr.mxu1 %v8814_v10 }
 0x5c8   :  { %6244 = vmatprep.subr.bf16.mxu0 %v7925_v48  ;;  %3869 = vmatprep.mubr.f32.mxu0 %v9374_v3 }
 0x5c9   :  { %4226 = vmatpush1.msra.mxu1 %v8821_v26 }
 0x5ca   :  { %5170 = vmatmul.mubr.msk.f32.vlgmr.msra.gmra.mrb[20].mxu1 %vm1414_vm5, %v8707_v46  ;;  %6395 = vmatprep.subr.bf16.mxu1 %v7913_v29 }
 0x5cb   :  { %6246 = vmatpush1.bf16.msra.mxu0 %v7946_v6  ;;  %6397 = vmatpush1.bf16.msra.mxu1 %v7916_v13  ;;  %v5162_v13 = vld [vmem:[%s9147_s5 + $0xc8] sm:$0xff] }
 0x5cc   :  { %6248 = vmatprep.subr.bf16.mxu0 %v7949_v54  ;;  %6399 = vmatprep.subr.bf16.mxu1 %v7925_v48  ;;  %v5161_v48 = vld [vmem:[%s9147_s5 + $0xc0] sm:$0xff] }
 0x5cd   :  { %4334 = vmatprep.mubr.f32.mxu1 %v9374_v3  ;;  %v6302_v29 = vpack.c.bf16 %v5162_v13, %v5161_v48  ;;  %v5165_v13 = vld [vmem:[%s9147_s5 + $0xe0] sm:$0xff]  ;;  %v5166_v48 = vld [vmem:[%s9147_s5 + $0xe8] sm:$0xff] }
 0x5cf   :  { %6250 = vmatpush1.bf16.msra.mxu0 %v7968_v12  ;;  %6401 = vmatpush1.bf16.msra.mxu1 %v7946_v6 }
 0x5d0   :  { %6252 = vmatprep.subr.bf16.mxu0 %v7971_v39  ;;  %6403 = vmatprep.subr.bf16.mxu1 %v7949_v54  ;;  %v9527_v54 = vld [vmem:[#allocation68_spill] sm:$0xff] }
 0x5d3   :  { %6254 = vmatpush1.bf16.msra.mxu0 %v7988_v60  ;;  %6405 = vmatpush1.bf16.msra.mxu1 %v7968_v12  ;;  %v9516_v12 = vld [vmem:[#allocation59_spill] sm:$0xff] }
 0x5d4   :  { %6256 = vmatprep.subr.bf16.mxu0 %v7991_v34  ;;  %6407 = vmatprep.subr.bf16.mxu1 %v7971_v39  ;;  %v9524_v39 = vld [vmem:[#allocation65_spill] sm:$0xff] }
 0x5d7   :  { %6258 = vmatpush1.bf16.msra.mxu0 %v8008_v30  ;;  %6409 = vmatpush1.bf16.msra.mxu1 %v7988_v60  ;;  %v8862_v60 = vld [vmem:[%s9145_s3 + $0x3b8] sm:$0xff] }
 0x5d8   :  { %6260 = vmatprep.subr.bf16.mxu0 %v8011_v56  ;;  %6411 = vmatprep.subr.bf16.mxu1 %v7991_v34  ;;  %9517 = vst [vmem:[#allocation44_spill] sm:$0xff] %v8862_v60  ;;  %v9521_v34 = vld [vmem:[#allocation63_spill] sm:$0xff] }
 0x5db   :  { %6262 = vmatpush1.bf16.msra.mxu0 %v8028_v52  ;;  %6413 = vmatpush1.bf16.msra.mxu1 %v8008_v30  ;;  %v8869_v30 = vld [vmem:[%s9145_s3 + $0x3b0] sm:$0xff] }
 0x5dc   :  { %6264 = vmatprep.subr.bf16.mxu0 %v9515_v63  ;;  %6415 = vmatprep.subr.bf16.mxu1 %v8011_v56  ;;  %9518 = vst [vmem:[#allocation5_spill] sm:$0xff] %v8869_v30  ;;  %v9520_v56 = vld [vmem:[#allocation61_spill] sm:$0xff] }
 0x5df   :  { %6266 = vmatpush1.bf16.msra.mxu0 %v9516_v12  ;;  %6417 = vmatpush1.bf16.msra.mxu1 %v8028_v52  ;;  %v9519_v52 = vld [vmem:[#allocation60_spill] sm:$0xff] }
 0x5e0   :  { %3833 = vmatprep.subr.mxu0 %v8862_v60  ;;  %6419 = vmatprep.subr.bf16.mxu1 %v9515_v63  ;;  %v8880_v63 = vrot.slane %v8707_v46, 2 }
 0x5e2   :  { %9522 = vst [vmem:[#allocation29_spill] sm:$0xff] %v8880_v63 }
 0x5e3   :  { %3834 = vmatpush1.msra.mxu0 %v8869_v30  ;;  %6421 = vmatpush1.bf16.msra.mxu1 %v9516_v12  ;;  %v9523_v12 = vld [vmem:[#allocation64_spill] sm:$0xff] }
 0x5e4   :  { %5155 = vmatmul.mubr.msk.f32.vlgmr.msra.gmra.mrb[12].mxu0 %vm1414_vm5, %v8707_v46  ;;  %6268 = vmatprep.subr.bf16.mxu0 %v9519_v52 }
 0x5e5   :  { %6270 = vmatpush1.bf16.msra.mxu0 %v9520_v56  ;;  %4298 = vmatprep.subr.mxu1 %v8862_v60  ;;  %v9525_v60 = vld [vmem:[#allocation66_spill] sm:$0xff] }
 0x5e6   :  { %6272 = vmatprep.subr.bf16.mxu0 %v9521_v34  ;;  %3945 = vmatprep.mubr.f32.mxu0 %v9374_v3 }
 0x5e7   :  { %4299 = vmatpush1.msra.mxu1 %v8869_v30  ;;  %v9526_v30 = vld [vmem:[#allocation67_spill] sm:$0xff] }
 0x5e8   :  { %5171 = vmatmul.mubr.msk.f32.vlgmr.msra.gmra.mrb[20].mxu1 %vm1414_vm5, %v8880_v63  ;;  %6423 = vmatprep.subr.bf16.mxu1 %v9519_v52  ;;  %v9528_v52 = vld [vmem:[#allocation69_spill] sm:$0xff] }
 0x5e9   :  { %6274 = vmatpush1.bf16.msra.mxu0 %v9523_v12  ;;  %6425 = vmatpush1.bf16.msra.mxu1 %v9520_v56  ;;  %v9529_v56 = vld [vmem:[#allocation70_spill] sm:$0xff] }
 0x5ea   :  { %6276 = vmatprep.subr.bf16.mxu0 %v9524_v39  ;;  %6427 = vmatprep.subr.bf16.mxu1 %v9521_v34  ;;  %v9530_v34 = vld [vmem:[#allocation71_spill] sm:$0xff] }
 0x5eb   :  { %4410 = vmatprep.mubr.f32.mxu1 %v9374_v3 }
 0x5ed   :  { %6278 = vmatpush1.bf16.msra.mxu0 %v9525_v60  ;;  %6429 = vmatpush1.bf16.msra.mxu1 %v9523_v12  ;;  %v9531_v12 = vld [vmem:[#allocation72_spill] sm:$0xff] }
 0x5ee   :  { %6280 = vmatprep.subr.bf16.mxu0 %v9526_v30  ;;  %6431 = vmatprep.subr.bf16.mxu1 %v9524_v39  ;;  %v9532_v39 = vld [vmem:[#allocation73_spill] sm:$0xff] }
 0x5f1   :  { %6282 = vmatpush1.bf16.msra.mxu0 %v9527_v54  ;;  %6433 = vmatpush1.bf16.msra.mxu1 %v9525_v60  ;;  %v9533_v60 = vld [vmem:[#allocation74_spill] sm:$0xff] }
 0x5f2   :  { %6284 = vmatprep.subr.bf16.mxu0 %v9528_v52  ;;  %6435 = vmatprep.subr.bf16.mxu1 %v9526_v30  ;;  %v5159_v30 = vld [vmem:[%s9147_s5 + $0xb0] sm:$0xff] }
 0x5f5   :  { %6286 = vmatpush1.bf16.msra.mxu0 %v9529_v56  ;;  %6437 = vmatpush1.bf16.msra.mxu1 %v9527_v54  ;;  %v8913_v54 = vld [vmem:[%s9145_s3 + $0x4a8] sm:$0xff] }
 0x5f6   :  { %6288 = vmatprep.subr.bf16.mxu0 %v9530_v34  ;;  %6439 = vmatprep.subr.bf16.mxu1 %v9528_v52  ;;  %9534 = vst [vmem:[#allocation30_spill] sm:$0xff] %v8913_v54  ;;  %v5157_v52 = vld [vmem:[%s9147_s5 + $0xa0] sm:$0xff] }
 0x5f9   :  { %6290 = vmatpush1.bf16.msra.mxu0 %v9531_v12  ;;  %6441 = vmatpush1.bf16.msra.mxu1 %v9529_v56  ;;  %v8920_v56 = vld [vmem:[%s9145_s3 + $0x4a0] sm:$0xff] }
 0x5fa   :  { %6292 = vmatprep.subr.bf16.mxu0 %v9532_v39  ;;  %6443 = vmatprep.subr.bf16.mxu1 %v9530_v34  ;;  %9535 = vst [vmem:[#allocation11_spill] sm:$0xff] %v8920_v56 }
 0x5fd   :  { %6294 = vmatpush1.bf16.msra.mxu0 %v9533_v60  ;;  %6445 = vmatpush1.bf16.msra.mxu1 %v9531_v12  ;;  %v9536_v12 = vmov 0.0|0.0  }
 0x5fe   :  { %3909 = vmatprep.subr.mxu0 %v8913_v54  ;;  %6447 = vmatprep.subr.bf16.mxu1 %v9532_v39  ;;  %v9317_v39 = vrot.slane %v8707_v46, 4 }
 0x601   :  { %3910 = vmatpush1.msra.mxu0 %v8920_v56  ;;  %6449 = vmatpush1.bf16.msra.mxu1 %v9533_v60 }
 0x602   :  { %5156 = vmatmul.mubr.msk.f32.vlgmr.msra.gmra.mrb[12].mxu0 %vm1414_vm5, %v8880_v63  ;;  %4374 = vmatprep.subr.mxu1 %v8913_v54  ;;  %v5158_v54 = vld [vmem:[%s9147_s5 + $0xa8] sm:$0xff] }
 0x603   :  { %6295 = vmatprep.subr.bf16.mxu0 %v9536_v12  ;;  %5299 = vmatprep.mubr.msk.f32.mxu0 %vm6829_vm6, %v9374_v3  ;;  %v6296_v6 = vpack.c.bf16 %v5158_v54, %v5157_v52  ;;  %v5163_v54 = vld [vmem:[%s9147_s5 + $0xd0] sm:$0xff] }
 0x605   :  { %4375 = vmatpush1.msra.mxu1 %v8920_v56  ;;  %v5160_v56 = vld [vmem:[%s9147_s5 + $0xb8] sm:$0xff]  ;;  %6297 = vmatpush3.bf16.msra.mxu0 %v6296_v6 }
 0x606   :  { %5172 = vmatmul.mubr.msk.f32.vlgmr.msra.gmra.mrb[20].mxu1 %vm1414_vm5, %v9317_v39  ;;  %v6299_v39 = vpack.c.bf16 %v5160_v56, %v5159_v30  ;;  %6298 = vmatprep.subr.bf16.mxu0 %v9536_v12  ;;  %v5164_v6 = vld [vmem:[%s9147_s5 + $0xd8] sm:$0xff]  ;;  %v9537_v56 = vld [vmem:[#allocation6_spill] sm:$0xff] }
 0x607   :  { %v6305_v30 = vpack.c.bf16 %v5164_v6, %v5163_v54 }
 0x609   :  { %6300 = vmatpush3.bf16.msra.mxu0 %v6299_v39  ;;  %v6308_v39 = vpack.c.bf16 %v5166_v48, %v5165_v13 }
 0x60a   :  { %6301 = vmatprep.subr.bf16.mxu0 %v9536_v12 }
 0x60d   :  { %6303 = vmatpush3.bf16.msra.mxu0 %v6302_v29  ;;  %v9538_v29 = vld [vmem:[#allocation37_spill] sm:$0xff] }
 0x60e   :  { %6304 = vmatprep.subr.bf16.mxu0 %v9536_v12 }
 0x611   :  { %6306 = vmatpush3.bf16.msra.mxu0 %v6305_v30 }
 0x612   :  { %6307 = vmatprep.subr.bf16.mxu0 %v9536_v12 }
 0x615   :  { %6309 = vmatpush3.bf16.msra.mxu0 %v6308_v39 }
 0x616   :  { %6451 = vmatprep.subr.bf16.mxu0 %v9537_v56 }
 0x643   :  { %v3579_v34 = vpop.f32.mrb[18].mxu1 }
 0x644   :  { %v3581_v60 = vpop.f32.mrb[19].mxu1  ;;  %v6634_v54 = vadd.f32 %v3579_v34, %v9538_v29 }
 0x645   :  { %v6635_v12 = vadd.f32 %v3581_v60, %v9495_v57  ;;  %v9556_v60 = vld [vmem:[#allocation59_spill] sm:$0xff] }
 0x6d5   :  { %v3947_v52 = vpop.f32.mrb[12].mxu0 }
 0x6d6   :  { %v6636_v6 = vadd.f32 %v3947_v52, %v9538_v29  ;;  %v3949_v30 = vpop.f32.mrb[13].mxu0 }
 0x6d7   :  { %v6637_v63 = vadd.f32 %v3949_v30, %v9495_v57 }
 0x6d8   :  { %v3954_v26 = vmax.f32 %v6634_v54, %v6636_v6  ;;  %v5187_v54 = vld [vmem:[%s9147_s5 + $0x138] sm:$0xff] }
 0x6d9   :  { %v3955_v10 = vmax.f32 %v6635_v12, %v6637_v63  ;;  %v8974_v28 = vpop.f32.mrb[20].mxu1  ;;  %v9555_v12 = vld [vmem:[#allocation58_spill] sm:$0xff]  ;;  %v5186_v63 = vld [vmem:[%s9147_s5 + $0x130] sm:$0xff] }
 0x6da   :  { %3958 = vrot.lane.b32.xlu0 %v3954_v26, %s6830_s1  ;;  %v8977_v13 = vpop.f32.mrb[21].mxu1  ;;  %v6603_v6 = vpack.c.bf16 %v5187_v54, %v5186_v63 }
 0x6db   :  { %3960 = vrot.lane.b32.xlu1 %v3955_v10, %s6830_s1  ;;  %v5185_v10 = vld [vmem:[%s9147_s5 + $0x128] sm:$0xff] }
 0x74c   :  { %v3959_v48 = vpop.permute.xlu0 %3958 }
 0x74d   :  { %v3961_v39 = vpop.permute.xlu1 %3960 }
 0x74e   :  { %v3962_v34 = vsel %vm2295_vm7, %v3959_v48, %v3961_v39  ;;  %v6638_v48 = vadd.f32 %v8974_v28, %v9538_v29 }
 0x74f   :  { %v3964_v56 = vmax.f32 %v3954_v26, %v3962_v34 }
 0x751   :  { %v3965_v52 = vmax.f32 %v3964_v56, 0.0  ;;  %v6639_v56 = vadd.f32 %v8977_v13, %v9495_v57 }
 0x753   :  { %5300 = vmatmul.mubr.msk.f32.vlgmr.msra.gmra.mrb[8].mxu0 %vm2310_vm8, %v3965_v52 }
 0x754   :  { %6453 = vmatpush1.bf16.msra.mxu0 %v9466_v49  ;;  %4483 = vmatprep.mubr.f32.mxu0 %v9374_v3  ;;  %v9567_v49 = vld [vmem:[#allocation68_spill] sm:$0xff] }
 0x755   :  { %6455 = vmatprep.subr.bf16.mxu0 %v7457_v24  ;;  %v9539_v24 = vld [vmem:[#allocation45_spill] sm:$0xff] }
 0x758   :  { %6457 = vmatpush1.bf16.msra.mxu0 %v7459_v25  ;;  %v9540_v25 = vld [vmem:[#allocation42_spill] sm:$0xff] }
 0x759   :  { %6459 = vmatprep.subr.bf16.mxu0 %v7485_v32  ;;  %v9541_v32 = vld [vmem:[#allocation43_spill] sm:$0xff] }
 0x75c   :  { %6461 = vmatpush1.bf16.msra.mxu0 %v7507_v31  ;;  %v9542_v31 = vld [vmem:[#allocation29_spill] sm:$0xff] }
 0x75d   :  { %6463 = vmatprep.subr.bf16.mxu0 %v7524_v21  ;;  %v9544_v21 = vld [vmem:[#allocation47_spill] sm:$0xff] }
 0x760   :  { %6465 = vmatpush1.bf16.msra.mxu0 %v7551_v62  ;;  %v9545_v62 = vld [vmem:[#allocation48_spill] sm:$0xff] }
 0x761   :  { %6467 = vmatprep.subr.bf16.mxu0 %v9500_v20  ;;  %v9573_v20 = vld [vmem:[#allocation74_spill] sm:$0xff] }
 0x764   :  { %6469 = vmatpush1.bf16.msra.mxu0 %v9501_v0  ;;  %v9574_v0 = vld [vmem:[#allocation30_spill] sm:$0xff] }
 0x765   :  { %6471 = vmatprep.subr.bf16.mxu0 %v9502_v1  ;;  %v4711_v1 = vrot.slane %v8707_v46, 6 }
 0x768   :  { %6473 = vmatpush1.bf16.msra.mxu0 %v9503_v2  ;;  %v9575_v2 = vld [vmem:[#allocation11_spill] sm:$0xff] }
 0x769   :  { %6475 = vmatprep.subr.bf16.mxu0 %v9504_v36  ;;  %v9576_v36 = vmov 0.0|0.0  }
 0x76c   :  { %6477 = vmatpush1.bf16.msra.mxu0 %v9505_v18  ;;  %v5178_v18 = vld [vmem:[%s9147_s5 + $0xf0] sm:$0xff] }
 0x76d   :  { %4447 = vmatprep.subr.mxu0 %v9506_v9  ;;  %v5179_v9 = vld [vmem:[%s9147_s5 + $0xf8] sm:$0xff] }
 0x770   :  { %4448 = vmatpush1.msra.mxu0 %v9507_v37  ;;  %v6591_v37 = vpack.c.bf16 %v5179_v9, %v5178_v18 }
 0x771   :  { %5173 = vmatmul.mubr.msk.f32.vlgmr.msra.gmra.mrb[14].mxu0 %vm1414_vm5, %v9492_v33  ;;  %6479 = vmatprep.subr.bf16.mxu0 %v9508_v23  ;;  %v9568_v33 = vld [vmem:[#allocation69_spill] sm:$0xff]  ;;  %v5181_v23 = vld [vmem:[%s9147_s5 + $0x108] sm:$0xff] }
 0x772   :  { %6481 = vmatpush1.bf16.msra.mxu0 %v9509_v42  ;;  %4556 = vmatprep.mubr.f32.mxu0 %v9374_v3 }
 0x773   :  { %6483 = vmatprep.subr.bf16.mxu0 %v9510_v8  ;;  %v5183_v8 = vld [vmem:[%s9147_s5 + $0x118] sm:$0xff] }
 0x776   :  { %6485 = vmatpush1.bf16.msra.mxu0 %v9440_v4  ;;  %v9565_v4 = vld [vmem:[#allocation66_spill] sm:$0xff] }
 0x777   :  { %6487 = vmatprep.subr.bf16.mxu0 %v9473_v53  ;;  %v9570_v53 = vld [vmem:[#allocation71_spill] sm:$0xff] }
 0x77a   :  { %6489 = vmatpush1.bf16.msra.mxu0 %v9511_v43 }
 0x77b   :  { %6491 = vmatprep.subr.bf16.mxu0 %v9475_v14  ;;  %v9560_v14 = vld [vmem:[#allocation60_spill] sm:$0xff] }
 0x77e   :  { %6493 = vmatpush1.bf16.msra.mxu0 %v9476_v50  ;;  %v9571_v50 = vld [vmem:[#allocation72_spill] sm:$0xff] }
 0x77f   :  { %6495 = vmatprep.subr.bf16.mxu0 %v9512_v45  ;;  %v5184_v45 = vld [vmem:[%s9147_s5 + $0x120] sm:$0xff] }
 0x780   :  { %v6600_v26 = vpack.c.bf16 %v5185_v10, %v5184_v45 }
 0x782   :  { %6497 = vmatpush1.bf16.msra.mxu0 %v9478_v15  ;;  %v9572_v15 = vld [vmem:[#allocation73_spill] sm:$0xff] }
 0x783   :  { %6499 = vmatprep.subr.bf16.mxu0 %v9479_v61  ;;  %v9569_v61 = vld [vmem:[#allocation70_spill] sm:$0xff] }
 0x786   :  { %6501 = vmatpush1.bf16.msra.mxu0 %v9480_v58  ;;  %v9562_v58 = vld [vmem:[#allocation63_spill] sm:$0xff] }
 0x787   :  { %6503 = vmatprep.subr.bf16.mxu0 %v9481_v47  ;;  %v9546_v47 = vld [vmem:[#allocation49_spill] sm:$0xff] }
 0x78a   :  { %6505 = vmatpush1.bf16.msra.mxu0 %v9482_v38  ;;  %v9564_v38 = vld [vmem:[#allocation65_spill] sm:$0xff] }
 0x78b   :  { %4520 = vmatprep.subr.mxu0 %v8581_v22  ;;  %v9561_v22 = vld [vmem:[#allocation61_spill] sm:$0xff] }
 0x78e   :  { %4521 = vmatpush1.msra.mxu0 %v8587_v19  ;;  %v9547_v19 = vld [vmem:[#allocation50_spill] sm:$0xff] }
 0x78f   :  { %5174 = vmatmul.mubr.msk.f32.vlgmr.msra.gmra.mrb[14].mxu0 %vm1414_vm5, %v8707_v46  ;;  %6507 = vmatprep.subr.bf16.mxu0 %v9450_v5  ;;  %v9563_v5 = vld [vmem:[#allocation64_spill] sm:$0xff] }
 0x790   :  { %6509 = vmatpush1.bf16.msra.mxu0 %v9451_v11  ;;  %4629 = vmatprep.mubr.f32.mxu0 %v9374_v3  ;;  %v9566_v11 = vld [vmem:[#allocation67_spill] sm:$0xff] }
 0x791   :  { %6511 = vmatprep.subr.bf16.mxu0 %v9417_v59  ;;  %v9548_v59 = vld [vmem:[#allocation51_spill] sm:$0xff] }
 0x794   :  { %6513 = vmatpush1.bf16.msra.mxu0 %v9418_v55  ;;  %v9558_v55 = vld [vmem:[#allocation5_spill] sm:$0xff] }
 0x795   :  { %6515 = vmatprep.subr.bf16.mxu0 %v9419_v16  ;;  %v9559_v16 = vrot.slane %v8707_v46, 4  ;;  %v5180_v46 = vld [vmem:[%s9147_s5 + $0x100] sm:$0xff] }
 0x796   :  { %v6594_v42 = vpack.c.bf16 %v5181_v23, %v5180_v46 }
 0x798   :  { %6517 = vmatpush1.bf16.msra.mxu0 %v9420_v51  ;;  %v9551_v51 = vld [vmem:[#allocation54_spill] sm:$0xff] }
 0x799   :  { %6519 = vmatprep.subr.bf16.mxu0 %v9421_v44  ;;  %v9557_v44 = vld [vmem:[#allocation44_spill] sm:$0xff] }
 0x79c   :  { %6521 = vmatpush1.bf16.msra.mxu0 %v9422_v41  ;;  %v9543_v41 = vld [vmem:[#allocation46_spill] sm:$0xff] }
 0x79d   :  { %6523 = vmatprep.subr.bf16.mxu0 %v9423_v7  ;;  %v9550_v7 = vld [vmem:[#allocation53_spill] sm:$0xff] }
 0x7a0   :  { %6525 = vmatpush1.bf16.msra.mxu0 %v9424_v27  ;;  %v9549_v27 = vld [vmem:[#allocation52_spill] sm:$0xff] }
 0x7a1   :  { %6527 = vmatprep.subr.bf16.mxu0 %v7847_v35  ;;  %v9552_v35 = vld [vmem:[#allocation55_spill] sm:$0xff] }
 0x7a4   :  { %6529 = vmatpush1.bf16.msra.mxu0 %v7864_v17  ;;  %v9553_v17 = vld [vmem:[#allocation56_spill] sm:$0xff] }
 0x7a5   :  { %6531 = vmatprep.subr.bf16.mxu0 %v7867_v40  ;;  %v9554_v40 = vld [vmem:[#allocation57_spill] sm:$0xff] }
 0x7a8   :  { %6533 = vmatpush1.bf16.msra.mxu0 %v9539_v24 }
 0x7a9   :  { %4593 = vmatprep.subr.mxu0 %v9540_v25 }
 0x7ac   :  { %4594 = vmatpush1.msra.mxu0 %v9541_v32 }
 0x7ad   :  { %5175 = vmatmul.mubr.msk.f32.vlgmr.msra.gmra.mrb[14].mxu0 %vm1414_vm5, %v9542_v31  ;;  %6535 = vmatprep.subr.bf16.mxu0 %v9543_v41 }
 0x7ae   :  { %6537 = vmatpush1.bf16.msra.mxu0 %v9544_v21  ;;  %4702 = vmatprep.mubr.f32.mxu0 %v9374_v3 }
 0x7af   :  { %6539 = vmatprep.subr.bf16.mxu0 %v9545_v62 }
 0x7b2   :  { %6541 = vmatpush1.bf16.msra.mxu0 %v9546_v47 }
 0x7b3   :  { %6543 = vmatprep.subr.bf16.mxu0 %v9547_v19 }
 0x7b6   :  { %6545 = vmatpush1.bf16.msra.mxu0 %v9548_v59 }
 0x7b7   :  { %6547 = vmatprep.subr.bf16.mxu0 %v9549_v27 }
 0x7ba   :  { %6549 = vmatpush1.bf16.msra.mxu0 %v9550_v7 }
 0x7bb   :  { %6551 = vmatprep.subr.bf16.mxu0 %v9551_v51 }
 0x7be   :  { %6553 = vmatpush1.bf16.msra.mxu0 %v9552_v35 }
 0x7bf   :  { %6555 = vmatprep.subr.bf16.mxu0 %v9553_v17 }
 0x7c2   :  { %6557 = vmatpush1.bf16.msra.mxu0 %v9554_v40 }
 0x7c3   :  { %6559 = vmatprep.subr.bf16.mxu0 %v9555_v12 }
 0x7c6   :  { %6561 = vmatpush1.bf16.msra.mxu0 %v9556_v60 }
 0x7c7   :  { %4666 = vmatprep.subr.mxu0 %v9557_v44 }
 0x7ca   :  { %4667 = vmatpush1.msra.mxu0 %v9558_v55 }
 0x7cb   :  { %5176 = vmatmul.mubr.msk.f32.vlgmr.msra.gmra.mrb[14].mxu0 %vm1414_vm5, %v9559_v16  ;;  %6563 = vmatprep.subr.bf16.mxu0 %v9560_v14 }
 0x7cc   :  { %6565 = vmatpush1.bf16.msra.mxu0 %v9561_v22  ;;  %4778 = vmatprep.mubr.f32.mxu0 %v9374_v3 }
 0x7cd   :  { %6567 = vmatprep.subr.bf16.mxu0 %v9562_v58 }
 0x7d0   :  { %6569 = vmatpush1.bf16.msra.mxu0 %v9563_v5 }
 0x7d1   :  { %6571 = vmatprep.subr.bf16.mxu0 %v9564_v38 }
 0x7d4   :  { %6573 = vmatpush1.bf16.msra.mxu0 %v9565_v4 }
 0x7d5   :  { %6575 = vmatprep.subr.bf16.mxu0 %v9566_v11 }
 0x7d8   :  { %6577 = vmatpush1.bf16.msra.mxu0 %v9567_v49 }
 0x7d9   :  { %6579 = vmatprep.subr.bf16.mxu0 %v9568_v33 }
 0x7dc   :  { %6581 = vmatpush1.bf16.msra.mxu0 %v9569_v61 }
 0x7dd   :  { %6583 = vmatprep.subr.bf16.mxu0 %v9570_v53 }
 0x7e0   :  { %6585 = vmatpush1.bf16.msra.mxu0 %v9571_v50 }
 0x7e1   :  { %6587 = vmatprep.subr.bf16.mxu0 %v9572_v15 }
 0x7e4   :  { %6589 = vmatpush1.bf16.msra.mxu0 %v9573_v20 }
 0x7e5   :  { %4742 = vmatprep.subr.mxu0 %v9574_v0 }
 0x7e8   :  { %4743 = vmatpush1.msra.mxu0 %v9575_v2 }
 0x7e9   :  { %5177 = vmatmul.mubr.msk.f32.vlgmr.msra.gmra.mrb[14].mxu0 %vm1414_vm5, %v4711_v1  ;;  %6590 = vmatprep.subr.bf16.mxu0 %v9576_v36 }
 0x7ea   :  { %5322 = vmatprep.mubr.msk.f32.mxu0 %vm6829_vm6, %v9374_v3  ;;  %6592 = vmatpush3.bf16.msra.mxu0 %v6591_v37  ;;  %v5182_v3 = vld [vmem:[%s9147_s5 + $0x110] sm:$0xff] }
 0x7eb   :  { %6593 = vmatprep.subr.bf16.mxu0 %v9576_v36  ;;  %v6597_v43 = vpack.c.bf16 %v5183_v8, %v5182_v3 }
 0x7ee   :  { %6595 = vmatpush3.bf16.msra.mxu0 %v6594_v42 }
 0x7ef   :  { %6596 = vmatprep.subr.bf16.mxu0 %v9576_v36 }
 0x7f2   :  { %6598 = vmatpush3.bf16.msra.mxu0 %v6597_v43 }
 0x7f3   :  { %6599 = vmatprep.subr.bf16.mxu0 %v9576_v36 }
 0x7f6   :  { %6601 = vmatpush3.bf16.msra.mxu0 %v6600_v26 }
 0x7f7   :  { %6602 = vmatprep.subr.bf16.mxu0 %v9576_v36 }
 0x7fa   :  { %6604 = vmatpush3.bf16.msra.mxu0 %v6603_v6 }
 0x8bc   :  { %v4780_v30 = vpop.f32.mrb[14].mxu0 }
 0x8bd   :  { %v6640_v39 = vadd.f32 %v4780_v30, %v9538_v29  ;;  %v4782_v34 = vpop.f32.mrb[15].mxu0  ;;  %v4994_v29 = vld [vmem:[%s9148_s6] ss:$0 sm:$0xff] }
 0x8be   :  { %v6641_v52 = vadd.f32 %v4782_v34, %v9495_v57 }
 0x8bf   :  { %v4787_v24 = vmax.f32 %v6638_v48, %v6640_v39 }
 0x8c0   :  { %v4788_v25 = vmax.f32 %v6639_v56, %v6641_v52 }
 0x8c1   :  { %4791 = vrot.lane.b32.xlu0 %v4787_v24, %s6830_s1 }
 0x8c2   :  { %4793 = vrot.lane.b32.xlu1 %v4788_v25, %s6830_s1  ;;  %s6831_s1 = smov [#allocation2]  }
 0x8c3   :  { %s4904_s6 = sshll.u32 %s6831_s1, 4  ;;  %s4905_s6 = int_to_ptr.vmem [resolvable:$true] %s4904_s6 }
 0x8c4   :  { %s6800_s0 = scalar_lea.vmem %s4905_s6, 32  ;;  %p6805_p1 = scmp.lt.s32.totalorder %s4905_s6, %s4905_s6 }
 0x8c5   :  { %p6801_p0 = scmp.ne.s32.totalorder %s4905_s6, %s6800_s0  ;;  %p6806_p2 = scmp.lt.s32.totalorder %s6800_s0, %s6800_s0 }
 0x8c7   :  { %p6807_p3 = por %p6806_p2, %p6805_p1 }
 0x8c9   :  { %p6808_p4 = pnand %p6807_p3, %p6801_p0 }
 0x933   :  { %v4792_v32 = vpop.permute.xlu0 %4791 }
 0x934   :  { %v4794_v31 = vpop.permute.xlu1 %4793 }
 0x935   :  { %v4795_v41 = vsel %vm2295_vm7, %v4792_v32, %v4794_v31 }
 0x936   :  { %v4797_v21 = vmax.f32 %v4787_v24, %v4795_v41 }
 0x938   :  { %v4798_v28 = vmax.f32 %v4797_v21, 0.0 }
 0x93a   :  { %5323 = vmatmul.mubr.msk.f32.vlgmr.msra.gmra.mrb[8].mxu0 %vm2310_vm8, %v4798_v28 }
 0xa0d   :  { %v4879_v13 = vpop.f32.mrb[8].mxu0 }
 0xa0e   :  { %v6629_v57 = vadd.f32 %v4994_v29, %v4879_v13  ;;  %v5324_v62 = vpop.f32.mrb[9].mxu0 }
 0xa10   :  { %v4885_v47 = vsel %vm4884_vm9, %v6629_v57, -inf }
 0xa11   :  { %4886 = vmax.xlane.f32.xlu0 %v4885_v47 }
 0xa9e   :  { %v4887_v19 = vpop.xlane.xlu0 %4886 }
 0xa9f   :  { %v4888_v59 = vsub.f32 %v6629_v57, %v4887_v19 }
 0xaa1   :  { %v4889_v27 = vmul.f32 1.442695, %v4888_v59 }
 0xaa3   :  { %6786 = vpow2.f32 %v4889_v27 }
 0xaad   :  { %v6787_v7 = vpop.eup %6786 }
 0xaae   :  { %v4891_v51 = vsel %vm4884_vm9, %v6787_v7, 0.0 }
 0xaaf   :  { %4892 = vadd.xlane.f32.xlu1 %v4891_v51 }
 0xb3c   :  { %v4893_v35 = vpop.xlane.xlu1 %4892 }
 0xb3d   :  { %6788 = vlog2.f32 %v4893_v35 }
 0xb47   :  { %v6789_v17 = vpop.eup %6788 }
 0xb48   :  { %v4895_v40 = vmul.f32 0.6931472, %v6789_v17 }
 0xb4a   :  { %v4896_v12 = vsub.f32 %v4888_v59, %v4895_v40 }
 0xb4c   :  { %4897 = vst.msk [vmem:[#allocation2] sm:$0x3] %vm4884_vm9, %v4896_v12 }
 0xb4d   :  { %6811 = shalt.err (!%p6808_p4)
}
 0xb4e   :  { %s6812_s22 = scalar_lea.hbm %s9149_s7, 32 }
 0xb4f   :  { %p6813_p5 = scmp.ne.s32.totalorder %s9149_s7, %s6812_s22  ;;  %p6816_p6 = scmp.lt.u32.totalorder %s6812_s22, %s9149_s7 }
 0xb51   :  { %p6818_p7 = pnand %p6816_p6, %p6813_p5 }
 0xb53   :  { %6821 = shalt.err (!%p6818_p7)
}
 0xb54   :  { %4907 = dma.vmem_to_hbm [thread:$0]  %s4905_s6, 32, %s9149_s7, [#allocation3]  }
 0xb55   :  { %6822 = dma.done.wait [#allocation3], 32  }
 0xb56   :  { %6823 = vsyncadd [#allocation3], 4294967264 }
 0xb57   :  { %4911 = vsyncpa [#allocation3], 1 }

</bundles_post_ra>
